<compile_context>
chip_gen: v5e
topology: v5e:2x2
jax: 0.10.0
libtpu: 0.0.40
codegen_flags: <defaults>
</compile_context>

<pallas_src>
import math

import jax
import jax.numpy as jnp
from jax.experimental import pallas as pl
from jax.experimental.pallas import tpu as pltpu


# ---------------------------------------------------------------------------
# Matmul kernels (bf16 inputs, f32 VMEM accumulator, K axis last / "arbitrary")
# ---------------------------------------------------------------------------

def _make_linear_kernel(activation):
    def kernel(x_ref, w_ref, b_ref, o_ref, acc_ref):
        k = pl.program_id(2)

        @pl.when(k == 0)
        def _():
            acc_ref[...] = jnp.zeros_like(acc_ref)

        acc_ref[...] += jnp.dot(x_ref[...], w_ref[...],
                                preferred_element_type=jnp.float32)

        @pl.when(k == pl.num_programs(2) - 1)
        def _():
            y = acc_ref[...] + b_ref[...]
            if activation == "relu":
                y = jnp.maximum(y, 0.0)
            o_ref[...] = y.astype(o_ref.dtype)

    return kernel


def _linear_add_ln_kernel(x_ref, w_ref, b_ref, r_ref, g_ref, bb_ref, o_ref, acc_ref):
    # o = LayerNorm(x @ w + b + residual), LN fused into the matmul finalize.
    # Matches nn.LayerNorm: eps=1e-5, biased variance.  LN math kept in f32.
    k = pl.program_id(1)

    @pl.when(k == 0)
    def _():
        acc_ref[...] = jnp.zeros_like(acc_ref)

    acc_ref[...] += jnp.dot(x_ref[...], w_ref[...],
                            preferred_element_type=jnp.float32)

    @pl.when(k == pl.num_programs(1) - 1)
    def _():
        y = acc_ref[...] + b_ref[...] + r_ref[...].astype(jnp.float32)
        mean = jnp.mean(y, axis=-1, keepdims=True)
        var = jnp.mean((y - mean) ** 2, axis=-1, keepdims=True)
        o_ref[...] = ((y - mean) * jax.lax.rsqrt(var + 1e-5) * g_ref[...]
                      + bb_ref[...]).astype(o_ref.dtype)


# ---------------------------------------------------------------------------
# Flash-style attention kernel (online softmax over K tiles, heads in-kernel)
# ---------------------------------------------------------------------------

def _make_attention_kernel(num_heads, dk, scale, causal, k_off, v_off, tq, tk):
    def kernel(q_ref, kv_ref, valid_ref, o_ref, m_sc, l_sc, acc_sc):
        qi = pl.program_id(1)
        ki = pl.program_id(2)

        @pl.when(ki == 0)
        def _():
            m_sc[...] = jnp.full_like(m_sc, -1e30)
            l_sc[...] = jnp.zeros_like(l_sc)
            acc_sc[...] = jnp.zeros_like(acc_sc)

        # Mask bias built in-kernel (VPU filler under the MXU matmuls).
        if causal:
            # decoder self-attention: query-validity row mask AND no-peek causal mask
            vq = valid_ref[0]                                          # (tq, 1) f32
            q_pos = qi * tq + jax.lax.broadcasted_iota(jnp.int32, (tq, tk), 0)
            k_pos = ki * tk + jax.lax.broadcasted_iota(jnp.int32, (tq, tk), 1)
            allowed = (k_pos <= q_pos) & (vq > 0.5)
            bias = jnp.where(allowed, 0.0, -1e9).astype(jnp.float32)   # (tq, tk)
        else:
            # encoder self-attention / cross-attention: key-validity mask
            vk = valid_ref[0]                                          # (1, tk) f32
            bias = jnp.where(vk > 0.5, 0.0, -1e9).astype(jnp.float32)  # (1, tk)

        for h in range(num_heads):
            q_h = q_ref[0, :, h * dk:(h + 1) * dk]                        # (tq, dk) bf16
            k_h = kv_ref[0, :, k_off + h * dk:k_off + (h + 1) * dk]       # (tk, dk) bf16
            v_h = kv_ref[0, :, v_off + h * dk:v_off + (h + 1) * dk]       # (tk, dk) bf16
            s = jax.lax.dot_general(q_h, k_h, (((1,), (1,)), ((), ())),
                                    preferred_element_type=jnp.float32)
            s = s * scale + bias                                          # (tq, tk)
            m_prev = m_sc[h]
            m_new = jnp.maximum(m_prev, jnp.max(s, axis=-1, keepdims=True))
            alpha = jnp.exp(m_prev - m_new)
            p = jnp.exp(s - m_new)
            l_sc[h] = alpha * l_sc[h] + jnp.sum(p, axis=-1, keepdims=True)
            acc_sc[h] = alpha * acc_sc[h] + jnp.dot(
                p.astype(v_h.dtype), v_h, preferred_element_type=jnp.float32)
            m_sc[h] = m_new

        @pl.when(ki == pl.num_programs(2) - 1)
        def _():
            for h in range(num_heads):
                o_ref[0, :, h * dk:(h + 1) * dk] = (
                    acc_sc[h] * pl.reciprocal(l_sc[h], approx=True)
                ).astype(o_ref.dtype)

    return kernel


# ---------------------------------------------------------------------------
# Pallas-call wrappers
# ---------------------------------------------------------------------------

def _round_up(x, m):
    return -(-x // m) * m


def _seq_tile(s, candidates):
    for t in candidates:
        if s >= t and s % t == 0:
            return t
    return s


def pallas_linear(x2d, w, b, activation=None, out_dtype=jnp.bfloat16,
                  tm=512, tn=512, tk=1024):
    """x2d: (M, K) bf16, w: (K, N) bf16, b: (N,) -> (M, N) in out_dtype (f32 acc)."""
    x2d = x2d.astype(jnp.bfloat16)
    w = w.astype(jnp.bfloat16)
    M, K = x2d.shape
    K2, N = w.shape
    assert K == K2

    bm = M if M <= tm else tm
    bn = N if N <= tn else tn
    bk = K if K <= tk else tk
    Mp, Kp, Np = _round_up(M, bm), _round_up(K, bk), _round_up(N, bn)

    # Padding only triggers for shapes that are not tile multiples (never on the
    # demo shapes; weights are pre-shaped at init so they never hit this path).
    if (Mp, Kp) != (M, K):
        x2d = jnp.pad(x2d, ((0, Mp - M), (0, Kp - K)))
    if (Kp, Np) != (K, N):
        w = jnp.pad(w, ((0, Kp - K), (0, Np - N)))
    b2 = b.reshape(1, N).astype(jnp.float32)
    if Np != N:
        b2 = jnp.pad(b2, ((0, 0), (0, Np - N)))

    out = pl.pallas_call(
        _make_linear_kernel(activation),
        out_shape=jax.ShapeDtypeStruct((Mp, Np), out_dtype),
        grid=(Mp // bm, Np // bn, Kp // bk),
        in_specs=[
            pl.BlockSpec((bm, bk), lambda i, j, k: (i, k)),
            pl.BlockSpec((bk, bn), lambda i, j, k: (k, j)),
            pl.BlockSpec((1, bn), lambda i, j, k: (0, j)),
        ],
        out_specs=pl.BlockSpec((bm, bn), lambda i, j, k: (i, j)),
        scratch_shapes=[pltpu.VMEM((bm, bn), jnp.float32)],
        compiler_params=pltpu.CompilerParams(
            dimension_semantics=("parallel", "parallel", "arbitrary")),
    )(x2d, w, b2)

    if (Mp, Np) != (M, N):
        out = out[:M, :N]
    return out


def pallas_linear_add_ln(x2d, w, b, res2d, gamma, beta,
                         out_dtype=jnp.bfloat16, tm=512, tk=1024):
    """LayerNorm(x2d @ w + b + res2d).  N (= d_model) must fit a single lane block."""
    x2d = x2d.astype(jnp.bfloat16)
    w = w.astype(jnp.bfloat16)
    res2d = res2d.astype(jnp.bfloat16)
    M, K = x2d.shape
    K2, N = w.shape
    assert K == K2 and N <= 4096

    bm = M if M <= tm else tm
    bk = K if K <= tk else tk
    Mp, Kp = _round_up(M, bm), _round_up(K, bk)
    if (Mp, Kp) != (M, K):
        x2d = jnp.pad(x2d, ((0, Mp - M), (0, Kp - K)))
    if Mp != M:
        res2d = jnp.pad(res2d, ((0, Mp - M), (0, 0)))
    if Kp != K:
        w = jnp.pad(w, ((0, Kp - K), (0, 0)))
    b2 = b.reshape(1, N).astype(jnp.float32)
    g2 = gamma.reshape(1, N).astype(jnp.float32)
    bt2 = beta.reshape(1, N).astype(jnp.float32)

    out = pl.pallas_call(
        _linear_add_ln_kernel,
        out_shape=jax.ShapeDtypeStruct((Mp, N), out_dtype),
        grid=(Mp // bm, Kp // bk),
        in_specs=[
            pl.BlockSpec((bm, bk), lambda i, k: (i, k)),
            pl.BlockSpec((bk, N), lambda i, k: (k, 0)),
            pl.BlockSpec((1, N), lambda i, k: (0, 0)),
            pl.BlockSpec((bm, N), lambda i, k: (i, 0)),   # residual, resident across k
            pl.BlockSpec((1, N), lambda i, k: (0, 0)),
            pl.BlockSpec((1, N), lambda i, k: (0, 0)),
        ],
        out_specs=pl.BlockSpec((bm, N), lambda i, k: (i, 0)),
        scratch_shapes=[pltpu.VMEM((bm, N), jnp.float32)],
        compiler_params=pltpu.CompilerParams(
            dimension_semantics=("parallel", "arbitrary")),
    )(x2d, w, b2, res2d, g2, bt2)

    if Mp != M:
        out = out[:M]
    return out


def pallas_attention(q_arr, kv_arr, valid, *, num_heads, d_model, causal, k_off):
    """q_arr: (B, Sq, Wq) bf16 with Q at lanes [0:D].
    kv_arr: (B, Sk, Wkv) bf16 with K at [k_off:k_off+D], V at [k_off+D:k_off+2D].
    valid:  causal -> (B, Sq, 1) query validity ; else (B, 1, Sk) key validity (f32 0/1).
    Returns (B, Sq, D) bf16, lane-dense (no head transpose needed)."""
    B, Sq, Wq = q_arr.shape
    _, Sk, Wkv = kv_arr.shape
    dk = d_model // num_heads
    scale = 1.0 / math.sqrt(dk)

    tq = _seq_tile(Sq, (128,))
    tk = _seq_tile(Sk, (256, 128))
    nq, nk = Sq // tq, Sk // tk

    if causal:
        valid_spec = pl.BlockSpec((1, tq, 1), lambda b, qi, ki: (b, qi, 0))
    else:
        valid_spec = pl.BlockSpec((1, 1, tk), lambda b, qi, ki: (b, 0, ki))

    kernel = _make_attention_kernel(num_heads, dk, scale, causal,
                                    k_off, k_off + d_model, tq, tk)
    return pl.pallas_call(
        kernel,
        out_shape=jax.ShapeDtypeStruct((B, Sq, d_model), jnp.bfloat16),
        grid=(B, nq, nk),
        in_specs=[
            pl.BlockSpec((1, tq, Wq), lambda b, qi, ki: (b, qi, 0)),
            pl.BlockSpec((1, tk, Wkv), lambda b, qi, ki: (b, ki, 0)),
            valid_spec,
        ],
        out_specs=pl.BlockSpec((1, tq, d_model), lambda b, qi, ki: (b, qi, 0)),
        scratch_shapes=[
            pltpu.VMEM((num_heads, tq, 1), jnp.float32),    # running max m
            pltpu.VMEM((num_heads, tq, 1), jnp.float32),    # running denom l
            pltpu.VMEM((num_heads, tq, dk), jnp.float32),   # running accumulator
        ],
        compiler_params=pltpu.CompilerParams(
            dimension_semantics=("parallel", "parallel", "arbitrary")),
    )(q_arr, kv_arr, valid)


# ---------------------------------------------------------------------------
# Model pieces (thin glue around the kernels)
# ---------------------------------------------------------------------------

def encoder_layer(x, p, src_valid_k, num_heads):
    B, S, D = x.shape
    x2d = x.reshape(B * S, D)
    qkv = pallas_linear(x2d, p["sa_w_qkv"], p["sa_b_qkv"],
                        out_dtype=jnp.bfloat16).reshape(B, S, 3 * D)
    attn = pallas_attention(qkv, qkv, src_valid_k, num_heads=num_heads,
                            d_model=D, causal=False, k_off=D)
    x2d = pallas_linear_add_ln(attn.reshape(B * S, D), p["sa_wo"], p["sa_bo"],
                               x2d, p["norm1_g"], p["norm1_b"])
    h = pallas_linear(x2d, p["ff_w1"], p["ff_b1"], activation="relu",
                      out_dtype=jnp.bfloat16)
    x2d = pallas_linear_add_ln(h, p["ff_w2"], p["ff_b2"],
                               x2d, p["norm2_g"], p["norm2_b"])
    return x2d.reshape(B, S, D)


def decoder_layer(x, enc, p, src_valid_k, tgt_valid_q, num_heads):
    B, St, D = x.shape
    Ss = enc.shape[1]
    x2d = x.reshape(B * St, D)
    # masked (causal) self-attention
    qkv = pallas_linear(x2d, p["sa_w_qkv"], p["sa_b_qkv"],
                        out_dtype=jnp.bfloat16).reshape(B, St, 3 * D)
    sa = pallas_attention(qkv, qkv, tgt_valid_q, num_heads=num_heads,
                          d_model=D, causal=True, k_off=D)
    x2d = pallas_linear_add_ln(sa.reshape(B * St, D), p["sa_wo"], p["sa_bo"],
                               x2d, p["norm1_g"], p["norm1_b"])
    # cross-attention: Q from decoder stream, fused KV from encoder output
    q = pallas_linear(x2d, p["ca_wq"], p["ca_bq"],
                      out_dtype=jnp.bfloat16).reshape(B, St, D)
    kv = pallas_linear(enc.reshape(B * Ss, D), p["ca_w_kv"], p["ca_b_kv"],
                       out_dtype=jnp.bfloat16).reshape(B, Ss, 2 * D)
    ca = pallas_attention(q, kv, src_valid_k, num_heads=num_heads,
                          d_model=D, causal=False, k_off=0)
    x2d = pallas_linear_add_ln(ca.reshape(B * St, D), p["ca_wo"], p["ca_bo"],
                               x2d, p["norm2_g"], p["norm2_b"])
    # feed-forward
    h = pallas_linear(x2d, p["ff_w1"], p["ff_b1"], activation="relu",
                      out_dtype=jnp.bfloat16)
    x2d = pallas_linear_add_ln(h, p["ff_w2"], p["ff_b2"],
                               x2d, p["norm3_g"], p["norm3_b"])
    return x2d.reshape(B, St, D)


def positional_encoding_table(max_len, d_model):
    position = jnp.arange(max_len, dtype=jnp.float32)[:, None]
    div_term = jnp.exp(
        jnp.arange(0, d_model, 2, dtype=jnp.float32) * (-math.log(10000.0) / d_model)
    )
    pe = jnp.zeros((max_len, d_model), dtype=jnp.float32)
    pe = pe.at[:, 0::2].set(jnp.sin(position * div_term))
    pe = pe.at[:, 1::2].set(jnp.cos(position * div_term))
    return pe


def transformer_forward(params, src, tgt, num_heads):
    B, Ss = src.shape
    St = tgt.shape[1]
    D = params["pe"].shape[1]

    # Validity vectors; the (Sq,Sk) mask biases are built inside the attention kernel.
    # Matches Transformer.generate_mask: src_mask masks keys; tgt_mask masks query rows
    # and applies the causal no-peek mask.
    src_valid_k = (src != 0).astype(jnp.float32).reshape(B, 1, Ss)
    tgt_valid_q = (tgt != 0).astype(jnp.float32).reshape(B, St, 1)

    pe = params["pe"]
    # embedding gather + positional encoding (XLA glue); dropout = identity (eval).
    # TODO(synk): training-mode dropout not implemented (eval-mode identity).
    src_emb = (jnp.take(params["enc_emb"], src, axis=0) + pe[None, :Ss]).astype(jnp.bfloat16)
    tgt_emb = (jnp.take(params["dec_emb"], tgt, axis=0) + pe[None, :St]).astype(jnp.bfloat16)

    enc = src_emb
    for lp in params["encoder_layers"]:
        enc = encoder_layer(enc, lp, src_valid_k, num_heads)

    dec = tgt_emb
    for lp in params["decoder_layers"]:
        dec = decoder_layer(dec, enc, lp, src_valid_k, tgt_valid_q, num_heads)

    logits = pallas_linear(dec.reshape(B * St, D), params["fc_w"], params["fc_b"],
                           out_dtype=jnp.float32)
    return logits.reshape(B, St, -1)


# ---------------------------------------------------------------------------
# Deterministic parameter init (synthetic; shapes from the nn.Module __init__).
# Weights stored in bf16 (MXU-native); QKV / KV weights pre-concatenated at init.
# ---------------------------------------------------------------------------

def _init_linear(key, fan_in, fan_out):
    k1, k2 = jax.random.split(key)
    bound = 1.0 / math.sqrt(fan_in)
    w = jax.random.uniform(k1, (fan_in, fan_out), jnp.float32, -bound, bound)
    b = jax.random.uniform(k2, (fan_out,), jnp.float32, -bound, bound)
    return w, b


def _init_self_attn(key, d_model):
    ks = jax.random.split(key, 4)
    wq, bq = _init_linear(ks[0], d_model, d_model)
    wk, bk = _init_linear(ks[1], d_model, d_model)
    wv, bv = _init_linear(ks[2], d_model, d_model)
    wo, bo = _init_linear(ks[3], d_model, d_model)
    return dict(
        sa_w_qkv=jnp.concatenate([wq, wk, wv], axis=1).astype(jnp.bfloat16),
        sa_b_qkv=jnp.concatenate([bq, bk, bv], axis=0),
        sa_wo=wo.astype(jnp.bfloat16), sa_bo=bo)


def _init_cross_attn(key, d_model):
    ks = jax.random.split(key, 4)
    wq, bq = _init_linear(ks[0], d_model, d_model)
    wk, bk = _init_linear(ks[1], d_model, d_model)
    wv, bv = _init_linear(ks[2], d_model, d_model)
    wo, bo = _init_linear(ks[3], d_model, d_model)
    return dict(
        ca_wq=wq.astype(jnp.bfloat16), ca_bq=bq,
        ca_w_kv=jnp.concatenate([wk, wv], axis=1).astype(jnp.bfloat16),
        ca_b_kv=jnp.concatenate([bk, bv], axis=0),
        ca_wo=wo.astype(jnp.bfloat16), ca_bo=bo)


def _init_ff(key, d_model, d_ff):
    k1, k2 = jax.random.split(key)
    w1, b1 = _init_linear(k1, d_model, d_ff)
    w2, b2 = _init_linear(k2, d_ff, d_model)
    return dict(ff_w1=w1.astype(jnp.bfloat16), ff_b1=b1,
                ff_w2=w2.astype(jnp.bfloat16), ff_b2=b2)


def init_params(key, src_vocab, tgt_vocab, d_model, num_layers, d_ff, max_seq_length):
    keys = jax.random.split(key, 3 + 2 * num_layers)
    fc_w, fc_b = _init_linear(keys[2], d_model, tgt_vocab)
    params = {
        "enc_emb": jax.random.normal(keys[0], (src_vocab, d_model), jnp.float32),
        "dec_emb": jax.random.normal(keys[1], (tgt_vocab, d_model), jnp.float32),
        "pe": positional_encoding_table(max_seq_length, d_model),
        "fc_w": fc_w.astype(jnp.bfloat16), "fc_b": fc_b,
        "encoder_layers": [],
        "decoder_layers": [],
    }
    for i in range(num_layers):
        ks = jax.random.split(keys[3 + i], 2)
        layer = dict()
        layer.update(_init_self_attn(ks[0], d_model))
        layer.update(_init_ff(ks[1], d_model, d_ff))
        for n in ("norm1", "norm2"):
            layer[n + "_g"] = jnp.ones((d_model,), jnp.float32)
            layer[n + "_b"] = jnp.zeros((d_model,), jnp.float32)
        params["encoder_layers"].append(layer)
    for i in range(num_layers):
        ks = jax.random.split(keys[3 + num_layers + i], 3)
        layer = dict()
        layer.update(_init_self_attn(ks[0], d_model))
        layer.update(_init_cross_attn(ks[1], d_model))
        layer.update(_init_ff(ks[2], d_model, d_ff))
        for n in ("norm1", "norm2", "norm3"):
            layer[n + "_g"] = jnp.ones((d_model,), jnp.float32)
            layer[n + "_b"] = jnp.zeros((d_model,), jnp.float32)
        params["decoder_layers"].append(layer)
    return params


# ---------------------------------------------------------------------------

if __name__ == "__main__":
    # small config
    src_vocab_size = 32
    tgt_vocab_size = 32
    d_model = 32
    num_heads = 4
    num_layers = 2
    d_ff = 64
    max_seq_length = 16
    # dropout = 0.0 (eval-mode identity)

    batch = 2
    seq = 8

    key = jax.random.PRNGKey(0)
    kp, ks, kt = jax.random.split(key, 3)
    params = init_params(kp, src_vocab_size, tgt_vocab_size, d_model,
                         num_layers, d_ff, max_seq_length)

    # token ids in [1, vocab) so pad-id 0 never appears (mask logic stays generic)
    src = jax.random.randint(ks, (batch, seq), 1, src_vocab_size, dtype=jnp.int32)
    tgt = jax.random.randint(kt, (batch, seq), 1, tgt_vocab_size, dtype=jnp.int32)

    fwd = jax.jit(lambda s, t: transformer_forward(params, s, t, num_heads))
    logits = fwd(src, tgt)
    jax.block_until_ready(logits)

    assert logits.shape == (batch, seq, tgt_vocab_size)
    assert bool(jnp.all(jnp.isfinite(logits)))
    print("KERNEL_OK")
</pallas_src>

<mosaic_0001>
module attributes {stable_mosaic.version = 11 : i64} {
  func.func @kernel(%arg0: i32, %arg1: i32, %arg2: i32, %arg3: memref<16x32xbf16, #tpu.memory_space<vmem>>, %arg4: memref<32x64xbf16, #tpu.memory_space<vmem>>, %arg5: memref<1x64xf32, #tpu.memory_space<vmem>>, %arg6: memref<16x64xbf16, #tpu.memory_space<vmem>>, %arg7: memref<16x64xf32, #tpu.memory_space<vmem>>) attributes {dimension_semantics = [#tpu.dimension_semantics<parallel>, #tpu.dimension_semantics<parallel>, #tpu.dimension_semantics<arbitrary>], iteration_bounds = array<i64: 1, 1, 1>, scalar_prefetch = 0 : i64, scratch_operands = 1 : i64, tpu.core_type = #tpu.core_type<tc>, window_params = [{transform_indices = @transform_0, window_bounds = array<i64: 16, 32>}, {transform_indices = @transform_1, window_bounds = array<i64: 32, 64>}, {transform_indices = @transform_2, window_bounds = array<i64: 1, 64>}, {transform_indices = @transform_3, window_bounds = array<i64: 16, 64>}]} {
    %c0_i32 = arith.constant 0 : i32
    %0 = arith.cmpi eq, %arg2, %c0_i32 : i32
    %1 = arith.extui %0 : i1 to i32
    %c0_i32_0 = arith.constant 0 : i32
    %2 = arith.cmpi ne, %1, %c0_i32_0 : i32
    scf.if %2 {
      %cst_10 = arith.constant 0.000000e+00 : f32
      %12 = vector.broadcast %cst_10 : f32 to vector<16x64xf32>
      %c0_11 = arith.constant 0 : index
      %c0_12 = arith.constant 0 : index
      %13 = vector.load %arg7[%c0_11, %c0_12] : memref<16x64xf32, #tpu.memory_space<vmem>>, vector<16x64xf32>
      tpu.vector_store %arg7[%c0_11, %c0_12], %12 {strides = array<i32>} : memref<16x64xf32, #tpu.memory_space<vmem>>, vector<16x64xf32>,
    } else {
    }
    %c0 = arith.constant 0 : index
    %c0_1 = arith.constant 0 : index
    %3 = vector.load %arg7[%c0, %c0_1] : memref<16x64xf32, #tpu.memory_space<vmem>>, vector<16x64xf32>
    %c0_2 = arith.constant 0 : index
    %c0_3 = arith.constant 0 : index
    %4 = vector.load %arg3[%c0_2, %c0_3] : memref<16x32xbf16, #tpu.memory_space<vmem>>, vector<16x32xbf16>
    %c0_4 = arith.constant 0 : index
    %c0_5 = arith.constant 0 : index
    %5 = vector.load %arg4[%c0_4, %c0_5] : memref<32x64xbf16, #tpu.memory_space<vmem>>, vector<32x64xbf16>
    %cst = arith.constant dense<0.000000e+00> : vector<16x64xf32>
    %6 = tpu.matmul %4, %5, %cst {dimension_numbers = #tpu.dot_dimension_numbers<[1], [0], [0], [1], [0, 0, 1, 1], [], []>} : vector<16x32xbf16>, vector<32x64xbf16>, vector<16x64xf32> -> vector<16x64xf32>
    %7 = arith.addf %3, %6 : vector<16x64xf32>
    %c0_6 = arith.constant 0 : index
    %c0_7 = arith.constant 0 : index
    %8 = vector.load %arg7[%c0_6, %c0_7] : memref<16x64xf32, #tpu.memory_space<vmem>>, vector<16x64xf32>
    tpu.vector_store %arg7[%c0_6, %c0_7], %7 {strides = array<i32>} : memref<16x64xf32, #tpu.memory_space<vmem>>, vector<16x64xf32>,
    %c0_i32_8 = arith.constant 0 : i32
    %9 = arith.cmpi eq, %arg2, %c0_i32_8 : i32
    %10 = arith.extui %9 : i1 to i32
    %c0_i32_9 = arith.constant 0 : i32
    %11 = arith.cmpi ne, %10, %c0_i32_9 : i32
    scf.if %11 {
      %c0_10 = arith.constant 0 : index
      %c0_11 = arith.constant 0 : index
      %12 = vector.load %arg7[%c0_10, %c0_11] : memref<16x64xf32, #tpu.memory_space<vmem>>, vector<16x64xf32>
      %c0_12 = arith.constant 0 : index
      %c0_13 = arith.constant 0 : index
      %13 = vector.load %arg5[%c0_12, %c0_13] : memref<1x64xf32, #tpu.memory_space<vmem>>, vector<1x64xf32>
      %14 = vector.broadcast %13 : vector<1x64xf32> to vector<16x64xf32>
      %15 = arith.addf %12, %14 : vector<16x64xf32>
      %cst_14 = arith.constant 0.000000e+00 : f32
      %16 = vector.broadcast %cst_14 : f32 to vector<16x64xf32>
      %17 = arith.maximumf %15, %16 : vector<16x64xf32>
      %18 = arith.truncf %17 : vector<16x64xf32> to vector<16x64xbf16>
      %c0_15 = arith.constant 0 : index
      %c0_16 = arith.constant 0 : index
      %19 = vector.load %arg6[%c0_15, %c0_16] : memref<16x64xbf16, #tpu.memory_space<vmem>>, vector<16x64xbf16>
      tpu.vector_store %arg6[%c0_15, %c0_16], %18 {strides = array<i32>} : memref<16x64xbf16, #tpu.memory_space<vmem>>, vector<16x64xbf16>,
    } else {
    }
    return
  }
  func.func @transform_0(%arg0: i32, %arg1: i32, %arg2: i32) -> (i32, i32) {
    %c0_i32 = arith.constant 0 : i32
    return %arg0, %arg2 : i32, i32
  }
  func.func @transform_1(%arg0: i32, %arg1: i32, %arg2: i32) -> (i32, i32) {
    %c0_i32 = arith.constant 0 : i32
    return %arg2, %arg1 : i32, i32
  }
  func.func @transform_2(%arg0: i32, %arg1: i32, %arg2: i32) -> (i32, i32) {
    %c0_i32 = arith.constant 0 : i32
    %c0_i32_0 = arith.constant 0 : i32
    return %c0_i32, %arg1 : i32, i32
  }
  func.func @transform_3(%arg0: i32, %arg1: i32, %arg2: i32) -> (i32, i32) {
    %c0_i32 = arith.constant 0 : i32
    return %arg0, %arg1 : i32, i32
  }
}

module attributes {stable_mosaic.version = 11 : i64} {
  func.func @_linear_add_ln_kernel(%arg0: i32, %arg1: i32, %arg2: memref<16x32xbf16, #tpu.memory_space<vmem>>, %arg3: memref<32x32xbf16, #tpu.memory_space<vmem>>, %arg4: memref<1x32xf32, #tpu.memory_space<vmem>>, %arg5: memref<16x32xbf16, #tpu.memory_space<vmem>>, %arg6: memref<1x32xf32, #tpu.memory_space<vmem>>, %arg7: memref<1x32xf32, #tpu.memory_space<vmem>>, %arg8: memref<16x32xbf16, #tpu.memory_space<vmem>>, %arg9: memref<16x32xf32, #tpu.memory_space<vmem>>) attributes {dimension_semantics = [#tpu.dimension_semantics<parallel>, #tpu.dimension_semantics<arbitrary>], iteration_bounds = array<i64: 1, 1>, scalar_prefetch = 0 : i64, scratch_operands = 1 : i64, tpu.core_type = #tpu.core_type<tc>, window_params = [{transform_indices = @transform_0, window_bounds = array<i64: 16, 32>}, {transform_indices = @transform_1, window_bounds = array<i64: 32, 32>}, {pipeline_mode = #tpu.pipeline_mode<synchronous>, transform_indices = @transform_2, window_bounds = array<i64: 1, 32>}, {transform_indices = @transform_3, window_bounds = array<i64: 16, 32>}, {pipeline_mode = #tpu.pipeline_mode<synchronous>, transform_indices = @transform_4, window_bounds = array<i64: 1, 32>}, {pipeline_mode = #tpu.pipeline_mode<synchronous>, transform_indices = @transform_5, window_bounds = array<i64: 1, 32>}, {transform_indices = @transform_6, window_bounds = array<i64: 16, 32>}]} {
    %c0_i32 = arith.constant 0 : i32
    %0 = arith.cmpi eq, %arg1, %c0_i32 : i32
    %1 = arith.extui %0 : i1 to i32
    %c0_i32_0 = arith.constant 0 : i32
    %2 = arith.cmpi ne, %1, %c0_i32_0 : i32
    scf.if %2 {
      %cst_10 = arith.constant 0.000000e+00 : f32
      %12 = vector.broadcast %cst_10 : f32 to vector<16x32xf32>
      %c0_11 = arith.constant 0 : index
      %c0_12 = arith.constant 0 : index
      %13 = vector.load %arg9[%c0_11, %c0_12] : memref<16x32xf32, #tpu.memory_space<vmem>>, vector<16x32xf32>
      tpu.vector_store %arg9[%c0_11, %c0_12], %12 {strides = array<i32>} : memref<16x32xf32, #tpu.memory_space<vmem>>, vector<16x32xf32>,
    } else {
    }
    %c0 = arith.constant 0 : index
    %c0_1 = arith.constant 0 : index
    %3 = vector.load %arg9[%c0, %c0_1] : memref<16x32xf32, #tpu.memory_space<vmem>>, vector<16x32xf32>
    %c0_2 = arith.constant 0 : index
    %c0_3 = arith.constant 0 : index
    %4 = vector.load %arg2[%c0_2, %c0_3] : memref<16x32xbf16, #tpu.memory_space<vmem>>, vector<16x32xbf16>
    %c0_4 = arith.constant 0 : index
    %c0_5 = arith.constant 0 : index
    %5 = vector.load %arg3[%c0_4, %c0_5] : memref<32x32xbf16, #tpu.memory_space<vmem>>, vector<32x32xbf16>
    %cst = arith.constant dense<0.000000e+00> : vector<16x32xf32>
    %6 = tpu.matmul %4, %5, %cst {dimension_numbers = #tpu.dot_dimension_numbers<[1], [0], [0], [1], [0, 0, 1, 1], [], []>} : vector<16x32xbf16>, vector<32x32xbf16>, vector<16x32xf32> -> vector<16x32xf32>
    %7 = arith.addf %3, %6 : vector<16x32xf32>
    %c0_6 = arith.constant 0 : index
    %c0_7 = arith.constant 0 : index
    %8 = vector.load %arg9[%c0_6, %c0_7] : memref<16x32xf32, #tpu.memory_space<vmem>>, vector<16x32xf32>
    tpu.vector_store %arg9[%c0_6, %c0_7], %7 {strides = array<i32>} : memref<16x32xf32, #tpu.memory_space<vmem>>, vector<16x32xf32>,
    %c0_i32_8 = arith.constant 0 : i32
    %9 = arith.cmpi eq, %arg1, %c0_i32_8 : i32
    %10 = arith.extui %9 : i1 to i32
    %c0_i32_9 = arith.constant 0 : i32
    %11 = arith.cmpi ne, %10, %c0_i32_9 : i32
    scf.if %11 {
      %c0_10 = arith.constant 0 : index
      %c0_11 = arith.constant 0 : index
      %12 = vector.load %arg9[%c0_10, %c0_11] : memref<16x32xf32, #tpu.memory_space<vmem>>, vector<16x32xf32>
      %c0_12 = arith.constant 0 : index
      %c0_13 = arith.constant 0 : index
      %13 = vector.load %arg4[%c0_12, %c0_13] : memref<1x32xf32, #tpu.memory_space<vmem>>, vector<1x32xf32>
      %14 = vector.broadcast %13 : vector<1x32xf32> to vector<16x32xf32>
      %15 = arith.addf %12, %14 : vector<16x32xf32>
      %c0_14 = arith.constant 0 : index
      %c0_15 = arith.constant 0 : index
      %16 = vector.load %arg5[%c0_14, %c0_15] : memref<16x32xbf16, #tpu.memory_space<vmem>>, vector<16x32xbf16>
      %17 = arith.extf %16 : vector<16x32xbf16> to vector<16x32xf32>
      %18 = arith.addf %15, %17 : vector<16x32xf32>
      %cst_16 = arith.constant dense<0.000000e+00> : vector<16xf32>
      %19 = vector.multi_reduction <add>, %18, %cst_16 [1] : vector<16x32xf32> to vector<16xf32>
      %20 = vector.shape_cast %19 : vector<16xf32> to vector<16x1xf32>
      %cst_17 = arith.constant 3.200000e+01 : f32
      %21 = vector.broadcast %cst_17 : f32 to vector<16x1xf32>
      %22 = arith.divf %20, %21 : vector<16x1xf32>
      %23 = vector.broadcast %22 : vector<16x1xf32> to vector<16x32xf32>
      %24 = arith.subf %18, %23 : vector<16x32xf32>
      %25 = arith.mulf %24, %24 : vector<16x32xf32>
      %cst_18 = arith.constant dense<0.000000e+00> : vector<16xf32>
      %26 = vector.multi_reduction <add>, %25, %cst_18 [1] : vector<16x32xf32> to vector<16xf32>
      %27 = vector.shape_cast %26 : vector<16xf32> to vector<16x1xf32>
      %cst_19 = arith.constant 3.200000e+01 : f32
      %28 = vector.broadcast %cst_19 : f32 to vector<16x1xf32>
      %29 = arith.divf %27, %28 : vector<16x1xf32>
      %30 = vector.broadcast %22 : vector<16x1xf32> to vector<16x32xf32>
      %31 = arith.subf %18, %30 : vector<16x32xf32>
      %cst_20 = arith.constant 9.99999974E-6 : f32
      %32 = vector.broadcast %cst_20 : f32 to vector<16x1xf32>
      %33 = arith.addf %29, %32 : vector<16x1xf32>
      %34 = math.rsqrt %33 : vector<16x1xf32>
      %35 = vector.broadcast %34 : vector<16x1xf32> to vector<16x32xf32>
      %36 = arith.mulf %31, %35 : vector<16x32xf32>
      %c0_21 = arith.constant 0 : index
      %c0_22 = arith.constant 0 : index
      %37 = vector.load %arg6[%c0_21, %c0_22] : memref<1x32xf32, #tpu.memory_space<vmem>>, vector<1x32xf32>
      %38 = vector.broadcast %37 : vector<1x32xf32> to vector<16x32xf32>
      %39 = arith.mulf %36, %38 : vector<16x32xf32>
      %c0_23 = arith.constant 0 : index
      %c0_24 = arith.constant 0 : index
      %40 = vector.load %arg7[%c0_23, %c0_24] : memref<1x32xf32, #tpu.memory_space<vmem>>, vector<1x32xf32>
      %41 = vector.broadcast %40 : vector<1x32xf32> to vector<16x32xf32>
      %42 = arith.addf %39, %41 : vector<16x32xf32>
      %43 = arith.truncf %42 : vector<16x32xf32> to vector<16x32xbf16>
      %c0_25 = arith.constant 0 : index
      %c0_26 = arith.constant 0 : index
      %44 = vector.load %arg8[%c0_25, %c0_26] : memref<16x32xbf16, #tpu.memory_space<vmem>>, vector<16x32xbf16>
      tpu.vector_store %arg8[%c0_25, %c0_26], %43 {strides = array<i32>} : memref<16x32xbf16, #tpu.memory_space<vmem>>, vector<16x32xbf16>,
    } else {
    }
    return
  }
  func.func @transform_0(%arg0: i32, %arg1: i32) -> (i32, i32) {
    %c0_i32 = arith.constant 0 : i32
    return %arg0, %arg1 : i32, i32
  }
  func.func @transform_1(%arg0: i32, %arg1: i32) -> (i32, i32) {
    %c0_i32 = arith.constant 0 : i32
    %c0_i32_0 = arith.constant 0 : i32
    return %arg1, %c0_i32 : i32, i32
  }
  func.func @transform_2(%arg0: i32, %arg1: i32) -> (i32, i32) {
    %c0_i32 = arith.constant 0 : i32
    %c0_i32_0 = arith.constant 0 : i32
    %c0_i32_1 = arith.constant 0 : i32
    return %c0_i32, %c0_i32_0 : i32, i32
  }
  func.func @transform_3(%arg0: i32, %arg1: i32) -> (i32, i32) {
    %c0_i32 = arith.constant 0 : i32
    %c0_i32_0 = arith.constant 0 : i32
    return %arg0, %c0_i32 : i32, i32
  }
  func.func @transform_4(%arg0: i32, %arg1: i32) -> (i32, i32) {
    %c0_i32 = arith.constant 0 : i32
    %c0_i32_0 = arith.constant 0 : i32
    %c0_i32_1 = arith.constant 0 : i32
    return %c0_i32, %c0_i32_0 : i32, i32
  }
  func.func @transform_5(%arg0: i32, %arg1: i32) -> (i32, i32) {
    %c0_i32 = arith.constant 0 : i32
    %c0_i32_0 = arith.constant 0 : i32
    %c0_i32_1 = arith.constant 0 : i32
    return %c0_i32, %c0_i32_0 : i32, i32
  }
  func.func @transform_6(%arg0: i32, %arg1: i32) -> (i32, i32) {
    %c0_i32 = arith.constant 0 : i32
    %c0_i32_0 = arith.constant 0 : i32
    return %arg0, %c0_i32 : i32, i32
  }
}

module attributes {stable_mosaic.version = 11 : i64} {
  func.func @kernel(%arg0: i32, %arg1: i32, %arg2: i32, %arg3: memref<16x32xbf16, #tpu.memory_space<vmem>>, %arg4: memref<32x96xbf16, #tpu.memory_space<vmem>>, %arg5: memref<1x96xf32, #tpu.memory_space<vmem>>, %arg6: memref<16x96xbf16, #tpu.memory_space<vmem>>, %arg7: memref<16x96xf32, #tpu.memory_space<vmem>>) attributes {dimension_semantics = [#tpu.dimension_semantics<parallel>, #tpu.dimension_semantics<parallel>, #tpu.dimension_semantics<arbitrary>], iteration_bounds = array<i64: 1, 1, 1>, scalar_prefetch = 0 : i64, scratch_operands = 1 : i64, tpu.core_type = #tpu.core_type<tc>, window_params = [{transform_indices = @transform_0, window_bounds = array<i64: 16, 32>}, {transform_indices = @transform_1, window_bounds = array<i64: 32, 96>}, {transform_indices = @transform_2, window_bounds = array<i64: 1, 96>}, {transform_indices = @transform_3, window_bounds = array<i64: 16, 96>}]} {
    %c0_i32 = arith.constant 0 : i32
    %0 = arith.cmpi eq, %arg2, %c0_i32 : i32
    %1 = arith.extui %0 : i1 to i32
    %c0_i32_0 = arith.constant 0 : i32
    %2 = arith.cmpi ne, %1, %c0_i32_0 : i32
    scf.if %2 {
      %cst_10 = arith.constant 0.000000e+00 : f32
      %12 = vector.broadcast %cst_10 : f32 to vector<16x96xf32>
      %c0_11 = arith.constant 0 : index
      %c0_12 = arith.constant 0 : index
      %13 = vector.load %arg7[%c0_11, %c0_12] : memref<16x96xf32, #tpu.memory_space<vmem>>, vector<16x96xf32>
      tpu.vector_store %arg7[%c0_11, %c0_12], %12 {strides = array<i32>} : memref<16x96xf32, #tpu.memory_space<vmem>>, vector<16x96xf32>,
    } else {
    }
    %c0 = arith.constant 0 : index
    %c0_1 = arith.constant 0 : index
    %3 = vector.load %arg7[%c0, %c0_1] : memref<16x96xf32, #tpu.memory_space<vmem>>, vector<16x96xf32>
    %c0_2 = arith.constant 0 : index
    %c0_3 = arith.constant 0 : index
    %4 = vector.load %arg3[%c0_2, %c0_3] : memref<16x32xbf16, #tpu.memory_space<vmem>>, vector<16x32xbf16>
    %c0_4 = arith.constant 0 : index
    %c0_5 = arith.constant 0 : index
    %5 = vector.load %arg4[%c0_4, %c0_5] : memref<32x96xbf16, #tpu.memory_space<vmem>>, vector<32x96xbf16>
    %cst = arith.constant dense<0.000000e+00> : vector<16x96xf32>
    %6 = tpu.matmul %4, %5, %cst {dimension_numbers = #tpu.dot_dimension_numbers<[1], [0], [0], [1], [0, 0, 1, 1], [], []>} : vector<16x32xbf16>, vector<32x96xbf16>, vector<16x96xf32> -> vector<16x96xf32>
    %7 = arith.addf %3, %6 : vector<16x96xf32>
    %c0_6 = arith.constant 0 : index
    %c0_7 = arith.constant 0 : index
    %8 = vector.load %arg7[%c0_6, %c0_7] : memref<16x96xf32, #tpu.memory_space<vmem>>, vector<16x96xf32>
    tpu.vector_store %arg7[%c0_6, %c0_7], %7 {strides = array<i32>} : memref<16x96xf32, #tpu.memory_space<vmem>>, vector<16x96xf32>,
    %c0_i32_8 = arith.constant 0 : i32
    %9 = arith.cmpi eq, %arg2, %c0_i32_8 : i32
    %10 = arith.extui %9 : i1 to i32
    %c0_i32_9 = arith.constant 0 : i32
    %11 = arith.cmpi ne, %10, %c0_i32_9 : i32
    scf.if %11 {
      %c0_10 = arith.constant 0 : index
      %c0_11 = arith.constant 0 : index
      %12 = vector.load %arg7[%c0_10, %c0_11] : memref<16x96xf32, #tpu.memory_space<vmem>>, vector<16x96xf32>
      %c0_12 = arith.constant 0 : index
      %c0_13 = arith.constant 0 : index
      %13 = vector.load %arg5[%c0_12, %c0_13] : memref<1x96xf32, #tpu.memory_space<vmem>>, vector<1x96xf32>
      %14 = vector.broadcast %13 : vector<1x96xf32> to vector<16x96xf32>
      %15 = arith.addf %12, %14 : vector<16x96xf32>
      %16 = arith.truncf %15 : vector<16x96xf32> to vector<16x96xbf16>
      %c0_14 = arith.constant 0 : index
      %c0_15 = arith.constant 0 : index
      %17 = vector.load %arg6[%c0_14, %c0_15] : memref<16x96xbf16, #tpu.memory_space<vmem>>, vector<16x96xbf16>
      tpu.vector_store %arg6[%c0_14, %c0_15], %16 {strides = array<i32>} : memref<16x96xbf16, #tpu.memory_space<vmem>>, vector<16x96xbf16>,
    } else {
    }
    return
  }
  func.func @transform_0(%arg0: i32, %arg1: i32, %arg2: i32) -> (i32, i32) {
    %c0_i32 = arith.constant 0 : i32
    return %arg0, %arg2 : i32, i32
  }
  func.func @transform_1(%arg0: i32, %arg1: i32, %arg2: i32) -> (i32, i32) {
    %c0_i32 = arith.constant 0 : i32
    return %arg2, %arg1 : i32, i32
  }
  func.func @transform_2(%arg0: i32, %arg1: i32, %arg2: i32) -> (i32, i32) {
    %c0_i32 = arith.constant 0 : i32
    %c0_i32_0 = arith.constant 0 : i32
    return %c0_i32, %arg1 : i32, i32
  }
  func.func @transform_3(%arg0: i32, %arg1: i32, %arg2: i32) -> (i32, i32) {
    %c0_i32 = arith.constant 0 : i32
    return %arg0, %arg1 : i32, i32
  }
}

module attributes {stable_mosaic.version = 11 : i64} {
  func.func @kernel(%arg0: i32, %arg1: i32, %arg2: i32, %arg3: memref<1x8x96xbf16, #tpu.memory_space<vmem>>, %arg4: memref<1x8x96xbf16, #tpu.memory_space<vmem>>, %arg5: memref<1x1x8xf32, #tpu.memory_space<vmem>>, %arg6: memref<1x8x32xbf16, #tpu.memory_space<vmem>>, %arg7: memref<4x8x1xf32, #tpu.memory_space<vmem>>, %arg8: memref<4x8x1xf32, #tpu.memory_space<vmem>>, %arg9: memref<4x8x8xf32, #tpu.memory_space<vmem>>) attributes {dimension_semantics = [#tpu.dimension_semantics<parallel>, #tpu.dimension_semantics<parallel>, #tpu.dimension_semantics<arbitrary>], iteration_bounds = array<i64: 2, 1, 1>, scalar_prefetch = 0 : i64, scratch_operands = 3 : i64, tpu.core_type = #tpu.core_type<tc>, window_params = [{transform_indices = @transform_0, window_bounds = array<i64: 1, 8, 96>}, {transform_indices = @transform_1, window_bounds = array<i64: 1, 8, 96>}, {transform_indices = @transform_2, window_bounds = array<i64: 1, 1, 8>}, {transform_indices = @transform_3, window_bounds = array<i64: 1, 8, 32>}]} {
    %c0_i32 = arith.constant 0 : i32
    %0 = arith.cmpi eq, %arg2, %c0_i32 : i32
    %1 = arith.extui %0 : i1 to i32
    %c0_i32_0 = arith.constant 0 : i32
    %2 = arith.cmpi ne, %1, %c0_i32_0 : i32
    scf.if %2 {
      %cst_121 = arith.constant -1.000000e+30 : f32
      %185 = vector.broadcast %cst_121 : f32 to vector<4x8x1xf32>
      %c0_122 = arith.constant 0 : index
      %c0_123 = arith.constant 0 : index
      %c0_124 = arith.constant 0 : index
      %186 = vector.load %arg7[%c0_122, %c0_123, %c0_124] : memref<4x8x1xf32, #tpu.memory_space<vmem>>, vector<4x8x1xf32>
      tpu.vector_store %arg7[%c0_122, %c0_123, %c0_124], %185 {strides = array<i32>} : memref<4x8x1xf32, #tpu.memory_space<vmem>>, vector<4x8x1xf32>,
      %cst_125 = arith.constant 0.000000e+00 : f32
      %187 = vector.broadcast %cst_125 : f32 to vector<4x8x1xf32>
      %c0_126 = arith.constant 0 : index
      %c0_127 = arith.constant 0 : index
      %c0_128 = arith.constant 0 : index
      %188 = vector.load %arg8[%c0_126, %c0_127, %c0_128] : memref<4x8x1xf32, #tpu.memory_space<vmem>>, vector<4x8x1xf32>
      tpu.vector_store %arg8[%c0_126, %c0_127, %c0_128], %187 {strides = array<i32>} : memref<4x8x1xf32, #tpu.memory_space<vmem>>, vector<4x8x1xf32>,
      %cst_129 = arith.constant 0.000000e+00 : f32
      %189 = vector.broadcast %cst_129 : f32 to vector<4x8x8xf32>
      %c0_130 = arith.constant 0 : index
      %c0_131 = arith.constant 0 : index
      %c0_132 = arith.constant 0 : index
      %190 = vector.load %arg9[%c0_130, %c0_131, %c0_132] : memref<4x8x8xf32, #tpu.memory_space<vmem>>, vector<4x8x8xf32>
      tpu.vector_store %arg9[%c0_130, %c0_131, %c0_132], %189 {strides = array<i32>} : memref<4x8x8xf32, #tpu.memory_space<vmem>>, vector<4x8x8xf32>,
    } else {
    }
    %c0 = arith.constant 0 : index
    %c0_1 = arith.constant 0 : index
    %c0_2 = arith.constant 0 : index
    %3 = vector.load %arg5[%c0, %c0_1, %c0_2] : memref<1x1x8xf32, #tpu.memory_space<vmem>>, vector<1x1x8xf32>
    %4 = vector.shape_cast %3 : vector<1x1x8xf32> to vector<1x8xf32>
    %cst = arith.constant 5.000000e-01 : f32
    %5 = vector.broadcast %cst : f32 to vector<1x8xf32>
    %6 = arith.cmpf ogt, %4, %5 : vector<1x8xf32>
    %cst_3 = arith.constant 0.000000e+00 : f32
    %cst_4 = arith.constant -1.000000e+09 : f32
    %7 = vector.broadcast %cst_3 : f32 to vector<1x8xf32>
    %8 = vector.broadcast %cst_4 : f32 to vector<1x8xf32>
    %9 = arith.select %6, %7, %8 : vector<1x8xi1>, vector<1x8xf32>
    %c0_5 = arith.constant 0 : index
    %c0_6 = arith.constant 0 : index
    %c0_7 = arith.constant 0 : index
    %10 = vector.load %arg3[%c0_5, %c0_6, %c0_7] : memref<1x8x96xbf16, #tpu.memory_space<vmem>>, vector<1x8x8xbf16>
    %11 = vector.shape_cast %10 : vector<1x8x8xbf16> to vector<8x8xbf16>
    %c0_8 = arith.constant 0 : index
    %c0_9 = arith.constant 0 : index
    %c32 = arith.constant 32 : index
    %12 = vector.load %arg4[%c0_8, %c0_9, %c32] : memref<1x8x96xbf16, #tpu.memory_space<vmem>>, vector<1x8x8xbf16>
    %13 = vector.shape_cast %12 : vector<1x8x8xbf16> to vector<8x8xbf16>
    %c0_10 = arith.constant 0 : index
    %c0_11 = arith.constant 0 : index
    %c64 = arith.constant 64 : index
    %14 = vector.load %arg4[%c0_10, %c0_11, %c64] : memref<1x8x96xbf16, #tpu.memory_space<vmem>>, vector<1x8x8xbf16>
    %15 = vector.shape_cast %14 : vector<1x8x8xbf16> to vector<8x8xbf16>
    %cst_12 = arith.constant dense<0.000000e+00> : vector<8x8xf32>
    %16 = tpu.matmul %11, %13, %cst_12 {dimension_numbers = #tpu.dot_dimension_numbers<[1], [1], [0], [0], [0, 0, 1, 0], [], []>} : vector<8x8xbf16>, vector<8x8xbf16>, vector<8x8xf32> -> vector<8x8xf32>
    %cst_13 = arith.constant 0.353553385 : f32
    %17 = vector.broadcast %cst_13 : f32 to vector<8x8xf32>
    %18 = arith.mulf %16, %17 : vector<8x8xf32>
    %19 = vector.broadcast %9 : vector<1x8xf32> to vector<8x8xf32>
    %20 = arith.addf %18, %19 : vector<8x8xf32>
    %c0_14 = arith.constant 0 : index
    %c0_15 = arith.constant 0 : index
    %c0_16 = arith.constant 0 : index
    %21 = vector.load %arg7[%c0_14, %c0_15, %c0_16] : memref<4x8x1xf32, #tpu.memory_space<vmem>>, vector<1x8x1xf32>
    %22 = vector.shape_cast %21 : vector<1x8x1xf32> to vector<8x1xf32>
    %cst_17 = arith.constant dense<0xFF800000> : vector<8xf32>
    %23 = vector.multi_reduction <maximumf>, %20, %cst_17 [1] : vector<8x8xf32> to vector<8xf32>
    %24 = vector.shape_cast %23 : vector<8xf32> to vector<8x1xf32>
    %25 = arith.maximumf %22, %24 : vector<8x1xf32>
    %26 = arith.subf %22, %25 : vector<8x1xf32>
    %27 = math.exp %26 : vector<8x1xf32>
    %28 = vector.broadcast %25 : vector<8x1xf32> to vector<8x8xf32>
    %29 = arith.subf %20, %28 : vector<8x8xf32>
    %30 = math.exp %29 : vector<8x8xf32>
    %c0_18 = arith.constant 0 : index
    %c0_19 = arith.constant 0 : index
    %c0_20 = arith.constant 0 : index
    %31 = vector.load %arg8[%c0_18, %c0_19, %c0_20] : memref<4x8x1xf32, #tpu.memory_space<vmem>>, vector<1x8x1xf32>
    %32 = vector.shape_cast %31 : vector<1x8x1xf32> to vector<8x1xf32>
    %33 = arith.mulf %27, %32 : vector<8x1xf32>
    %cst_21 = arith.constant dense<0.000000e+00> : vector<8xf32>
    %34 = vector.multi_reduction <add>, %30, %cst_21 [1] : vector<8x8xf32> to vector<8xf32>
    %35 = vector.shape_cast %34 : vector<8xf32> to vector<8x1xf32>
    %36 = arith.addf %33, %35 : vector<8x1xf32>
    %c0_22 = arith.constant 0 : index
    %c0_23 = arith.constant 0 : index
    %c0_24 = arith.constant 0 : index
    %37 = vector.load %arg8[%c0_22, %c0_23, %c0_24] : memref<4x8x1xf32, #tpu.memory_space<vmem>>, vector<1x8x1xf32>
    %38 = vector.shape_cast %37 : vector<1x8x1xf32> to vector<8x1xf32>
    %39 = vector.shape_cast %36 : vector<8x1xf32> to vector<1x8x1xf32>
    tpu.vector_store %arg8[%c0_22, %c0_23, %c0_24], %39 {strides = array<i32>} : memref<4x8x1xf32, #tpu.memory_space<vmem>>, vector<1x8x1xf32>,
    %c0_25 = arith.constant 0 : index
    %c0_26 = arith.constant 0 : index
    %c0_27 = arith.constant 0 : index
    %40 = vector.load %arg9[%c0_25, %c0_26, %c0_27] : memref<4x8x8xf32, #tpu.memory_space<vmem>>, vector<1x8x8xf32>
    %41 = vector.shape_cast %40 : vector<1x8x8xf32> to vector<8x8xf32>
    %42 = vector.broadcast %27 : vector<8x1xf32> to vector<8x8xf32>
    %43 = arith.mulf %42, %41 : vector<8x8xf32>
    %44 = arith.truncf %30 : vector<8x8xf32> to vector<8x8xbf16>
    %cst_28 = arith.constant dense<0.000000e+00> : vector<8x8xf32>
    %45 = tpu.matmul %44, %15, %cst_28 {dimension_numbers = #tpu.dot_dimension_numbers<[1], [0], [0], [1], [0, 0, 1, 1], [], []>} : vector<8x8xbf16>, vector<8x8xbf16>, vector<8x8xf32> -> vector<8x8xf32>
    %46 = arith.addf %43, %45 : vector<8x8xf32>
    %c0_29 = arith.constant 0 : index
    %c0_30 = arith.constant 0 : index
    %c0_31 = arith.constant 0 : index
    %47 = vector.load %arg9[%c0_29, %c0_30, %c0_31] : memref<4x8x8xf32, #tpu.memory_space<vmem>>, vector<1x8x8xf32>
    %48 = vector.shape_cast %47 : vector<1x8x8xf32> to vector<8x8xf32>
    %49 = vector.shape_cast %46 : vector<8x8xf32> to vector<1x8x8xf32>
    tpu.vector_store %arg9[%c0_29, %c0_30, %c0_31], %49 {strides = array<i32>} : memref<4x8x8xf32, #tpu.memory_space<vmem>>, vector<1x8x8xf32>,
    %c0_32 = arith.constant 0 : index
    %c0_33 = arith.constant 0 : index
    %c0_34 = arith.constant 0 : index
    %50 = vector.load %arg7[%c0_32, %c0_33, %c0_34] : memref<4x8x1xf32, #tpu.memory_space<vmem>>, vector<1x8x1xf32>
    %51 = vector.shape_cast %50 : vector<1x8x1xf32> to vector<8x1xf32>
    %52 = vector.shape_cast %25 : vector<8x1xf32> to vector<1x8x1xf32>
    tpu.vector_store %arg7[%c0_32, %c0_33, %c0_34], %52 {strides = array<i32>} : memref<4x8x1xf32, #tpu.memory_space<vmem>>, vector<1x8x1xf32>,
    %c0_35 = arith.constant 0 : index
    %c0_36 = arith.constant 0 : index
    %c8 = arith.constant 8 : index
    %53 = vector.load %arg3[%c0_35, %c0_36, %c8] : memref<1x8x96xbf16, #tpu.memory_space<vmem>>, vector<1x8x8xbf16>
    %54 = vector.shape_cast %53 : vector<1x8x8xbf16> to vector<8x8xbf16>
    %c0_37 = arith.constant 0 : index
    %c0_38 = arith.constant 0 : index
    %c40 = arith.constant 40 : index
    %55 = vector.load %arg4[%c0_37, %c0_38, %c40] : memref<1x8x96xbf16, #tpu.memory_space<vmem>>, vector<1x8x8xbf16>
    %56 = vector.shape_cast %55 : vector<1x8x8xbf16> to vector<8x8xbf16>
    %c0_39 = arith.constant 0 : index
    %c0_40 = arith.constant 0 : index
    %c72 = arith.constant 72 : index
    %57 = vector.load %arg4[%c0_39, %c0_40, %c72] : memref<1x8x96xbf16, #tpu.memory_space<vmem>>, vector<1x8x8xbf16>
    %58 = vector.shape_cast %57 : vector<1x8x8xbf16> to vector<8x8xbf16>
    %cst_41 = arith.constant dense<0.000000e+00> : vector<8x8xf32>
    %59 = tpu.matmul %54, %56, %cst_41 {dimension_numbers = #tpu.dot_dimension_numbers<[1], [1], [0], [0], [0, 0, 1, 0], [], []>} : vector<8x8xbf16>, vector<8x8xbf16>, vector<8x8xf32> -> vector<8x8xf32>
    %cst_42 = arith.constant 0.353553385 : f32
    %60 = vector.broadcast %cst_42 : f32 to vector<8x8xf32>
    %61 = arith.mulf %59, %60 : vector<8x8xf32>
    %62 = vector.broadcast %9 : vector<1x8xf32> to vector<8x8xf32>
    %63 = arith.addf %61, %62 : vector<8x8xf32>
    %c1 = arith.constant 1 : index
    %c0_43 = arith.constant 0 : index
    %c0_44 = arith.constant 0 : index
    %64 = vector.load %arg7[%c1, %c0_43, %c0_44] : memref<4x8x1xf32, #tpu.memory_space<vmem>>, vector<1x8x1xf32>
    %65 = vector.shape_cast %64 : vector<1x8x1xf32> to vector<8x1xf32>
    %cst_45 = arith.constant dense<0xFF800000> : vector<8xf32>
    %66 = vector.multi_reduction <maximumf>, %63, %cst_45 [1] : vector<8x8xf32> to vector<8xf32>
    %67 = vector.shape_cast %66 : vector<8xf32> to vector<8x1xf32>
    %68 = arith.maximumf %65, %67 : vector<8x1xf32>
    %69 = arith.subf %65, %68 : vector<8x1xf32>
    %70 = math.exp %69 : vector<8x1xf32>
    %71 = vector.broadcast %68 : vector<8x1xf32> to vector<8x8xf32>
    %72 = arith.subf %63, %71 : vector<8x8xf32>
    %73 = math.exp %72 : vector<8x8xf32>
    %c1_46 = arith.constant 1 : index
    %c0_47 = arith.constant 0 : index
    %c0_48 = arith.constant 0 : index
    %74 = vector.load %arg8[%c1_46, %c0_47, %c0_48] : memref<4x8x1xf32, #tpu.memory_space<vmem>>, vector<1x8x1xf32>
    %75 = vector.shape_cast %74 : vector<1x8x1xf32> to vector<8x1xf32>
    %76 = arith.mulf %70, %75 : vector<8x1xf32>
    %cst_49 = arith.constant dense<0.000000e+00> : vector<8xf32>
    %77 = vector.multi_reduction <add>, %73, %cst_49 [1] : vector<8x8xf32> to vector<8xf32>
    %78 = vector.shape_cast %77 : vector<8xf32> to vector<8x1xf32>
    %79 = arith.addf %76, %78 : vector<8x1xf32>
    %c1_50 = arith.constant 1 : index
    %c0_51 = arith.constant 0 : index
    %c0_52 = arith.constant 0 : index
    %80 = vector.load %arg8[%c1_50, %c0_51, %c0_52] : memref<4x8x1xf32, #tpu.memory_space<vmem>>, vector<1x8x1xf32>
    %81 = vector.shape_cast %80 : vector<1x8x1xf32> to vector<8x1xf32>
    %82 = vector.shape_cast %79 : vector<8x1xf32> to vector<1x8x1xf32>
    tpu.vector_store %arg8[%c1_50, %c0_51, %c0_52], %82 {strides = array<i32>} : memref<4x8x1xf32, #tpu.memory_space<vmem>>, vector<1x8x1xf32>,
    %c1_53 = arith.constant 1 : index
    %c0_54 = arith.constant 0 : index
    %c0_55 = arith.constant 0 : index
    %83 = vector.load %arg9[%c1_53, %c0_54, %c0_55] : memref<4x8x8xf32, #tpu.memory_space<vmem>>, vector<1x8x8xf32>
    %84 = vector.shape_cast %83 : vector<1x8x8xf32> to vector<8x8xf32>
    %85 = vector.broadcast %70 : vector<8x1xf32> to vector<8x8xf32>
    %86 = arith.mulf %85, %84 : vector<8x8xf32>
    %87 = arith.truncf %73 : vector<8x8xf32> to vector<8x8xbf16>
    %cst_56 = arith.constant dense<0.000000e+00> : vector<8x8xf32>
    %88 = tpu.matmul %87, %58, %cst_56 {dimension_numbers = #tpu.dot_dimension_numbers<[1], [0], [0], [1], [0, 0, 1, 1], [], []>} : vector<8x8xbf16>, vector<8x8xbf16>, vector<8x8xf32> -> vector<8x8xf32>
    %89 = arith.addf %86, %88 : vector<8x8xf32>
    %c1_57 = arith.constant 1 : index
    %c0_58 = arith.constant 0 : index
    %c0_59 = arith.constant 0 : index
    %90 = vector.load %arg9[%c1_57, %c0_58, %c0_59] : memref<4x8x8xf32, #tpu.memory_space<vmem>>, vector<1x8x8xf32>
    %91 = vector.shape_cast %90 : vector<1x8x8xf32> to vector<8x8xf32>
    %92 = vector.shape_cast %89 : vector<8x8xf32> to vector<1x8x8xf32>
    tpu.vector_store %arg9[%c1_57, %c0_58, %c0_59], %92 {strides = array<i32>} : memref<4x8x8xf32, #tpu.memory_space<vmem>>, vector<1x8x8xf32>,
    %c1_60 = arith.constant 1 : index
    %c0_61 = arith.constant 0 : index
    %c0_62 = arith.constant 0 : index
    %93 = vector.load %arg7[%c1_60, %c0_61, %c0_62] : memref<4x8x1xf32, #tpu.memory_space<vmem>>, vector<1x8x1xf32>
    %94 = vector.shape_cast %93 : vector<1x8x1xf32> to vector<8x1xf32>
    %95 = vector.shape_cast %68 : vector<8x1xf32> to vector<1x8x1xf32>
    tpu.vector_store %arg7[%c1_60, %c0_61, %c0_62], %95 {strides = array<i32>} : memref<4x8x1xf32, #tpu.memory_space<vmem>>, vector<1x8x1xf32>,
    %c0_63 = arith.constant 0 : index
    %c0_64 = arith.constant 0 : index
    %c16 = arith.constant 16 : index
    %96 = vector.load %arg3[%c0_63, %c0_64, %c16] : memref<1x8x96xbf16, #tpu.memory_space<vmem>>, vector<1x8x8xbf16>
    %97 = vector.shape_cast %96 : vector<1x8x8xbf16> to vector<8x8xbf16>
    %c0_65 = arith.constant 0 : index
    %c0_66 = arith.constant 0 : index
    %c48 = arith.constant 48 : index
    %98 = vector.load %arg4[%c0_65, %c0_66, %c48] : memref<1x8x96xbf16, #tpu.memory_space<vmem>>, vector<1x8x8xbf16>
    %99 = vector.shape_cast %98 : vector<1x8x8xbf16> to vector<8x8xbf16>
    %c0_67 = arith.constant 0 : index
    %c0_68 = arith.constant 0 : index
    %c80 = arith.constant 80 : index
    %100 = vector.load %arg4[%c0_67, %c0_68, %c80] : memref<1x8x96xbf16, #tpu.memory_space<vmem>>, vector<1x8x8xbf16>
    %101 = vector.shape_cast %100 : vector<1x8x8xbf16> to vector<8x8xbf16>
    %cst_69 = arith.constant dense<0.000000e+00> : vector<8x8xf32>
    %102 = tpu.matmul %97, %99, %cst_69 {dimension_numbers = #tpu.dot_dimension_numbers<[1], [1], [0], [0], [0, 0, 1, 0], [], []>} : vector<8x8xbf16>, vector<8x8xbf16>, vector<8x8xf32> -> vector<8x8xf32>
    %cst_70 = arith.constant 0.353553385 : f32
    %103 = vector.broadcast %cst_70 : f32 to vector<8x8xf32>
    %104 = arith.mulf %102, %103 : vector<8x8xf32>
    %105 = vector.broadcast %9 : vector<1x8xf32> to vector<8x8xf32>
    %106 = arith.addf %104, %105 : vector<8x8xf32>
    %c2 = arith.constant 2 : index
    %c0_71 = arith.constant 0 : index
    %c0_72 = arith.constant 0 : index
    %107 = vector.load %arg7[%c2, %c0_71, %c0_72] : memref<4x8x1xf32, #tpu.memory_space<vmem>>, vector<1x8x1xf32>
    %108 = vector.shape_cast %107 : vector<1x8x1xf32> to vector<8x1xf32>
    %cst_73 = arith.constant dense<0xFF800000> : vector<8xf32>
    %109 = vector.multi_reduction <maximumf>, %106, %cst_73 [1] : vector<8x8xf32> to vector<8xf32>
    %110 = vector.shape_cast %109 : vector<8xf32> to vector<8x1xf32>
    %111 = arith.maximumf %108, %110 : vector<8x1xf32>
    %112 = arith.subf %108, %111 : vector<8x1xf32>
    %113 = math.exp %112 : vector<8x1xf32>
    %114 = vector.broadcast %111 : vector<8x1xf32> to vector<8x8xf32>
    %115 = arith.subf %106, %114 : vector<8x8xf32>
    %116 = math.exp %115 : vector<8x8xf32>
    %c2_74 = arith.constant 2 : index
    %c0_75 = arith.constant 0 : index
    %c0_76 = arith.constant 0 : index
    %117 = vector.load %arg8[%c2_74, %c0_75, %c0_76] : memref<4x8x1xf32, #tpu.memory_space<vmem>>, vector<1x8x1xf32>
    %118 = vector.shape_cast %117 : vector<1x8x1xf32> to vector<8x1xf32>
    %119 = arith.mulf %113, %118 : vector<8x1xf32>
    %cst_77 = arith.constant dense<0.000000e+00> : vector<8xf32>
    %120 = vector.multi_reduction <add>, %116, %cst_77 [1] : vector<8x8xf32> to vector<8xf32>
    %121 = vector.shape_cast %120 : vector<8xf32> to vector<8x1xf32>
    %122 = arith.addf %119, %121 : vector<8x1xf32>
    %c2_78 = arith.constant 2 : index
    %c0_79 = arith.constant 0 : index
    %c0_80 = arith.constant 0 : index
    %123 = vector.load %arg8[%c2_78, %c0_79, %c0_80] : memref<4x8x1xf32, #tpu.memory_space<vmem>>, vector<1x8x1xf32>
    %124 = vector.shape_cast %123 : vector<1x8x1xf32> to vector<8x1xf32>
    %125 = vector.shape_cast %122 : vector<8x1xf32> to vector<1x8x1xf32>
    tpu.vector_store %arg8[%c2_78, %c0_79, %c0_80], %125 {strides = array<i32>} : memref<4x8x1xf32, #tpu.memory_space<vmem>>, vector<1x8x1xf32>,
    %c2_81 = arith.constant 2 : index
    %c0_82 = arith.constant 0 : index
    %c0_83 = arith.constant 0 : index
    %126 = vector.load %arg9[%c2_81, %c0_82, %c0_83] : memref<4x8x8xf32, #tpu.memory_space<vmem>>, vector<1x8x8xf32>
    %127 = vector.shape_cast %126 : vector<1x8x8xf32> to vector<8x8xf32>
    %128 = vector.broadcast %113 : vector<8x1xf32> to vector<8x8xf32>
    %129 = arith.mulf %128, %127 : vector<8x8xf32>
    %130 = arith.truncf %116 : vector<8x8xf32> to vector<8x8xbf16>
    %cst_84 = arith.constant dense<0.000000e+00> : vector<8x8xf32>
    %131 = tpu.matmul %130, %101, %cst_84 {dimension_numbers = #tpu.dot_dimension_numbers<[1], [0], [0], [1], [0, 0, 1, 1], [], []>} : vector<8x8xbf16>, vector<8x8xbf16>, vector<8x8xf32> -> vector<8x8xf32>
    %132 = arith.addf %129, %131 : vector<8x8xf32>
    %c2_85 = arith.constant 2 : index
    %c0_86 = arith.constant 0 : index
    %c0_87 = arith.constant 0 : index
    %133 = vector.load %arg9[%c2_85, %c0_86, %c0_87] : memref<4x8x8xf32, #tpu.memory_space<vmem>>, vector<1x8x8xf32>
    %134 = vector.shape_cast %133 : vector<1x8x8xf32> to vector<8x8xf32>
    %135 = vector.shape_cast %132 : vector<8x8xf32> to vector<1x8x8xf32>
    tpu.vector_store %arg9[%c2_85, %c0_86, %c0_87], %135 {strides = array<i32>} : memref<4x8x8xf32, #tpu.memory_space<vmem>>, vector<1x8x8xf32>,
    %c2_88 = arith.constant 2 : index
    %c0_89 = arith.constant 0 : index
    %c0_90 = arith.constant 0 : index
    %136 = vector.load %arg7[%c2_88, %c0_89, %c0_90] : memref<4x8x1xf32, #tpu.memory_space<vmem>>, vector<1x8x1xf32>
    %137 = vector.shape_cast %136 : vector<1x8x1xf32> to vector<8x1xf32>
    %138 = vector.shape_cast %111 : vector<8x1xf32> to vector<1x8x1xf32>
    tpu.vector_store %arg7[%c2_88, %c0_89, %c0_90], %138 {strides = array<i32>} : memref<4x8x1xf32, #tpu.memory_space<vmem>>, vector<1x8x1xf32>,
    %c0_91 = arith.constant 0 : index
    %c0_92 = arith.constant 0 : index
    %c24 = arith.constant 24 : index
    %139 = vector.load %arg3[%c0_91, %c0_92, %c24] : memref<1x8x96xbf16, #tpu.memory_space<vmem>>, vector<1x8x8xbf16>
    %140 = vector.shape_cast %139 : vector<1x8x8xbf16> to vector<8x8xbf16>
    %c0_93 = arith.constant 0 : index
    %c0_94 = arith.constant 0 : index
    %c56 = arith.constant 56 : index
    %141 = vector.load %arg4[%c0_93, %c0_94, %c56] : memref<1x8x96xbf16, #tpu.memory_space<vmem>>, vector<1x8x8xbf16>
    %142 = vector.shape_cast %141 : vector<1x8x8xbf16> to vector<8x8xbf16>
    %c0_95 = arith.constant 0 : index
    %c0_96 = arith.constant 0 : index
    %c88 = arith.constant 88 : index
    %143 = vector.load %arg4[%c0_95, %c0_96, %c88] : memref<1x8x96xbf16, #tpu.memory_space<vmem>>, vector<1x8x8xbf16>
    %144 = vector.shape_cast %143 : vector<1x8x8xbf16> to vector<8x8xbf16>
    %cst_97 = arith.constant dense<0.000000e+00> : vector<8x8xf32>
    %145 = tpu.matmul %140, %142, %cst_97 {dimension_numbers = #tpu.dot_dimension_numbers<[1], [1], [0], [0], [0, 0, 1, 0], [], []>} : vector<8x8xbf16>, vector<8x8xbf16>, vector<8x8xf32> -> vector<8x8xf32>
    %cst_98 = arith.constant 0.353553385 : f32
    %146 = vector.broadcast %cst_98 : f32 to vector<8x8xf32>
    %147 = arith.mulf %145, %146 : vector<8x8xf32>
    %148 = vector.broadcast %9 : vector<1x8xf32> to vector<8x8xf32>
    %149 = arith.addf %147, %148 : vector<8x8xf32>
    %c3 = arith.constant 3 : index
    %c0_99 = arith.constant 0 : index
    %c0_100 = arith.constant 0 : index
    %150 = vector.load %arg7[%c3, %c0_99, %c0_100] : memref<4x8x1xf32, #tpu.memory_space<vmem>>, vector<1x8x1xf32>
    %151 = vector.shape_cast %150 : vector<1x8x1xf32> to vector<8x1xf32>
    %cst_101 = arith.constant dense<0xFF800000> : vector<8xf32>
    %152 = vector.multi_reduction <maximumf>, %149, %cst_101 [1] : vector<8x8xf32> to vector<8xf32>
    %153 = vector.shape_cast %152 : vector<8xf32> to vector<8x1xf32>
    %154 = arith.maximumf %151, %153 : vector<8x1xf32>
    %155 = arith.subf %151, %154 : vector<8x1xf32>
    %156 = math.exp %155 : vector<8x1xf32>
    %157 = vector.broadcast %154 : vector<8x1xf32> to vector<8x8xf32>
    %158 = arith.subf %149, %157 : vector<8x8xf32>
    %159 = math.exp %158 : vector<8x8xf32>
    %c3_102 = arith.constant 3 : index
    %c0_103 = arith.constant 0 : index
    %c0_104 = arith.constant 0 : index
    %160 = vector.load %arg8[%c3_102, %c0_103, %c0_104] : memref<4x8x1xf32, #tpu.memory_space<vmem>>, vector<1x8x1xf32>
    %161 = vector.shape_cast %160 : vector<1x8x1xf32> to vector<8x1xf32>
    %162 = arith.mulf %156, %161 : vector<8x1xf32>
    %cst_105 = arith.constant dense<0.000000e+00> : vector<8xf32>
    %163 = vector.multi_reduction <add>, %159, %cst_105 [1] : vector<8x8xf32> to vector<8xf32>
    %164 = vector.shape_cast %163 : vector<8xf32> to vector<8x1xf32>
    %165 = arith.addf %162, %164 : vector<8x1xf32>
    %c3_106 = arith.constant 3 : index
    %c0_107 = arith.constant 0 : index
    %c0_108 = arith.constant 0 : index
    %166 = vector.load %arg8[%c3_106, %c0_107, %c0_108] : memref<4x8x1xf32, #tpu.memory_space<vmem>>, vector<1x8x1xf32>
    %167 = vector.shape_cast %166 : vector<1x8x1xf32> to vector<8x1xf32>
    %168 = vector.shape_cast %165 : vector<8x1xf32> to vector<1x8x1xf32>
    tpu.vector_store %arg8[%c3_106, %c0_107, %c0_108], %168 {strides = array<i32>} : memref<4x8x1xf32, #tpu.memory_space<vmem>>, vector<1x8x1xf32>,
    %c3_109 = arith.constant 3 : index
    %c0_110 = arith.constant 0 : index
    %c0_111 = arith.constant 0 : index
    %169 = vector.load %arg9[%c3_109, %c0_110, %c0_111] : memref<4x8x8xf32, #tpu.memory_space<vmem>>, vector<1x8x8xf32>
    %170 = vector.shape_cast %169 : vector<1x8x8xf32> to vector<8x8xf32>
    %171 = vector.broadcast %156 : vector<8x1xf32> to vector<8x8xf32>
    %172 = arith.mulf %171, %170 : vector<8x8xf32>
    %173 = arith.truncf %159 : vector<8x8xf32> to vector<8x8xbf16>
    %cst_112 = arith.constant dense<0.000000e+00> : vector<8x8xf32>
    %174 = tpu.matmul %173, %144, %cst_112 {dimension_numbers = #tpu.dot_dimension_numbers<[1], [0], [0], [1], [0, 0, 1, 1], [], []>} : vector<8x8xbf16>, vector<8x8xbf16>, vector<8x8xf32> -> vector<8x8xf32>
    %175 = arith.addf %172, %174 : vector<8x8xf32>
    %c3_113 = arith.constant 3 : index
    %c0_114 = arith.constant 0 : index
    %c0_115 = arith.constant 0 : index
    %176 = vector.load %arg9[%c3_113, %c0_114, %c0_115] : memref<4x8x8xf32, #tpu.memory_space<vmem>>, vector<1x8x8xf32>
    %177 = vector.shape_cast %176 : vector<1x8x8xf32> to vector<8x8xf32>
    %178 = vector.shape_cast %175 : vector<8x8xf32> to vector<1x8x8xf32>
    tpu.vector_store %arg9[%c3_113, %c0_114, %c0_115], %178 {strides = array<i32>} : memref<4x8x8xf32, #tpu.memory_space<vmem>>, vector<1x8x8xf32>,
    %c3_116 = arith.constant 3 : index
    %c0_117 = arith.constant 0 : index
    %c0_118 = arith.constant 0 : index
    %179 = vector.load %arg7[%c3_116, %c0_117, %c0_118] : memref<4x8x1xf32, #tpu.memory_space<vmem>>, vector<1x8x1xf32>
    %180 = vector.shape_cast %179 : vector<1x8x1xf32> to vector<8x1xf32>
    %181 = vector.shape_cast %154 : vector<8x1xf32> to vector<1x8x1xf32>
    tpu.vector_store %arg7[%c3_116, %c0_117, %c0_118], %181 {strides = array<i32>} : memref<4x8x1xf32, #tpu.memory_space<vmem>>, vector<1x8x1xf32>,
    %c0_i32_119 = arith.constant 0 : i32
    %182 = arith.cmpi eq, %arg2, %c0_i32_119 : i32
    %183 = arith.extui %182 : i1 to i32
    %c0_i32_120 = arith.constant 0 : i32
    %184 = arith.cmpi ne, %183, %c0_i32_120 : i32
    scf.if %184 {
      %c0_121 = arith.constant 0 : index
      %c0_122 = arith.constant 0 : index
      %c0_123 = arith.constant 0 : index
      %185 = vector.load %arg9[%c0_121, %c0_122, %c0_123] : memref<4x8x8xf32, #tpu.memory_space<vmem>>, vector<1x8x8xf32>
      %186 = vector.shape_cast %185 : vector<1x8x8xf32> to vector<8x8xf32>
      %c0_124 = arith.constant 0 : index
      %c0_125 = arith.constant 0 : index
      %c0_126 = arith.constant 0 : index
      %187 = vector.load %arg8[%c0_124, %c0_125, %c0_126] : memref<4x8x1xf32, #tpu.memory_space<vmem>>, vector<1x8x1xf32>
      %188 = vector.shape_cast %187 : vector<1x8x1xf32> to vector<8x1xf32>
      %189 = tpu.reciprocal %188 {approx = true} : vector<8x1xf32> -> vector<8x1xf32>
      %190 = vector.broadcast %189 : vector<8x1xf32> to vector<8x8xf32>
      %191 = arith.mulf %186, %190 : vector<8x8xf32>
      %192 = arith.truncf %191 : vector<8x8xf32> to vector<8x8xbf16>
      %c0_127 = arith.constant 0 : index
      %c0_128 = arith.constant 0 : index
      %c0_129 = arith.constant 0 : index
      %193 = vector.load %arg6[%c0_127, %c0_128, %c0_129] : memref<1x8x32xbf16, #tpu.memory_space<vmem>>, vector<1x8x8xbf16>
      %194 = vector.shape_cast %193 : vector<1x8x8xbf16> to vector<8x8xbf16>
      %195 = vector.shape_cast %192 : vector<8x8xbf16> to vector<1x8x8xbf16>
      tpu.vector_store %arg6[%c0_127, %c0_128, %c0_129], %195 {strides = array<i32>} : memref<1x8x32xbf16, #tpu.memory_space<vmem>>, vector<1x8x8xbf16>,
      %c1_130 = arith.constant 1 : index
      %c0_131 = arith.constant 0 : index
      %c0_132 = arith.constant 0 : index
      %196 = vector.load %arg9[%c1_130, %c0_131, %c0_132] : memref<4x8x8xf32, #tpu.memory_space<vmem>>, vector<1x8x8xf32>
      %197 = vector.shape_cast %196 : vector<1x8x8xf32> to vector<8x8xf32>
      %c1_133 = arith.constant 1 : index
      %c0_134 = arith.constant 0 : index
      %c0_135 = arith.constant 0 : index
      %198 = vector.load %arg8[%c1_133, %c0_134, %c0_135] : memref<4x8x1xf32, #tpu.memory_space<vmem>>, vector<1x8x1xf32>
      %199 = vector.shape_cast %198 : vector<1x8x1xf32> to vector<8x1xf32>
      %200 = tpu.reciprocal %199 {approx = true} : vector<8x1xf32> -> vector<8x1xf32>
      %201 = vector.broadcast %200 : vector<8x1xf32> to vector<8x8xf32>
      %202 = arith.mulf %197, %201 : vector<8x8xf32>
      %203 = arith.truncf %202 : vector<8x8xf32> to vector<8x8xbf16>
      %c0_136 = arith.constant 0 : index
      %c0_137 = arith.constant 0 : index
      %c8_138 = arith.constant 8 : index
      %204 = vector.load %arg6[%c0_136, %c0_137, %c8_138] : memref<1x8x32xbf16, #tpu.memory_space<vmem>>, vector<1x8x8xbf16>
      %205 = vector.shape_cast %204 : vector<1x8x8xbf16> to vector<8x8xbf16>
      %206 = vector.shape_cast %203 : vector<8x8xbf16> to vector<1x8x8xbf16>
      tpu.vector_store %arg6[%c0_136, %c0_137, %c8_138], %206 {strides = array<i32>} : memref<1x8x32xbf16, #tpu.memory_space<vmem>>, vector<1x8x8xbf16>,
      %c2_139 = arith.constant 2 : index
      %c0_140 = arith.constant 0 : index
      %c0_141 = arith.constant 0 : index
      %207 = vector.load %arg9[%c2_139, %c0_140, %c0_141] : memref<4x8x8xf32, #tpu.memory_space<vmem>>, vector<1x8x8xf32>
      %208 = vector.shape_cast %207 : vector<1x8x8xf32> to vector<8x8xf32>
      %c2_142 = arith.constant 2 : index
      %c0_143 = arith.constant 0 : index
      %c0_144 = arith.constant 0 : index
      %209 = vector.load %arg8[%c2_142, %c0_143, %c0_144] : memref<4x8x1xf32, #tpu.memory_space<vmem>>, vector<1x8x1xf32>
      %210 = vector.shape_cast %209 : vector<1x8x1xf32> to vector<8x1xf32>
      %211 = tpu.reciprocal %210 {approx = true} : vector<8x1xf32> -> vector<8x1xf32>
      %212 = vector.broadcast %211 : vector<8x1xf32> to vector<8x8xf32>
      %213 = arith.mulf %208, %212 : vector<8x8xf32>
      %214 = arith.truncf %213 : vector<8x8xf32> to vector<8x8xbf16>
      %c0_145 = arith.constant 0 : index
      %c0_146 = arith.constant 0 : index
      %c16_147 = arith.constant 16 : index
      %215 = vector.load %arg6[%c0_145, %c0_146, %c16_147] : memref<1x8x32xbf16, #tpu.memory_space<vmem>>, vector<1x8x8xbf16>
      %216 = vector.shape_cast %215 : vector<1x8x8xbf16> to vector<8x8xbf16>
      %217 = vector.shape_cast %214 : vector<8x8xbf16> to vector<1x8x8xbf16>
      tpu.vector_store %arg6[%c0_145, %c0_146, %c16_147], %217 {strides = array<i32>} : memref<1x8x32xbf16, #tpu.memory_space<vmem>>, vector<1x8x8xbf16>,
      %c3_148 = arith.constant 3 : index
      %c0_149 = arith.constant 0 : index
      %c0_150 = arith.constant 0 : index
      %218 = vector.load %arg9[%c3_148, %c0_149, %c0_150] : memref<4x8x8xf32, #tpu.memory_space<vmem>>, vector<1x8x8xf32>
      %219 = vector.shape_cast %218 : vector<1x8x8xf32> to vector<8x8xf32>
      %c3_151 = arith.constant 3 : index
      %c0_152 = arith.constant 0 : index
      %c0_153 = arith.constant 0 : index
      %220 = vector.load %arg8[%c3_151, %c0_152, %c0_153] : memref<4x8x1xf32, #tpu.memory_space<vmem>>, vector<1x8x1xf32>
      %221 = vector.shape_cast %220 : vector<1x8x1xf32> to vector<8x1xf32>
      %222 = tpu.reciprocal %221 {approx = true} : vector<8x1xf32> -> vector<8x1xf32>
      %223 = vector.broadcast %222 : vector<8x1xf32> to vector<8x8xf32>
      %224 = arith.mulf %219, %223 : vector<8x8xf32>
      %225 = arith.truncf %224 : vector<8x8xf32> to vector<8x8xbf16>
      %c0_154 = arith.constant 0 : index
      %c0_155 = arith.constant 0 : index
      %c24_156 = arith.constant 24 : index
      %226 = vector.load %arg6[%c0_154, %c0_155, %c24_156] : memref<1x8x32xbf16, #tpu.memory_space<vmem>>, vector<1x8x8xbf16>
      %227 = vector.shape_cast %226 : vector<1x8x8xbf16> to vector<8x8xbf16>
      %228 = vector.shape_cast %225 : vector<8x8xbf16> to vector<1x8x8xbf16>
      tpu.vector_store %arg6[%c0_154, %c0_155, %c24_156], %228 {strides = array<i32>} : memref<1x8x32xbf16, #tpu.memory_space<vmem>>, vector<1x8x8xbf16>,
    } else {
    }
    return
  }
  func.func @transform_0(%arg0: i32, %arg1: i32, %arg2: i32) -> (i32, i32, i32) {
    %c0_i32 = arith.constant 0 : i32
    %c0_i32_0 = arith.constant 0 : i32
    return %arg0, %arg1, %c0_i32 : i32, i32, i32
  }
  func.func @transform_1(%arg0: i32, %arg1: i32, %arg2: i32) -> (i32, i32, i32) {
    %c0_i32 = arith.constant 0 : i32
    %c0_i32_0 = arith.constant 0 : i32
    return %arg0, %arg2, %c0_i32 : i32, i32, i32
  }
  func.func @transform_2(%arg0: i32, %arg1: i32, %arg2: i32) -> (i32, i32, i32) {
    %c0_i32 = arith.constant 0 : i32
    %c0_i32_0 = arith.constant 0 : i32
    return %arg0, %c0_i32, %arg2 : i32, i32, i32
  }
  func.func @transform_3(%arg0: i32, %arg1: i32, %arg2: i32) -> (i32, i32, i32) {
    %c0_i32 = arith.constant 0 : i32
    %c0_i32_0 = arith.constant 0 : i32
    return %arg0, %arg1, %c0_i32 : i32, i32, i32
  }
}

module attributes {stable_mosaic.version = 11 : i64} {
  func.func @_linear_add_ln_kernel(%arg0: i32, %arg1: i32, %arg2: memref<16x64xbf16, #tpu.memory_space<vmem>>, %arg3: memref<64x32xbf16, #tpu.memory_space<vmem>>, %arg4: memref<1x32xf32, #tpu.memory_space<vmem>>, %arg5: memref<16x32xbf16, #tpu.memory_space<vmem>>, %arg6: memref<1x32xf32, #tpu.memory_space<vmem>>, %arg7: memref<1x32xf32, #tpu.memory_space<vmem>>, %arg8: memref<16x32xbf16, #tpu.memory_space<vmem>>, %arg9: memref<16x32xf32, #tpu.memory_space<vmem>>) attributes {dimension_semantics = [#tpu.dimension_semantics<parallel>, #tpu.dimension_semantics<arbitrary>], iteration_bounds = array<i64: 1, 1>, scalar_prefetch = 0 : i64, scratch_operands = 1 : i64, tpu.core_type = #tpu.core_type<tc>, window_params = [{transform_indices = @transform_0, window_bounds = array<i64: 16, 64>}, {transform_indices = @transform_1, window_bounds = array<i64: 64, 32>}, {pipeline_mode = #tpu.pipeline_mode<synchronous>, transform_indices = @transform_2, window_bounds = array<i64: 1, 32>}, {transform_indices = @transform_3, window_bounds = array<i64: 16, 32>}, {pipeline_mode = #tpu.pipeline_mode<synchronous>, transform_indices = @transform_4, window_bounds = array<i64: 1, 32>}, {pipeline_mode = #tpu.pipeline_mode<synchronous>, transform_indices = @transform_5, window_bounds = array<i64: 1, 32>}, {transform_indices = @transform_6, window_bounds = array<i64: 16, 32>}]} {
    %c0_i32 = arith.constant 0 : i32
    %0 = arith.cmpi eq, %arg1, %c0_i32 : i32
    %1 = arith.extui %0 : i1 to i32
    %c0_i32_0 = arith.constant 0 : i32
    %2 = arith.cmpi ne, %1, %c0_i32_0 : i32
    scf.if %2 {
      %cst_10 = arith.constant 0.000000e+00 : f32
      %12 = vector.broadcast %cst_10 : f32 to vector<16x32xf32>
      %c0_11 = arith.constant 0 : index
      %c0_12 = arith.constant 0 : index
      %13 = vector.load %arg9[%c0_11, %c0_12] : memref<16x32xf32, #tpu.memory_space<vmem>>, vector<16x32xf32>
      tpu.vector_store %arg9[%c0_11, %c0_12], %12 {strides = array<i32>} : memref<16x32xf32, #tpu.memory_space<vmem>>, vector<16x32xf32>,
    } else {
    }
    %c0 = arith.constant 0 : index
    %c0_1 = arith.constant 0 : index
    %3 = vector.load %arg9[%c0, %c0_1] : memref<16x32xf32, #tpu.memory_space<vmem>>, vector<16x32xf32>
    %c0_2 = arith.constant 0 : index
    %c0_3 = arith.constant 0 : index
    %4 = vector.load %arg2[%c0_2, %c0_3] : memref<16x64xbf16, #tpu.memory_space<vmem>>, vector<16x64xbf16>
    %c0_4 = arith.constant 0 : index
    %c0_5 = arith.constant 0 : index
    %5 = vector.load %arg3[%c0_4, %c0_5] : memref<64x32xbf16, #tpu.memory_space<vmem>>, vector<64x32xbf16>
    %cst = arith.constant dense<0.000000e+00> : vector<16x32xf32>
    %6 = tpu.matmul %4, %5, %cst {dimension_numbers = #tpu.dot_dimension_numbers<[1], [0], [0], [1], [0, 0, 1, 1], [], []>} : vector<16x64xbf16>, vector<64x32xbf16>, vector<16x32xf32> -> vector<16x32xf32>
    %7 = arith.addf %3, %6 : vector<16x32xf32>
    %c0_6 = arith.constant 0 : index
    %c0_7 = arith.constant 0 : index
    %8 = vector.load %arg9[%c0_6, %c0_7] : memref<16x32xf32, #tpu.memory_space<vmem>>, vector<16x32xf32>
    tpu.vector_store %arg9[%c0_6, %c0_7], %7 {strides = array<i32>} : memref<16x32xf32, #tpu.memory_space<vmem>>, vector<16x32xf32>,
    %c0_i32_8 = arith.constant 0 : i32
    %9 = arith.cmpi eq, %arg1, %c0_i32_8 : i32
    %10 = arith.extui %9 : i1 to i32
    %c0_i32_9 = arith.constant 0 : i32
    %11 = arith.cmpi ne, %10, %c0_i32_9 : i32
    scf.if %11 {
      %c0_10 = arith.constant 0 : index
      %c0_11 = arith.constant 0 : index
      %12 = vector.load %arg9[%c0_10, %c0_11] : memref<16x32xf32, #tpu.memory_space<vmem>>, vector<16x32xf32>
      %c0_12 = arith.constant 0 : index
      %c0_13 = arith.constant 0 : index
      %13 = vector.load %arg4[%c0_12, %c0_13] : memref<1x32xf32, #tpu.memory_space<vmem>>, vector<1x32xf32>
      %14 = vector.broadcast %13 : vector<1x32xf32> to vector<16x32xf32>
      %15 = arith.addf %12, %14 : vector<16x32xf32>
      %c0_14 = arith.constant 0 : index
      %c0_15 = arith.constant 0 : index
      %16 = vector.load %arg5[%c0_14, %c0_15] : memref<16x32xbf16, #tpu.memory_space<vmem>>, vector<16x32xbf16>
      %17 = arith.extf %16 : vector<16x32xbf16> to vector<16x32xf32>
      %18 = arith.addf %15, %17 : vector<16x32xf32>
      %cst_16 = arith.constant dense<0.000000e+00> : vector<16xf32>
      %19 = vector.multi_reduction <add>, %18, %cst_16 [1] : vector<16x32xf32> to vector<16xf32>
      %20 = vector.shape_cast %19 : vector<16xf32> to vector<16x1xf32>
      %cst_17 = arith.constant 3.200000e+01 : f32
      %21 = vector.broadcast %cst_17 : f32 to vector<16x1xf32>
      %22 = arith.divf %20, %21 : vector<16x1xf32>
      %23 = vector.broadcast %22 : vector<16x1xf32> to vector<16x32xf32>
      %24 = arith.subf %18, %23 : vector<16x32xf32>
      %25 = arith.mulf %24, %24 : vector<16x32xf32>
      %cst_18 = arith.constant dense<0.000000e+00> : vector<16xf32>
      %26 = vector.multi_reduction <add>, %25, %cst_18 [1] : vector<16x32xf32> to vector<16xf32>
      %27 = vector.shape_cast %26 : vector<16xf32> to vector<16x1xf32>
      %cst_19 = arith.constant 3.200000e+01 : f32
      %28 = vector.broadcast %cst_19 : f32 to vector<16x1xf32>
      %29 = arith.divf %27, %28 : vector<16x1xf32>
      %30 = vector.broadcast %22 : vector<16x1xf32> to vector<16x32xf32>
      %31 = arith.subf %18, %30 : vector<16x32xf32>
      %cst_20 = arith.constant 9.99999974E-6 : f32
      %32 = vector.broadcast %cst_20 : f32 to vector<16x1xf32>
      %33 = arith.addf %29, %32 : vector<16x1xf32>
      %34 = math.rsqrt %33 : vector<16x1xf32>
      %35 = vector.broadcast %34 : vector<16x1xf32> to vector<16x32xf32>
      %36 = arith.mulf %31, %35 : vector<16x32xf32>
      %c0_21 = arith.constant 0 : index
      %c0_22 = arith.constant 0 : index
      %37 = vector.load %arg6[%c0_21, %c0_22] : memref<1x32xf32, #tpu.memory_space<vmem>>, vector<1x32xf32>
      %38 = vector.broadcast %37 : vector<1x32xf32> to vector<16x32xf32>
      %39 = arith.mulf %36, %38 : vector<16x32xf32>
      %c0_23 = arith.constant 0 : index
      %c0_24 = arith.constant 0 : index
      %40 = vector.load %arg7[%c0_23, %c0_24] : memref<1x32xf32, #tpu.memory_space<vmem>>, vector<1x32xf32>
      %41 = vector.broadcast %40 : vector<1x32xf32> to vector<16x32xf32>
      %42 = arith.addf %39, %41 : vector<16x32xf32>
      %43 = arith.truncf %42 : vector<16x32xf32> to vector<16x32xbf16>
      %c0_25 = arith.constant 0 : index
      %c0_26 = arith.constant 0 : index
      %44 = vector.load %arg8[%c0_25, %c0_26] : memref<16x32xbf16, #tpu.memory_space<vmem>>, vector<16x32xbf16>
      tpu.vector_store %arg8[%c0_25, %c0_26], %43 {strides = array<i32>} : memref<16x32xbf16, #tpu.memory_space<vmem>>, vector<16x32xbf16>,
    } else {
    }
    return
  }
  func.func @transform_0(%arg0: i32, %arg1: i32) -> (i32, i32) {
    %c0_i32 = arith.constant 0 : i32
    return %arg0, %arg1 : i32, i32
  }
  func.func @transform_1(%arg0: i32, %arg1: i32) -> (i32, i32) {
    %c0_i32 = arith.constant 0 : i32
    %c0_i32_0 = arith.constant 0 : i32
    return %arg1, %c0_i32 : i32, i32
  }
  func.func @transform_2(%arg0: i32, %arg1: i32) -> (i32, i32) {
    %c0_i32 = arith.constant 0 : i32
    %c0_i32_0 = arith.constant 0 : i32
    %c0_i32_1 = arith.constant 0 : i32
    return %c0_i32, %c0_i32_0 : i32, i32
  }
  func.func @transform_3(%arg0: i32, %arg1: i32) -> (i32, i32) {
    %c0_i32 = arith.constant 0 : i32
    %c0_i32_0 = arith.constant 0 : i32
    return %arg0, %c0_i32 : i32, i32
  }
  func.func @transform_4(%arg0: i32, %arg1: i32) -> (i32, i32) {
    %c0_i32 = arith.constant 0 : i32
    %c0_i32_0 = arith.constant 0 : i32
    %c0_i32_1 = arith.constant 0 : i32
    return %c0_i32, %c0_i32_0 : i32, i32
  }
  func.func @transform_5(%arg0: i32, %arg1: i32) -> (i32, i32) {
    %c0_i32 = arith.constant 0 : i32
    %c0_i32_0 = arith.constant 0 : i32
    %c0_i32_1 = arith.constant 0 : i32
    return %c0_i32, %c0_i32_0 : i32, i32
  }
  func.func @transform_6(%arg0: i32, %arg1: i32) -> (i32, i32) {
    %c0_i32 = arith.constant 0 : i32
    %c0_i32_0 = arith.constant 0 : i32
    return %arg0, %c0_i32 : i32, i32
  }
}

module attributes {stable_mosaic.version = 11 : i64} {
  func.func @kernel(%arg0: i32, %arg1: i32, %arg2: i32, %arg3: memref<16x32xbf16, #tpu.memory_space<vmem>>, %arg4: memref<32x96xbf16, #tpu.memory_space<vmem>>, %arg5: memref<1x96xf32, #tpu.memory_space<vmem>>, %arg6: memref<16x96xbf16, #tpu.memory_space<vmem>>, %arg7: memref<16x96xf32, #tpu.memory_space<vmem>>) attributes {dimension_semantics = [#tpu.dimension_semantics<parallel>, #tpu.dimension_semantics<parallel>, #tpu.dimension_semantics<arbitrary>], iteration_bounds = array<i64: 1, 1, 1>, scalar_prefetch = 0 : i64, scratch_operands = 1 : i64, tpu.core_type = #tpu.core_type<tc>, window_params = [{transform_indices = @transform_0, window_bounds = array<i64: 16, 32>}, {transform_indices = @transform_1, window_bounds = array<i64: 32, 96>}, {transform_indices = @transform_2, window_bounds = array<i64: 1, 96>}, {transform_indices = @transform_3, window_bounds = array<i64: 16, 96>}]} {
    %c0_i32 = arith.constant 0 : i32
    %0 = arith.cmpi eq, %arg2, %c0_i32 : i32
    %1 = arith.extui %0 : i1 to i32
    %c0_i32_0 = arith.constant 0 : i32
    %2 = arith.cmpi ne, %1, %c0_i32_0 : i32
    scf.if %2 {
      %cst_10 = arith.constant 0.000000e+00 : f32
      %12 = vector.broadcast %cst_10 : f32 to vector<16x96xf32>
      %c0_11 = arith.constant 0 : index
      %c0_12 = arith.constant 0 : index
      %13 = vector.load %arg7[%c0_11, %c0_12] : memref<16x96xf32, #tpu.memory_space<vmem>>, vector<16x96xf32>
      tpu.vector_store %arg7[%c0_11, %c0_12], %12 {strides = array<i32>} : memref<16x96xf32, #tpu.memory_space<vmem>>, vector<16x96xf32>,
    } else {
    }
    %c0 = arith.constant 0 : index
    %c0_1 = arith.constant 0 : index
    %3 = vector.load %arg7[%c0, %c0_1] : memref<16x96xf32, #tpu.memory_space<vmem>>, vector<16x96xf32>
    %c0_2 = arith.constant 0 : index
    %c0_3 = arith.constant 0 : index
    %4 = vector.load %arg3[%c0_2, %c0_3] : memref<16x32xbf16, #tpu.memory_space<vmem>>, vector<16x32xbf16>
    %c0_4 = arith.constant 0 : index
    %c0_5 = arith.constant 0 : index
    %5 = vector.load %arg4[%c0_4, %c0_5] : memref<32x96xbf16, #tpu.memory_space<vmem>>, vector<32x96xbf16>
    %cst = arith.constant dense<0.000000e+00> : vector<16x96xf32>
    %6 = tpu.matmul %4, %5, %cst {dimension_numbers = #tpu.dot_dimension_numbers<[1], [0], [0], [1], [0, 0, 1, 1], [], []>} : vector<16x32xbf16>, vector<32x96xbf16>, vector<16x96xf32> -> vector<16x96xf32>
    %7 = arith.addf %3, %6 : vector<16x96xf32>
    %c0_6 = arith.constant 0 : index
    %c0_7 = arith.constant 0 : index
    %8 = vector.load %arg7[%c0_6, %c0_7] : memref<16x96xf32, #tpu.memory_space<vmem>>, vector<16x96xf32>
    tpu.vector_store %arg7[%c0_6, %c0_7], %7 {strides = array<i32>} : memref<16x96xf32, #tpu.memory_space<vmem>>, vector<16x96xf32>,
    %c0_i32_8 = arith.constant 0 : i32
    %9 = arith.cmpi eq, %arg2, %c0_i32_8 : i32
    %10 = arith.extui %9 : i1 to i32
    %c0_i32_9 = arith.constant 0 : i32
    %11 = arith.cmpi ne, %10, %c0_i32_9 : i32
    scf.if %11 {
      %c0_10 = arith.constant 0 : index
      %c0_11 = arith.constant 0 : index
      %12 = vector.load %arg7[%c0_10, %c0_11] : memref<16x96xf32, #tpu.memory_space<vmem>>, vector<16x96xf32>
      %c0_12 = arith.constant 0 : index
      %c0_13 = arith.constant 0 : index
      %13 = vector.load %arg5[%c0_12, %c0_13] : memref<1x96xf32, #tpu.memory_space<vmem>>, vector<1x96xf32>
      %14 = vector.broadcast %13 : vector<1x96xf32> to vector<16x96xf32>
      %15 = arith.addf %12, %14 : vector<16x96xf32>
      %16 = arith.truncf %15 : vector<16x96xf32> to vector<16x96xbf16>
      %c0_14 = arith.constant 0 : index
      %c0_15 = arith.constant 0 : index
      %17 = vector.load %arg6[%c0_14, %c0_15] : memref<16x96xbf16, #tpu.memory_space<vmem>>, vector<16x96xbf16>
      tpu.vector_store %arg6[%c0_14, %c0_15], %16 {strides = array<i32>} : memref<16x96xbf16, #tpu.memory_space<vmem>>, vector<16x96xbf16>,
    } else {
    }
    return
  }
  func.func @transform_0(%arg0: i32, %arg1: i32, %arg2: i32) -> (i32, i32) {
    %c0_i32 = arith.constant 0 : i32
    return %arg0, %arg2 : i32, i32
  }
  func.func @transform_1(%arg0: i32, %arg1: i32, %arg2: i32) -> (i32, i32) {
    %c0_i32 = arith.constant 0 : i32
    return %arg2, %arg1 : i32, i32
  }
  func.func @transform_2(%arg0: i32, %arg1: i32, %arg2: i32) -> (i32, i32) {
    %c0_i32 = arith.constant 0 : i32
    %c0_i32_0 = arith.constant 0 : i32
    return %c0_i32, %arg1 : i32, i32
  }
  func.func @transform_3(%arg0: i32, %arg1: i32, %arg2: i32) -> (i32, i32) {
    %c0_i32 = arith.constant 0 : i32
    return %arg0, %arg1 : i32, i32
  }
}

module attributes {stable_mosaic.version = 11 : i64} {
  func.func @_linear_add_ln_kernel(%arg0: i32, %arg1: i32, %arg2: memref<16x32xbf16, #tpu.memory_space<vmem>>, %arg3: memref<32x32xbf16, #tpu.memory_space<vmem>>, %arg4: memref<1x32xf32, #tpu.memory_space<vmem>>, %arg5: memref<16x32xbf16, #tpu.memory_space<vmem>>, %arg6: memref<1x32xf32, #tpu.memory_space<vmem>>, %arg7: memref<1x32xf32, #tpu.memory_space<vmem>>, %arg8: memref<16x32xbf16, #tpu.memory_space<vmem>>, %arg9: memref<16x32xf32, #tpu.memory_space<vmem>>) attributes {dimension_semantics = [#tpu.dimension_semantics<parallel>, #tpu.dimension_semantics<arbitrary>], iteration_bounds = array<i64: 1, 1>, scalar_prefetch = 0 : i64, scratch_operands = 1 : i64, tpu.core_type = #tpu.core_type<tc>, window_params = [{transform_indices = @transform_0, window_bounds = array<i64: 16, 32>}, {transform_indices = @transform_1, window_bounds = array<i64: 32, 32>}, {pipeline_mode = #tpu.pipeline_mode<synchronous>, transform_indices = @transform_2, window_bounds = array<i64: 1, 32>}, {transform_indices = @transform_3, window_bounds = array<i64: 16, 32>}, {pipeline_mode = #tpu.pipeline_mode<synchronous>, transform_indices = @transform_4, window_bounds = array<i64: 1, 32>}, {pipeline_mode = #tpu.pipeline_mode<synchronous>, transform_indices = @transform_5, window_bounds = array<i64: 1, 32>}, {transform_indices = @transform_6, window_bounds = array<i64: 16, 32>}]} {
    %c0_i32 = arith.constant 0 : i32
    %0 = arith.cmpi eq, %arg1, %c0_i32 : i32
    %1 = arith.extui %0 : i1 to i32
    %c0_i32_0 = arith.constant 0 : i32
    %2 = arith.cmpi ne, %1, %c0_i32_0 : i32
    scf.if %2 {
      %cst_10 = arith.constant 0.000000e+00 : f32
      %12 = vector.broadcast %cst_10 : f32 to vector<16x32xf32>
      %c0_11 = arith.constant 0 : index
      %c0_12 = arith.constant 0 : index
      %13 = vector.load %arg9[%c0_11, %c0_12] : memref<16x32xf32, #tpu.memory_space<vmem>>, vector<16x32xf32>
      tpu.vector_store %arg9[%c0_11, %c0_12], %12 {strides = array<i32>} : memref<16x32xf32, #tpu.memory_space<vmem>>, vector<16x32xf32>,
    } else {
    }
    %c0 = arith.constant 0 : index
    %c0_1 = arith.constant 0 : index
    %3 = vector.load %arg9[%c0, %c0_1] : memref<16x32xf32, #tpu.memory_space<vmem>>, vector<16x32xf32>
    %c0_2 = arith.constant 0 : index
    %c0_3 = arith.constant 0 : index
    %4 = vector.load %arg2[%c0_2, %c0_3] : memref<16x32xbf16, #tpu.memory_space<vmem>>, vector<16x32xbf16>
    %c0_4 = arith.constant 0 : index
    %c0_5 = arith.constant 0 : index
    %5 = vector.load %arg3[%c0_4, %c0_5] : memref<32x32xbf16, #tpu.memory_space<vmem>>, vector<32x32xbf16>
    %cst = arith.constant dense<0.000000e+00> : vector<16x32xf32>
    %6 = tpu.matmul %4, %5, %cst {dimension_numbers = #tpu.dot_dimension_numbers<[1], [0], [0], [1], [0, 0, 1, 1], [], []>} : vector<16x32xbf16>, vector<32x32xbf16>, vector<16x32xf32> -> vector<16x32xf32>
    %7 = arith.addf %3, %6 : vector<16x32xf32>
    %c0_6 = arith.constant 0 : index
    %c0_7 = arith.constant 0 : index
    %8 = vector.load %arg9[%c0_6, %c0_7] : memref<16x32xf32, #tpu.memory_space<vmem>>, vector<16x32xf32>
    tpu.vector_store %arg9[%c0_6, %c0_7], %7 {strides = array<i32>} : memref<16x32xf32, #tpu.memory_space<vmem>>, vector<16x32xf32>,
    %c0_i32_8 = arith.constant 0 : i32
    %9 = arith.cmpi eq, %arg1, %c0_i32_8 : i32
    %10 = arith.extui %9 : i1 to i32
    %c0_i32_9 = arith.constant 0 : i32
    %11 = arith.cmpi ne, %10, %c0_i32_9 : i32
    scf.if %11 {
      %c0_10 = arith.constant 0 : index
      %c0_11 = arith.constant 0 : index
      %12 = vector.load %arg9[%c0_10, %c0_11] : memref<16x32xf32, #tpu.memory_space<vmem>>, vector<16x32xf32>
      %c0_12 = arith.constant 0 : index
      %c0_13 = arith.constant 0 : index
      %13 = vector.load %arg4[%c0_12, %c0_13] : memref<1x32xf32, #tpu.memory_space<vmem>>, vector<1x32xf32>
      %14 = vector.broadcast %13 : vector<1x32xf32> to vector<16x32xf32>
      %15 = arith.addf %12, %14 : vector<16x32xf32>
      %c0_14 = arith.constant 0 : index
      %c0_15 = arith.constant 0 : index
      %16 = vector.load %arg5[%c0_14, %c0_15] : memref<16x32xbf16, #tpu.memory_space<vmem>>, vector<16x32xbf16>
      %17 = arith.extf %16 : vector<16x32xbf16> to vector<16x32xf32>
      %18 = arith.addf %15, %17 : vector<16x32xf32>
      %cst_16 = arith.constant dense<0.000000e+00> : vector<16xf32>
      %19 = vector.multi_reduction <add>, %18, %cst_16 [1] : vector<16x32xf32> to vector<16xf32>
      %20 = vector.shape_cast %19 : vector<16xf32> to vector<16x1xf32>
      %cst_17 = arith.constant 3.200000e+01 : f32
      %21 = vector.broadcast %cst_17 : f32 to vector<16x1xf32>
      %22 = arith.divf %20, %21 : vector<16x1xf32>
      %23 = vector.broadcast %22 : vector<16x1xf32> to vector<16x32xf32>
      %24 = arith.subf %18, %23 : vector<16x32xf32>
      %25 = arith.mulf %24, %24 : vector<16x32xf32>
      %cst_18 = arith.constant dense<0.000000e+00> : vector<16xf32>
      %26 = vector.multi_reduction <add>, %25, %cst_18 [1] : vector<16x32xf32> to vector<16xf32>
      %27 = vector.shape_cast %26 : vector<16xf32> to vector<16x1xf32>
      %cst_19 = arith.constant 3.200000e+01 : f32
      %28 = vector.broadcast %cst_19 : f32 to vector<16x1xf32>
      %29 = arith.divf %27, %28 : vector<16x1xf32>
      %30 = vector.broadcast %22 : vector<16x1xf32> to vector<16x32xf32>
      %31 = arith.subf %18, %30 : vector<16x32xf32>
      %cst_20 = arith.constant 9.99999974E-6 : f32
      %32 = vector.broadcast %cst_20 : f32 to vector<16x1xf32>
      %33 = arith.addf %29, %32 : vector<16x1xf32>
      %34 = math.rsqrt %33 : vector<16x1xf32>
      %35 = vector.broadcast %34 : vector<16x1xf32> to vector<16x32xf32>
      %36 = arith.mulf %31, %35 : vector<16x32xf32>
      %c0_21 = arith.constant 0 : index
      %c0_22 = arith.constant 0 : index
      %37 = vector.load %arg6[%c0_21, %c0_22] : memref<1x32xf32, #tpu.memory_space<vmem>>, vector<1x32xf32>
      %38 = vector.broadcast %37 : vector<1x32xf32> to vector<16x32xf32>
      %39 = arith.mulf %36, %38 : vector<16x32xf32>
      %c0_23 = arith.constant 0 : index
      %c0_24 = arith.constant 0 : index
      %40 = vector.load %arg7[%c0_23, %c0_24] : memref<1x32xf32, #tpu.memory_space<vmem>>, vector<1x32xf32>
      %41 = vector.broadcast %40 : vector<1x32xf32> to vector<16x32xf32>
      %42 = arith.addf %39, %41 : vector<16x32xf32>
      %43 = arith.truncf %42 : vector<16x32xf32> to vector<16x32xbf16>
      %c0_25 = arith.constant 0 : index
      %c0_26 = arith.constant 0 : index
      %44 = vector.load %arg8[%c0_25, %c0_26] : memref<16x32xbf16, #tpu.memory_space<vmem>>, vector<16x32xbf16>
      tpu.vector_store %arg8[%c0_25, %c0_26], %43 {strides = array<i32>} : memref<16x32xbf16, #tpu.memory_space<vmem>>, vector<16x32xbf16>,
    } else {
    }
    return
  }
  func.func @transform_0(%arg0: i32, %arg1: i32) -> (i32, i32) {
    %c0_i32 = arith.constant 0 : i32
    return %arg0, %arg1 : i32, i32
  }
  func.func @transform_1(%arg0: i32, %arg1: i32) -> (i32, i32) {
    %c0_i32 = arith.constant 0 : i32
    %c0_i32_0 = arith.constant 0 : i32
    return %arg1, %c0_i32 : i32, i32
  }
  func.func @transform_2(%arg0: i32, %arg1: i32) -> (i32, i32) {
    %c0_i32 = arith.constant 0 : i32
    %c0_i32_0 = arith.constant 0 : i32
    %c0_i32_1 = arith.constant 0 : i32
    return %c0_i32, %c0_i32_0 : i32, i32
  }
  func.func @transform_3(%arg0: i32, %arg1: i32) -> (i32, i32) {
    %c0_i32 = arith.constant 0 : i32
    %c0_i32_0 = arith.constant 0 : i32
    return %arg0, %c0_i32 : i32, i32
  }
  func.func @transform_4(%arg0: i32, %arg1: i32) -> (i32, i32) {
    %c0_i32 = arith.constant 0 : i32
    %c0_i32_0 = arith.constant 0 : i32
    %c0_i32_1 = arith.constant 0 : i32
    return %c0_i32, %c0_i32_0 : i32, i32
  }
  func.func @transform_5(%arg0: i32, %arg1: i32) -> (i32, i32) {
    %c0_i32 = arith.constant 0 : i32
    %c0_i32_0 = arith.constant 0 : i32
    %c0_i32_1 = arith.constant 0 : i32
    return %c0_i32, %c0_i32_0 : i32, i32
  }
  func.func @transform_6(%arg0: i32, %arg1: i32) -> (i32, i32) {
    %c0_i32 = arith.constant 0 : i32
    %c0_i32_0 = arith.constant 0 : i32
    return %arg0, %c0_i32 : i32, i32
  }
}

module attributes {stable_mosaic.version = 11 : i64} {
  func.func @kernel(%arg0: i32, %arg1: i32, %arg2: i32, %arg3: memref<16x32xbf16, #tpu.memory_space<vmem>>, %arg4: memref<32x64xbf16, #tpu.memory_space<vmem>>, %arg5: memref<1x64xf32, #tpu.memory_space<vmem>>, %arg6: memref<16x64xbf16, #tpu.memory_space<vmem>>, %arg7: memref<16x64xf32, #tpu.memory_space<vmem>>) attributes {dimension_semantics = [#tpu.dimension_semantics<parallel>, #tpu.dimension_semantics<parallel>, #tpu.dimension_semantics<arbitrary>], iteration_bounds = array<i64: 1, 1, 1>, scalar_prefetch = 0 : i64, scratch_operands = 1 : i64, tpu.core_type = #tpu.core_type<tc>, window_params = [{transform_indices = @transform_0, window_bounds = array<i64: 16, 32>}, {transform_indices = @transform_1, window_bounds = array<i64: 32, 64>}, {transform_indices = @transform_2, window_bounds = array<i64: 1, 64>}, {transform_indices = @transform_3, window_bounds = array<i64: 16, 64>}]} {
    %c0_i32 = arith.constant 0 : i32
    %0 = arith.cmpi eq, %arg2, %c0_i32 : i32
    %1 = arith.extui %0 : i1 to i32
    %c0_i32_0 = arith.constant 0 : i32
    %2 = arith.cmpi ne, %1, %c0_i32_0 : i32
    scf.if %2 {
      %cst_10 = arith.constant 0.000000e+00 : f32
      %12 = vector.broadcast %cst_10 : f32 to vector<16x64xf32>
      %c0_11 = arith.constant 0 : index
      %c0_12 = arith.constant 0 : index
      %13 = vector.load %arg7[%c0_11, %c0_12] : memref<16x64xf32, #tpu.memory_space<vmem>>, vector<16x64xf32>
      tpu.vector_store %arg7[%c0_11, %c0_12], %12 {strides = array<i32>} : memref<16x64xf32, #tpu.memory_space<vmem>>, vector<16x64xf32>,
    } else {
    }
    %c0 = arith.constant 0 : index
    %c0_1 = arith.constant 0 : index
    %3 = vector.load %arg7[%c0, %c0_1] : memref<16x64xf32, #tpu.memory_space<vmem>>, vector<16x64xf32>
    %c0_2 = arith.constant 0 : index
    %c0_3 = arith.constant 0 : index
    %4 = vector.load %arg3[%c0_2, %c0_3] : memref<16x32xbf16, #tpu.memory_space<vmem>>, vector<16x32xbf16>
    %c0_4 = arith.constant 0 : index
    %c0_5 = arith.constant 0 : index
    %5 = vector.load %arg4[%c0_4, %c0_5] : memref<32x64xbf16, #tpu.memory_space<vmem>>, vector<32x64xbf16>
    %cst = arith.constant dense<0.000000e+00> : vector<16x64xf32>
    %6 = tpu.matmul %4, %5, %cst {dimension_numbers = #tpu.dot_dimension_numbers<[1], [0], [0], [1], [0, 0, 1, 1], [], []>} : vector<16x32xbf16>, vector<32x64xbf16>, vector<16x64xf32> -> vector<16x64xf32>
    %7 = arith.addf %3, %6 : vector<16x64xf32>
    %c0_6 = arith.constant 0 : index
    %c0_7 = arith.constant 0 : index
    %8 = vector.load %arg7[%c0_6, %c0_7] : memref<16x64xf32, #tpu.memory_space<vmem>>, vector<16x64xf32>
    tpu.vector_store %arg7[%c0_6, %c0_7], %7 {strides = array<i32>} : memref<16x64xf32, #tpu.memory_space<vmem>>, vector<16x64xf32>,
    %c0_i32_8 = arith.constant 0 : i32
    %9 = arith.cmpi eq, %arg2, %c0_i32_8 : i32
    %10 = arith.extui %9 : i1 to i32
    %c0_i32_9 = arith.constant 0 : i32
    %11 = arith.cmpi ne, %10, %c0_i32_9 : i32
    scf.if %11 {
      %c0_10 = arith.constant 0 : index
      %c0_11 = arith.constant 0 : index
      %12 = vector.load %arg7[%c0_10, %c0_11] : memref<16x64xf32, #tpu.memory_space<vmem>>, vector<16x64xf32>
      %c0_12 = arith.constant 0 : index
      %c0_13 = arith.constant 0 : index
      %13 = vector.load %arg5[%c0_12, %c0_13] : memref<1x64xf32, #tpu.memory_space<vmem>>, vector<1x64xf32>
      %14 = vector.broadcast %13 : vector<1x64xf32> to vector<16x64xf32>
      %15 = arith.addf %12, %14 : vector<16x64xf32>
      %cst_14 = arith.constant 0.000000e+00 : f32
      %16 = vector.broadcast %cst_14 : f32 to vector<16x64xf32>
      %17 = arith.maximumf %15, %16 : vector<16x64xf32>
      %18 = arith.truncf %17 : vector<16x64xf32> to vector<16x64xbf16>
      %c0_15 = arith.constant 0 : index
      %c0_16 = arith.constant 0 : index
      %19 = vector.load %arg6[%c0_15, %c0_16] : memref<16x64xbf16, #tpu.memory_space<vmem>>, vector<16x64xbf16>
      tpu.vector_store %arg6[%c0_15, %c0_16], %18 {strides = array<i32>} : memref<16x64xbf16, #tpu.memory_space<vmem>>, vector<16x64xbf16>,
    } else {
    }
    return
  }
  func.func @transform_0(%arg0: i32, %arg1: i32, %arg2: i32) -> (i32, i32) {
    %c0_i32 = arith.constant 0 : i32
    return %arg0, %arg2 : i32, i32
  }
  func.func @transform_1(%arg0: i32, %arg1: i32, %arg2: i32) -> (i32, i32) {
    %c0_i32 = arith.constant 0 : i32
    return %arg2, %arg1 : i32, i32
  }
  func.func @transform_2(%arg0: i32, %arg1: i32, %arg2: i32) -> (i32, i32) {
    %c0_i32 = arith.constant 0 : i32
    %c0_i32_0 = arith.constant 0 : i32
    return %c0_i32, %arg1 : i32, i32
  }
  func.func @transform_3(%arg0: i32, %arg1: i32, %arg2: i32) -> (i32, i32) {
    %c0_i32 = arith.constant 0 : i32
    return %arg0, %arg1 : i32, i32
  }
}

module attributes {stable_mosaic.version = 11 : i64} {
  func.func @_linear_add_ln_kernel(%arg0: i32, %arg1: i32, %arg2: memref<16x64xbf16, #tpu.memory_space<vmem>>, %arg3: memref<64x32xbf16, #tpu.memory_space<vmem>>, %arg4: memref<1x32xf32, #tpu.memory_space<vmem>>, %arg5: memref<16x32xbf16, #tpu.memory_space<vmem>>, %arg6: memref<1x32xf32, #tpu.memory_space<vmem>>, %arg7: memref<1x32xf32, #tpu.memory_space<vmem>>, %arg8: memref<16x32xbf16, #tpu.memory_space<vmem>>, %arg9: memref<16x32xf32, #tpu.memory_space<vmem>>) attributes {dimension_semantics = [#tpu.dimension_semantics<parallel>, #tpu.dimension_semantics<arbitrary>], iteration_bounds = array<i64: 1, 1>, scalar_prefetch = 0 : i64, scratch_operands = 1 : i64, tpu.core_type = #tpu.core_type<tc>, window_params = [{transform_indices = @transform_0, window_bounds = array<i64: 16, 64>}, {transform_indices = @transform_1, window_bounds = array<i64: 64, 32>}, {pipeline_mode = #tpu.pipeline_mode<synchronous>, transform_indices = @transform_2, window_bounds = array<i64: 1, 32>}, {transform_indices = @transform_3, window_bounds = array<i64: 16, 32>}, {pipeline_mode = #tpu.pipeline_mode<synchronous>, transform_indices = @transform_4, window_bounds = array<i64: 1, 32>}, {pipeline_mode = #tpu.pipeline_mode<synchronous>, transform_indices = @transform_5, window_bounds = array<i64: 1, 32>}, {transform_indices = @transform_6, window_bounds = array<i64: 16, 32>}]} {
    %c0_i32 = arith.constant 0 : i32
    %0 = arith.cmpi eq, %arg1, %c0_i32 : i32
    %1 = arith.extui %0 : i1 to i32
    %c0_i32_0 = arith.constant 0 : i32
    %2 = arith.cmpi ne, %1, %c0_i32_0 : i32
    scf.if %2 {
      %cst_10 = arith.constant 0.000000e+00 : f32
      %12 = vector.broadcast %cst_10 : f32 to vector<16x32xf32>
      %c0_11 = arith.constant 0 : index
      %c0_12 = arith.constant 0 : index
      %13 = vector.load %arg9[%c0_11, %c0_12] : memref<16x32xf32, #tpu.memory_space<vmem>>, vector<16x32xf32>
      tpu.vector_store %arg9[%c0_11, %c0_12], %12 {strides = array<i32>} : memref<16x32xf32, #tpu.memory_space<vmem>>, vector<16x32xf32>,
    } else {
    }
    %c0 = arith.constant 0 : index
    %c0_1 = arith.constant 0 : index
    %3 = vector.load %arg9[%c0, %c0_1] : memref<16x32xf32, #tpu.memory_space<vmem>>, vector<16x32xf32>
    %c0_2 = arith.constant 0 : index
    %c0_3 = arith.constant 0 : index
    %4 = vector.load %arg2[%c0_2, %c0_3] : memref<16x64xbf16, #tpu.memory_space<vmem>>, vector<16x64xbf16>
    %c0_4 = arith.constant 0 : index
    %c0_5 = arith.constant 0 : index
    %5 = vector.load %arg3[%c0_4, %c0_5] : memref<64x32xbf16, #tpu.memory_space<vmem>>, vector<64x32xbf16>
    %cst = arith.constant dense<0.000000e+00> : vector<16x32xf32>
    %6 = tpu.matmul %4, %5, %cst {dimension_numbers = #tpu.dot_dimension_numbers<[1], [0], [0], [1], [0, 0, 1, 1], [], []>} : vector<16x64xbf16>, vector<64x32xbf16>, vector<16x32xf32> -> vector<16x32xf32>
    %7 = arith.addf %3, %6 : vector<16x32xf32>
    %c0_6 = arith.constant 0 : index
    %c0_7 = arith.constant 0 : index
    %8 = vector.load %arg9[%c0_6, %c0_7] : memref<16x32xf32, #tpu.memory_space<vmem>>, vector<16x32xf32>
    tpu.vector_store %arg9[%c0_6, %c0_7], %7 {strides = array<i32>} : memref<16x32xf32, #tpu.memory_space<vmem>>, vector<16x32xf32>,
    %c0_i32_8 = arith.constant 0 : i32
    %9 = arith.cmpi eq, %arg1, %c0_i32_8 : i32
    %10 = arith.extui %9 : i1 to i32
    %c0_i32_9 = arith.constant 0 : i32
    %11 = arith.cmpi ne, %10, %c0_i32_9 : i32
    scf.if %11 {
      %c0_10 = arith.constant 0 : index
      %c0_11 = arith.constant 0 : index
      %12 = vector.load %arg9[%c0_10, %c0_11] : memref<16x32xf32, #tpu.memory_space<vmem>>, vector<16x32xf32>
      %c0_12 = arith.constant 0 : index
      %c0_13 = arith.constant 0 : index
      %13 = vector.load %arg4[%c0_12, %c0_13] : memref<1x32xf32, #tpu.memory_space<vmem>>, vector<1x32xf32>
      %14 = vector.broadcast %13 : vector<1x32xf32> to vector<16x32xf32>
      %15 = arith.addf %12, %14 : vector<16x32xf32>
      %c0_14 = arith.constant 0 : index
      %c0_15 = arith.constant 0 : index
      %16 = vector.load %arg5[%c0_14, %c0_15] : memref<16x32xbf16, #tpu.memory_space<vmem>>, vector<16x32xbf16>
      %17 = arith.extf %16 : vector<16x32xbf16> to vector<16x32xf32>
      %18 = arith.addf %15, %17 : vector<16x32xf32>
      %cst_16 = arith.constant dense<0.000000e+00> : vector<16xf32>
      %19 = vector.multi_reduction <add>, %18, %cst_16 [1] : vector<16x32xf32> to vector<16xf32>
      %20 = vector.shape_cast %19 : vector<16xf32> to vector<16x1xf32>
      %cst_17 = arith.constant 3.200000e+01 : f32
      %21 = vector.broadcast %cst_17 : f32 to vector<16x1xf32>
      %22 = arith.divf %20, %21 : vector<16x1xf32>
      %23 = vector.broadcast %22 : vector<16x1xf32> to vector<16x32xf32>
      %24 = arith.subf %18, %23 : vector<16x32xf32>
      %25 = arith.mulf %24, %24 : vector<16x32xf32>
      %cst_18 = arith.constant dense<0.000000e+00> : vector<16xf32>
      %26 = vector.multi_reduction <add>, %25, %cst_18 [1] : vector<16x32xf32> to vector<16xf32>
      %27 = vector.shape_cast %26 : vector<16xf32> to vector<16x1xf32>
      %cst_19 = arith.constant 3.200000e+01 : f32
      %28 = vector.broadcast %cst_19 : f32 to vector<16x1xf32>
      %29 = arith.divf %27, %28 : vector<16x1xf32>
      %30 = vector.broadcast %22 : vector<16x1xf32> to vector<16x32xf32>
      %31 = arith.subf %18, %30 : vector<16x32xf32>
      %cst_20 = arith.constant 9.99999974E-6 : f32
      %32 = vector.broadcast %cst_20 : f32 to vector<16x1xf32>
      %33 = arith.addf %29, %32 : vector<16x1xf32>
      %34 = math.rsqrt %33 : vector<16x1xf32>
      %35 = vector.broadcast %34 : vector<16x1xf32> to vector<16x32xf32>
      %36 = arith.mulf %31, %35 : vector<16x32xf32>
      %c0_21 = arith.constant 0 : index
      %c0_22 = arith.constant 0 : index
      %37 = vector.load %arg6[%c0_21, %c0_22] : memref<1x32xf32, #tpu.memory_space<vmem>>, vector<1x32xf32>
      %38 = vector.broadcast %37 : vector<1x32xf32> to vector<16x32xf32>
      %39 = arith.mulf %36, %38 : vector<16x32xf32>
      %c0_23 = arith.constant 0 : index
      %c0_24 = arith.constant 0 : index
      %40 = vector.load %arg7[%c0_23, %c0_24] : memref<1x32xf32, #tpu.memory_space<vmem>>, vector<1x32xf32>
      %41 = vector.broadcast %40 : vector<1x32xf32> to vector<16x32xf32>
      %42 = arith.addf %39, %41 : vector<16x32xf32>
      %43 = arith.truncf %42 : vector<16x32xf32> to vector<16x32xbf16>
      %c0_25 = arith.constant 0 : index
      %c0_26 = arith.constant 0 : index
      %44 = vector.load %arg8[%c0_25, %c0_26] : memref<16x32xbf16, #tpu.memory_space<vmem>>, vector<16x32xbf16>
      tpu.vector_store %arg8[%c0_25, %c0_26], %43 {strides = array<i32>} : memref<16x32xbf16, #tpu.memory_space<vmem>>, vector<16x32xbf16>,
    } else {
    }
    return
  }
  func.func @transform_0(%arg0: i32, %arg1: i32) -> (i32, i32) {
    %c0_i32 = arith.constant 0 : i32
    return %arg0, %arg1 : i32, i32
  }
  func.func @transform_1(%arg0: i32, %arg1: i32) -> (i32, i32) {
    %c0_i32 = arith.constant 0 : i32
    %c0_i32_0 = arith.constant 0 : i32
    return %arg1, %c0_i32 : i32, i32
  }
  func.func @transform_2(%arg0: i32, %arg1: i32) -> (i32, i32) {
    %c0_i32 = arith.constant 0 : i32
    %c0_i32_0 = arith.constant 0 : i32
    %c0_i32_1 = arith.constant 0 : i32
    return %c0_i32, %c0_i32_0 : i32, i32
  }
  func.func @transform_3(%arg0: i32, %arg1: i32) -> (i32, i32) {
    %c0_i32 = arith.constant 0 : i32
    %c0_i32_0 = arith.constant 0 : i32
    return %arg0, %c0_i32 : i32, i32
  }
  func.func @transform_4(%arg0: i32, %arg1: i32) -> (i32, i32) {
    %c0_i32 = arith.constant 0 : i32
    %c0_i32_0 = arith.constant 0 : i32
    %c0_i32_1 = arith.constant 0 : i32
    return %c0_i32, %c0_i32_0 : i32, i32
  }
  func.func @transform_5(%arg0: i32, %arg1: i32) -> (i32, i32) {
    %c0_i32 = arith.constant 0 : i32
    %c0_i32_0 = arith.constant 0 : i32
    %c0_i32_1 = arith.constant 0 : i32
    return %c0_i32, %c0_i32_0 : i32, i32
  }
  func.func @transform_6(%arg0: i32, %arg1: i32) -> (i32, i32) {
    %c0_i32 = arith.constant 0 : i32
    %c0_i32_0 = arith.constant 0 : i32
    return %arg0, %c0_i32 : i32, i32
  }
}

module attributes {stable_mosaic.version = 11 : i64} {
  func.func @kernel(%arg0: i32, %arg1: i32, %arg2: i32, %arg3: memref<16x32xbf16, #tpu.memory_space<vmem>>, %arg4: memref<32x64xbf16, #tpu.memory_space<vmem>>, %arg5: memref<1x64xf32, #tpu.memory_space<vmem>>, %arg6: memref<16x64xbf16, #tpu.memory_space<vmem>>, %arg7: memref<16x64xf32, #tpu.memory_space<vmem>>) attributes {dimension_semantics = [#tpu.dimension_semantics<parallel>, #tpu.dimension_semantics<parallel>, #tpu.dimension_semantics<arbitrary>], iteration_bounds = array<i64: 1, 1, 1>, scalar_prefetch = 0 : i64, scratch_operands = 1 : i64, tpu.core_type = #tpu.core_type<tc>, window_params = [{transform_indices = @transform_0, window_bounds = array<i64: 16, 32>}, {transform_indices = @transform_1, window_bounds = array<i64: 32, 64>}, {transform_indices = @transform_2, window_bounds = array<i64: 1, 64>}, {transform_indices = @transform_3, window_bounds = array<i64: 16, 64>}]} {
    %c0_i32 = arith.constant 0 : i32
    %0 = arith.cmpi eq, %arg2, %c0_i32 : i32
    %1 = arith.extui %0 : i1 to i32
    %c0_i32_0 = arith.constant 0 : i32
    %2 = arith.cmpi ne, %1, %c0_i32_0 : i32
    scf.if %2 {
      %cst_10 = arith.constant 0.000000e+00 : f32
      %12 = vector.broadcast %cst_10 : f32 to vector<16x64xf32>
      %c0_11 = arith.constant 0 : index
      %c0_12 = arith.constant 0 : index
      %13 = vector.load %arg7[%c0_11, %c0_12] : memref<16x64xf32, #tpu.memory_space<vmem>>, vector<16x64xf32>
      tpu.vector_store %arg7[%c0_11, %c0_12], %12 {strides = array<i32>} : memref<16x64xf32, #tpu.memory_space<vmem>>, vector<16x64xf32>,
    } else {
    }
    %c0 = arith.constant 0 : index
    %c0_1 = arith.constant 0 : index
    %3 = vector.load %arg7[%c0, %c0_1] : memref<16x64xf32, #tpu.memory_space<vmem>>, vector<16x64xf32>
    %c0_2 = arith.constant 0 : index
    %c0_3 = arith.constant 0 : index
    %4 = vector.load %arg3[%c0_2, %c0_3] : memref<16x32xbf16, #tpu.memory_space<vmem>>, vector<16x32xbf16>
    %c0_4 = arith.constant 0 : index
    %c0_5 = arith.constant 0 : index
    %5 = vector.load %arg4[%c0_4, %c0_5] : memref<32x64xbf16, #tpu.memory_space<vmem>>, vector<32x64xbf16>
    %cst = arith.constant dense<0.000000e+00> : vector<16x64xf32>
    %6 = tpu.matmul %4, %5, %cst {dimension_numbers = #tpu.dot_dimension_numbers<[1], [0], [0], [1], [0, 0, 1, 1], [], []>} : vector<16x32xbf16>, vector<32x64xbf16>, vector<16x64xf32> -> vector<16x64xf32>
    %7 = arith.addf %3, %6 : vector<16x64xf32>
    %c0_6 = arith.constant 0 : index
    %c0_7 = arith.constant 0 : index
    %8 = vector.load %arg7[%c0_6, %c0_7] : memref<16x64xf32, #tpu.memory_space<vmem>>, vector<16x64xf32>
    tpu.vector_store %arg7[%c0_6, %c0_7], %7 {strides = array<i32>} : memref<16x64xf32, #tpu.memory_space<vmem>>, vector<16x64xf32>,
    %c0_i32_8 = arith.constant 0 : i32
    %9 = arith.cmpi eq, %arg2, %c0_i32_8 : i32
    %10 = arith.extui %9 : i1 to i32
    %c0_i32_9 = arith.constant 0 : i32
    %11 = arith.cmpi ne, %10, %c0_i32_9 : i32
    scf.if %11 {
      %c0_10 = arith.constant 0 : index
      %c0_11 = arith.constant 0 : index
      %12 = vector.load %arg7[%c0_10, %c0_11] : memref<16x64xf32, #tpu.memory_space<vmem>>, vector<16x64xf32>
      %c0_12 = arith.constant 0 : index
      %c0_13 = arith.constant 0 : index
      %13 = vector.load %arg5[%c0_12, %c0_13] : memref<1x64xf32, #tpu.memory_space<vmem>>, vector<1x64xf32>
      %14 = vector.broadcast %13 : vector<1x64xf32> to vector<16x64xf32>
      %15 = arith.addf %12, %14 : vector<16x64xf32>
      %16 = arith.truncf %15 : vector<16x64xf32> to vector<16x64xbf16>
      %c0_14 = arith.constant 0 : index
      %c0_15 = arith.constant 0 : index
      %17 = vector.load %arg6[%c0_14, %c0_15] : memref<16x64xbf16, #tpu.memory_space<vmem>>, vector<16x64xbf16>
      tpu.vector_store %arg6[%c0_14, %c0_15], %16 {strides = array<i32>} : memref<16x64xbf16, #tpu.memory_space<vmem>>, vector<16x64xbf16>,
    } else {
    }
    return
  }
  func.func @transform_0(%arg0: i32, %arg1: i32, %arg2: i32) -> (i32, i32) {
    %c0_i32 = arith.constant 0 : i32
    return %arg0, %arg2 : i32, i32
  }
  func.func @transform_1(%arg0: i32, %arg1: i32, %arg2: i32) -> (i32, i32) {
    %c0_i32 = arith.constant 0 : i32
    return %arg2, %arg1 : i32, i32
  }
  func.func @transform_2(%arg0: i32, %arg1: i32, %arg2: i32) -> (i32, i32) {
    %c0_i32 = arith.constant 0 : i32
    %c0_i32_0 = arith.constant 0 : i32
    return %c0_i32, %arg1 : i32, i32
  }
  func.func @transform_3(%arg0: i32, %arg1: i32, %arg2: i32) -> (i32, i32) {
    %c0_i32 = arith.constant 0 : i32
    return %arg0, %arg1 : i32, i32
  }
}

module attributes {stable_mosaic.version = 11 : i64} {
  func.func @kernel(%arg0: i32, %arg1: i32, %arg2: i32, %arg3: memref<1x8x96xbf16, #tpu.memory_space<vmem>>, %arg4: memref<1x8x96xbf16, #tpu.memory_space<vmem>>, %arg5: memref<1x8x1xf32, #tpu.memory_space<vmem>>, %arg6: memref<1x8x32xbf16, #tpu.memory_space<vmem>>, %arg7: memref<4x8x1xf32, #tpu.memory_space<vmem>>, %arg8: memref<4x8x1xf32, #tpu.memory_space<vmem>>, %arg9: memref<4x8x8xf32, #tpu.memory_space<vmem>>) attributes {dimension_semantics = [#tpu.dimension_semantics<parallel>, #tpu.dimension_semantics<parallel>, #tpu.dimension_semantics<arbitrary>], iteration_bounds = array<i64: 2, 1, 1>, scalar_prefetch = 0 : i64, scratch_operands = 3 : i64, tpu.core_type = #tpu.core_type<tc>, window_params = [{transform_indices = @transform_0, window_bounds = array<i64: 1, 8, 96>}, {transform_indices = @transform_1, window_bounds = array<i64: 1, 8, 96>}, {transform_indices = @transform_2, window_bounds = array<i64: 1, 8, 1>}, {transform_indices = @transform_3, window_bounds = array<i64: 1, 8, 32>}]} {
    %c0_i32 = arith.constant 0 : i32
    %0 = arith.cmpi eq, %arg2, %c0_i32 : i32
    %1 = arith.extui %0 : i1 to i32
    %c0_i32_0 = arith.constant 0 : i32
    %2 = arith.cmpi ne, %1, %c0_i32_0 : i32
    scf.if %2 {
      %cst_122 = arith.constant -1.000000e+30 : f32
      %192 = vector.broadcast %cst_122 : f32 to vector<4x8x1xf32>
      %c0_123 = arith.constant 0 : index
      %c0_124 = arith.constant 0 : index
      %c0_125 = arith.constant 0 : index
      %193 = vector.load %arg7[%c0_123, %c0_124, %c0_125] : memref<4x8x1xf32, #tpu.memory_space<vmem>>, vector<4x8x1xf32>
      tpu.vector_store %arg7[%c0_123, %c0_124, %c0_125], %192 {strides = array<i32>} : memref<4x8x1xf32, #tpu.memory_space<vmem>>, vector<4x8x1xf32>,
      %cst_126 = arith.constant 0.000000e+00 : f32
      %194 = vector.broadcast %cst_126 : f32 to vector<4x8x1xf32>
      %c0_127 = arith.constant 0 : index
      %c0_128 = arith.constant 0 : index
      %c0_129 = arith.constant 0 : index
      %195 = vector.load %arg8[%c0_127, %c0_128, %c0_129] : memref<4x8x1xf32, #tpu.memory_space<vmem>>, vector<4x8x1xf32>
      tpu.vector_store %arg8[%c0_127, %c0_128, %c0_129], %194 {strides = array<i32>} : memref<4x8x1xf32, #tpu.memory_space<vmem>>, vector<4x8x1xf32>,
      %cst_130 = arith.constant 0.000000e+00 : f32
      %196 = vector.broadcast %cst_130 : f32 to vector<4x8x8xf32>
      %c0_131 = arith.constant 0 : index
      %c0_132 = arith.constant 0 : index
      %c0_133 = arith.constant 0 : index
      %197 = vector.load %arg9[%c0_131, %c0_132, %c0_133] : memref<4x8x8xf32, #tpu.memory_space<vmem>>, vector<4x8x8xf32>
      tpu.vector_store %arg9[%c0_131, %c0_132, %c0_133], %196 {strides = array<i32>} : memref<4x8x8xf32, #tpu.memory_space<vmem>>, vector<4x8x8xf32>,
    } else {
    }
    %c0 = arith.constant 0 : index
    %c0_1 = arith.constant 0 : index
    %c0_2 = arith.constant 0 : index
    %3 = vector.load %arg5[%c0, %c0_1, %c0_2] : memref<1x8x1xf32, #tpu.memory_space<vmem>>, vector<1x8x1xf32>
    %4 = vector.shape_cast %3 : vector<1x8x1xf32> to vector<8x1xf32>
    %c8_i32 = arith.constant 8 : i32
    %5 = arith.muli %arg1, %c8_i32 : i32
    %6 = tpu.iota {dimensions = array<i32: 0>} : vector<8x8xi32>
    %7 = vector.broadcast %5 : i32 to vector<8x8xi32>
    %8 = arith.addi %7, %6 : vector<8x8xi32>
    %c8_i32_3 = arith.constant 8 : i32
    %9 = arith.muli %arg2, %c8_i32_3 : i32
    %10 = tpu.iota {dimensions = array<i32: 1>} : vector<8x8xi32>
    %11 = vector.broadcast %9 : i32 to vector<8x8xi32>
    %12 = arith.addi %11, %10 : vector<8x8xi32>
    %13 = arith.cmpi sle, %12, %8 : vector<8x8xi32>
    %cst = arith.constant 5.000000e-01 : f32
    %14 = vector.broadcast %cst : f32 to vector<8x1xf32>
    %15 = arith.cmpf ogt, %4, %14 : vector<8x1xf32>
    %16 = vector.broadcast %15 : vector<8x1xi1> to vector<8x8xi1>
    %17 = arith.andi %13, %16 : vector<8x8xi1>
    %cst_4 = arith.constant 0.000000e+00 : f32
    %cst_5 = arith.constant -1.000000e+09 : f32
    %18 = vector.broadcast %cst_4 : f32 to vector<8x8xf32>
    %19 = vector.broadcast %cst_5 : f32 to vector<8x8xf32>
    %20 = arith.select %17, %18, %19 : vector<8x8xi1>, vector<8x8xf32>
    %c0_6 = arith.constant 0 : index
    %c0_7 = arith.constant 0 : index
    %c0_8 = arith.constant 0 : index
    %21 = vector.load %arg3[%c0_6, %c0_7, %c0_8] : memref<1x8x96xbf16, #tpu.memory_space<vmem>>, vector<1x8x8xbf16>
    %22 = vector.shape_cast %21 : vector<1x8x8xbf16> to vector<8x8xbf16>
    %c0_9 = arith.constant 0 : index
    %c0_10 = arith.constant 0 : index
    %c32 = arith.constant 32 : index
    %23 = vector.load %arg4[%c0_9, %c0_10, %c32] : memref<1x8x96xbf16, #tpu.memory_space<vmem>>, vector<1x8x8xbf16>
    %24 = vector.shape_cast %23 : vector<1x8x8xbf16> to vector<8x8xbf16>
    %c0_11 = arith.constant 0 : index
    %c0_12 = arith.constant 0 : index
    %c64 = arith.constant 64 : index
    %25 = vector.load %arg4[%c0_11, %c0_12, %c64] : memref<1x8x96xbf16, #tpu.memory_space<vmem>>, vector<1x8x8xbf16>
    %26 = vector.shape_cast %25 : vector<1x8x8xbf16> to vector<8x8xbf16>
    %cst_13 = arith.constant dense<0.000000e+00> : vector<8x8xf32>
    %27 = tpu.matmul %22, %24, %cst_13 {dimension_numbers = #tpu.dot_dimension_numbers<[1], [1], [0], [0], [0, 0, 1, 0], [], []>} : vector<8x8xbf16>, vector<8x8xbf16>, vector<8x8xf32> -> vector<8x8xf32>
    %cst_14 = arith.constant 0.353553385 : f32
    %28 = vector.broadcast %cst_14 : f32 to vector<8x8xf32>
    %29 = arith.mulf %27, %28 : vector<8x8xf32>
    %30 = arith.addf %29, %20 : vector<8x8xf32>
    %c0_15 = arith.constant 0 : index
    %c0_16 = arith.constant 0 : index
    %c0_17 = arith.constant 0 : index
    %31 = vector.load %arg7[%c0_15, %c0_16, %c0_17] : memref<4x8x1xf32, #tpu.memory_space<vmem>>, vector<1x8x1xf32>
    %32 = vector.shape_cast %31 : vector<1x8x1xf32> to vector<8x1xf32>
    %cst_18 = arith.constant dense<0xFF800000> : vector<8xf32>
    %33 = vector.multi_reduction <maximumf>, %30, %cst_18 [1] : vector<8x8xf32> to vector<8xf32>
    %34 = vector.shape_cast %33 : vector<8xf32> to vector<8x1xf32>
    %35 = arith.maximumf %32, %34 : vector<8x1xf32>
    %36 = arith.subf %32, %35 : vector<8x1xf32>
    %37 = math.exp %36 : vector<8x1xf32>
    %38 = vector.broadcast %35 : vector<8x1xf32> to vector<8x8xf32>
    %39 = arith.subf %30, %38 : vector<8x8xf32>
    %40 = math.exp %39 : vector<8x8xf32>
    %c0_19 = arith.constant 0 : index
    %c0_20 = arith.constant 0 : index
    %c0_21 = arith.constant 0 : index
    %41 = vector.load %arg8[%c0_19, %c0_20, %c0_21] : memref<4x8x1xf32, #tpu.memory_space<vmem>>, vector<1x8x1xf32>
    %42 = vector.shape_cast %41 : vector<1x8x1xf32> to vector<8x1xf32>
    %43 = arith.mulf %37, %42 : vector<8x1xf32>
    %cst_22 = arith.constant dense<0.000000e+00> : vector<8xf32>
    %44 = vector.multi_reduction <add>, %40, %cst_22 [1] : vector<8x8xf32> to vector<8xf32>
    %45 = vector.shape_cast %44 : vector<8xf32> to vector<8x1xf32>
    %46 = arith.addf %43, %45 : vector<8x1xf32>
    %c0_23 = arith.constant 0 : index
    %c0_24 = arith.constant 0 : index
    %c0_25 = arith.constant 0 : index
    %47 = vector.load %arg8[%c0_23, %c0_24, %c0_25] : memref<4x8x1xf32, #tpu.memory_space<vmem>>, vector<1x8x1xf32>
    %48 = vector.shape_cast %47 : vector<1x8x1xf32> to vector<8x1xf32>
    %49 = vector.shape_cast %46 : vector<8x1xf32> to vector<1x8x1xf32>
    tpu.vector_store %arg8[%c0_23, %c0_24, %c0_25], %49 {strides = array<i32>} : memref<4x8x1xf32, #tpu.memory_space<vmem>>, vector<1x8x1xf32>,
    %c0_26 = arith.constant 0 : index
    %c0_27 = arith.constant 0 : index
    %c0_28 = arith.constant 0 : index
    %50 = vector.load %arg9[%c0_26, %c0_27, %c0_28] : memref<4x8x8xf32, #tpu.memory_space<vmem>>, vector<1x8x8xf32>
    %51 = vector.shape_cast %50 : vector<1x8x8xf32> to vector<8x8xf32>
    %52 = vector.broadcast %37 : vector<8x1xf32> to vector<8x8xf32>
    %53 = arith.mulf %52, %51 : vector<8x8xf32>
    %54 = arith.truncf %40 : vector<8x8xf32> to vector<8x8xbf16>
    %cst_29 = arith.constant dense<0.000000e+00> : vector<8x8xf32>
    %55 = tpu.matmul %54, %26, %cst_29 {dimension_numbers = #tpu.dot_dimension_numbers<[1], [0], [0], [1], [0, 0, 1, 1], [], []>} : vector<8x8xbf16>, vector<8x8xbf16>, vector<8x8xf32> -> vector<8x8xf32>
    %56 = arith.addf %53, %55 : vector<8x8xf32>
    %c0_30 = arith.constant 0 : index
    %c0_31 = arith.constant 0 : index
    %c0_32 = arith.constant 0 : index
    %57 = vector.load %arg9[%c0_30, %c0_31, %c0_32] : memref<4x8x8xf32, #tpu.memory_space<vmem>>, vector<1x8x8xf32>
    %58 = vector.shape_cast %57 : vector<1x8x8xf32> to vector<8x8xf32>
    %59 = vector.shape_cast %56 : vector<8x8xf32> to vector<1x8x8xf32>
    tpu.vector_store %arg9[%c0_30, %c0_31, %c0_32], %59 {strides = array<i32>} : memref<4x8x8xf32, #tpu.memory_space<vmem>>, vector<1x8x8xf32>,
    %c0_33 = arith.constant 0 : index
    %c0_34 = arith.constant 0 : index
    %c0_35 = arith.constant 0 : index
    %60 = vector.load %arg7[%c0_33, %c0_34, %c0_35] : memref<4x8x1xf32, #tpu.memory_space<vmem>>, vector<1x8x1xf32>
    %61 = vector.shape_cast %60 : vector<1x8x1xf32> to vector<8x1xf32>
    %62 = vector.shape_cast %35 : vector<8x1xf32> to vector<1x8x1xf32>
    tpu.vector_store %arg7[%c0_33, %c0_34, %c0_35], %62 {strides = array<i32>} : memref<4x8x1xf32, #tpu.memory_space<vmem>>, vector<1x8x1xf32>,
    %c0_36 = arith.constant 0 : index
    %c0_37 = arith.constant 0 : index
    %c8 = arith.constant 8 : index
    %63 = vector.load %arg3[%c0_36, %c0_37, %c8] : memref<1x8x96xbf16, #tpu.memory_space<vmem>>, vector<1x8x8xbf16>
    %64 = vector.shape_cast %63 : vector<1x8x8xbf16> to vector<8x8xbf16>
    %c0_38 = arith.constant 0 : index
    %c0_39 = arith.constant 0 : index
    %c40 = arith.constant 40 : index
    %65 = vector.load %arg4[%c0_38, %c0_39, %c40] : memref<1x8x96xbf16, #tpu.memory_space<vmem>>, vector<1x8x8xbf16>
    %66 = vector.shape_cast %65 : vector<1x8x8xbf16> to vector<8x8xbf16>
    %c0_40 = arith.constant 0 : index
    %c0_41 = arith.constant 0 : index
    %c72 = arith.constant 72 : index
    %67 = vector.load %arg4[%c0_40, %c0_41, %c72] : memref<1x8x96xbf16, #tpu.memory_space<vmem>>, vector<1x8x8xbf16>
    %68 = vector.shape_cast %67 : vector<1x8x8xbf16> to vector<8x8xbf16>
    %cst_42 = arith.constant dense<0.000000e+00> : vector<8x8xf32>
    %69 = tpu.matmul %64, %66, %cst_42 {dimension_numbers = #tpu.dot_dimension_numbers<[1], [1], [0], [0], [0, 0, 1, 0], [], []>} : vector<8x8xbf16>, vector<8x8xbf16>, vector<8x8xf32> -> vector<8x8xf32>
    %cst_43 = arith.constant 0.353553385 : f32
    %70 = vector.broadcast %cst_43 : f32 to vector<8x8xf32>
    %71 = arith.mulf %69, %70 : vector<8x8xf32>
    %72 = arith.addf %71, %20 : vector<8x8xf32>
    %c1 = arith.constant 1 : index
    %c0_44 = arith.constant 0 : index
    %c0_45 = arith.constant 0 : index
    %73 = vector.load %arg7[%c1, %c0_44, %c0_45] : memref<4x8x1xf32, #tpu.memory_space<vmem>>, vector<1x8x1xf32>
    %74 = vector.shape_cast %73 : vector<1x8x1xf32> to vector<8x1xf32>
    %cst_46 = arith.constant dense<0xFF800000> : vector<8xf32>
    %75 = vector.multi_reduction <maximumf>, %72, %cst_46 [1] : vector<8x8xf32> to vector<8xf32>
    %76 = vector.shape_cast %75 : vector<8xf32> to vector<8x1xf32>
    %77 = arith.maximumf %74, %76 : vector<8x1xf32>
    %78 = arith.subf %74, %77 : vector<8x1xf32>
    %79 = math.exp %78 : vector<8x1xf32>
    %80 = vector.broadcast %77 : vector<8x1xf32> to vector<8x8xf32>
    %81 = arith.subf %72, %80 : vector<8x8xf32>
    %82 = math.exp %81 : vector<8x8xf32>
    %c1_47 = arith.constant 1 : index
    %c0_48 = arith.constant 0 : index
    %c0_49 = arith.constant 0 : index
    %83 = vector.load %arg8[%c1_47, %c0_48, %c0_49] : memref<4x8x1xf32, #tpu.memory_space<vmem>>, vector<1x8x1xf32>
    %84 = vector.shape_cast %83 : vector<1x8x1xf32> to vector<8x1xf32>
    %85 = arith.mulf %79, %84 : vector<8x1xf32>
    %cst_50 = arith.constant dense<0.000000e+00> : vector<8xf32>
    %86 = vector.multi_reduction <add>, %82, %cst_50 [1] : vector<8x8xf32> to vector<8xf32>
    %87 = vector.shape_cast %86 : vector<8xf32> to vector<8x1xf32>
    %88 = arith.addf %85, %87 : vector<8x1xf32>
    %c1_51 = arith.constant 1 : index
    %c0_52 = arith.constant 0 : index
    %c0_53 = arith.constant 0 : index
    %89 = vector.load %arg8[%c1_51, %c0_52, %c0_53] : memref<4x8x1xf32, #tpu.memory_space<vmem>>, vector<1x8x1xf32>
    %90 = vector.shape_cast %89 : vector<1x8x1xf32> to vector<8x1xf32>
    %91 = vector.shape_cast %88 : vector<8x1xf32> to vector<1x8x1xf32>
    tpu.vector_store %arg8[%c1_51, %c0_52, %c0_53], %91 {strides = array<i32>} : memref<4x8x1xf32, #tpu.memory_space<vmem>>, vector<1x8x1xf32>,
    %c1_54 = arith.constant 1 : index
    %c0_55 = arith.constant 0 : index
    %c0_56 = arith.constant 0 : index
    %92 = vector.load %arg9[%c1_54, %c0_55, %c0_56] : memref<4x8x8xf32, #tpu.memory_space<vmem>>, vector<1x8x8xf32>
    %93 = vector.shape_cast %92 : vector<1x8x8xf32> to vector<8x8xf32>
    %94 = vector.broadcast %79 : vector<8x1xf32> to vector<8x8xf32>
    %95 = arith.mulf %94, %93 : vector<8x8xf32>
    %96 = arith.truncf %82 : vector<8x8xf32> to vector<8x8xbf16>
    %cst_57 = arith.constant dense<0.000000e+00> : vector<8x8xf32>
    %97 = tpu.matmul %96, %68, %cst_57 {dimension_numbers = #tpu.dot_dimension_numbers<[1], [0], [0], [1], [0, 0, 1, 1], [], []>} : vector<8x8xbf16>, vector<8x8xbf16>, vector<8x8xf32> -> vector<8x8xf32>
    %98 = arith.addf %95, %97 : vector<8x8xf32>
    %c1_58 = arith.constant 1 : index
    %c0_59 = arith.constant 0 : index
    %c0_60 = arith.constant 0 : index
    %99 = vector.load %arg9[%c1_58, %c0_59, %c0_60] : memref<4x8x8xf32, #tpu.memory_space<vmem>>, vector<1x8x8xf32>
    %100 = vector.shape_cast %99 : vector<1x8x8xf32> to vector<8x8xf32>
    %101 = vector.shape_cast %98 : vector<8x8xf32> to vector<1x8x8xf32>
    tpu.vector_store %arg9[%c1_58, %c0_59, %c0_60], %101 {strides = array<i32>} : memref<4x8x8xf32, #tpu.memory_space<vmem>>, vector<1x8x8xf32>,
    %c1_61 = arith.constant 1 : index
    %c0_62 = arith.constant 0 : index
    %c0_63 = arith.constant 0 : index
    %102 = vector.load %arg7[%c1_61, %c0_62, %c0_63] : memref<4x8x1xf32, #tpu.memory_space<vmem>>, vector<1x8x1xf32>
    %103 = vector.shape_cast %102 : vector<1x8x1xf32> to vector<8x1xf32>
    %104 = vector.shape_cast %77 : vector<8x1xf32> to vector<1x8x1xf32>
    tpu.vector_store %arg7[%c1_61, %c0_62, %c0_63], %104 {strides = array<i32>} : memref<4x8x1xf32, #tpu.memory_space<vmem>>, vector<1x8x1xf32>,
    %c0_64 = arith.constant 0 : index
    %c0_65 = arith.constant 0 : index
    %c16 = arith.constant 16 : index
    %105 = vector.load %arg3[%c0_64, %c0_65, %c16] : memref<1x8x96xbf16, #tpu.memory_space<vmem>>, vector<1x8x8xbf16>
    %106 = vector.shape_cast %105 : vector<1x8x8xbf16> to vector<8x8xbf16>
    %c0_66 = arith.constant 0 : index
    %c0_67 = arith.constant 0 : index
    %c48 = arith.constant 48 : index
    %107 = vector.load %arg4[%c0_66, %c0_67, %c48] : memref<1x8x96xbf16, #tpu.memory_space<vmem>>, vector<1x8x8xbf16>
    %108 = vector.shape_cast %107 : vector<1x8x8xbf16> to vector<8x8xbf16>
    %c0_68 = arith.constant 0 : index
    %c0_69 = arith.constant 0 : index
    %c80 = arith.constant 80 : index
    %109 = vector.load %arg4[%c0_68, %c0_69, %c80] : memref<1x8x96xbf16, #tpu.memory_space<vmem>>, vector<1x8x8xbf16>
    %110 = vector.shape_cast %109 : vector<1x8x8xbf16> to vector<8x8xbf16>
    %cst_70 = arith.constant dense<0.000000e+00> : vector<8x8xf32>
    %111 = tpu.matmul %106, %108, %cst_70 {dimension_numbers = #tpu.dot_dimension_numbers<[1], [1], [0], [0], [0, 0, 1, 0], [], []>} : vector<8x8xbf16>, vector<8x8xbf16>, vector<8x8xf32> -> vector<8x8xf32>
    %cst_71 = arith.constant 0.353553385 : f32
    %112 = vector.broadcast %cst_71 : f32 to vector<8x8xf32>
    %113 = arith.mulf %111, %112 : vector<8x8xf32>
    %114 = arith.addf %113, %20 : vector<8x8xf32>
    %c2 = arith.constant 2 : index
    %c0_72 = arith.constant 0 : index
    %c0_73 = arith.constant 0 : index
    %115 = vector.load %arg7[%c2, %c0_72, %c0_73] : memref<4x8x1xf32, #tpu.memory_space<vmem>>, vector<1x8x1xf32>
    %116 = vector.shape_cast %115 : vector<1x8x1xf32> to vector<8x1xf32>
    %cst_74 = arith.constant dense<0xFF800000> : vector<8xf32>
    %117 = vector.multi_reduction <maximumf>, %114, %cst_74 [1] : vector<8x8xf32> to vector<8xf32>
    %118 = vector.shape_cast %117 : vector<8xf32> to vector<8x1xf32>
    %119 = arith.maximumf %116, %118 : vector<8x1xf32>
    %120 = arith.subf %116, %119 : vector<8x1xf32>
    %121 = math.exp %120 : vector<8x1xf32>
    %122 = vector.broadcast %119 : vector<8x1xf32> to vector<8x8xf32>
    %123 = arith.subf %114, %122 : vector<8x8xf32>
    %124 = math.exp %123 : vector<8x8xf32>
    %c2_75 = arith.constant 2 : index
    %c0_76 = arith.constant 0 : index
    %c0_77 = arith.constant 0 : index
    %125 = vector.load %arg8[%c2_75, %c0_76, %c0_77] : memref<4x8x1xf32, #tpu.memory_space<vmem>>, vector<1x8x1xf32>
    %126 = vector.shape_cast %125 : vector<1x8x1xf32> to vector<8x1xf32>
    %127 = arith.mulf %121, %126 : vector<8x1xf32>
    %cst_78 = arith.constant dense<0.000000e+00> : vector<8xf32>
    %128 = vector.multi_reduction <add>, %124, %cst_78 [1] : vector<8x8xf32> to vector<8xf32>
    %129 = vector.shape_cast %128 : vector<8xf32> to vector<8x1xf32>
    %130 = arith.addf %127, %129 : vector<8x1xf32>
    %c2_79 = arith.constant 2 : index
    %c0_80 = arith.constant 0 : index
    %c0_81 = arith.constant 0 : index
    %131 = vector.load %arg8[%c2_79, %c0_80, %c0_81] : memref<4x8x1xf32, #tpu.memory_space<vmem>>, vector<1x8x1xf32>
    %132 = vector.shape_cast %131 : vector<1x8x1xf32> to vector<8x1xf32>
    %133 = vector.shape_cast %130 : vector<8x1xf32> to vector<1x8x1xf32>
    tpu.vector_store %arg8[%c2_79, %c0_80, %c0_81], %133 {strides = array<i32>} : memref<4x8x1xf32, #tpu.memory_space<vmem>>, vector<1x8x1xf32>,
    %c2_82 = arith.constant 2 : index
    %c0_83 = arith.constant 0 : index
    %c0_84 = arith.constant 0 : index
    %134 = vector.load %arg9[%c2_82, %c0_83, %c0_84] : memref<4x8x8xf32, #tpu.memory_space<vmem>>, vector<1x8x8xf32>
    %135 = vector.shape_cast %134 : vector<1x8x8xf32> to vector<8x8xf32>
    %136 = vector.broadcast %121 : vector<8x1xf32> to vector<8x8xf32>
    %137 = arith.mulf %136, %135 : vector<8x8xf32>
    %138 = arith.truncf %124 : vector<8x8xf32> to vector<8x8xbf16>
    %cst_85 = arith.constant dense<0.000000e+00> : vector<8x8xf32>
    %139 = tpu.matmul %138, %110, %cst_85 {dimension_numbers = #tpu.dot_dimension_numbers<[1], [0], [0], [1], [0, 0, 1, 1], [], []>} : vector<8x8xbf16>, vector<8x8xbf16>, vector<8x8xf32> -> vector<8x8xf32>
    %140 = arith.addf %137, %139 : vector<8x8xf32>
    %c2_86 = arith.constant 2 : index
    %c0_87 = arith.constant 0 : index
    %c0_88 = arith.constant 0 : index
    %141 = vector.load %arg9[%c2_86, %c0_87, %c0_88] : memref<4x8x8xf32, #tpu.memory_space<vmem>>, vector<1x8x8xf32>
    %142 = vector.shape_cast %141 : vector<1x8x8xf32> to vector<8x8xf32>
    %143 = vector.shape_cast %140 : vector<8x8xf32> to vector<1x8x8xf32>
    tpu.vector_store %arg9[%c2_86, %c0_87, %c0_88], %143 {strides = array<i32>} : memref<4x8x8xf32, #tpu.memory_space<vmem>>, vector<1x8x8xf32>,
    %c2_89 = arith.constant 2 : index
    %c0_90 = arith.constant 0 : index
    %c0_91 = arith.constant 0 : index
    %144 = vector.load %arg7[%c2_89, %c0_90, %c0_91] : memref<4x8x1xf32, #tpu.memory_space<vmem>>, vector<1x8x1xf32>
    %145 = vector.shape_cast %144 : vector<1x8x1xf32> to vector<8x1xf32>
    %146 = vector.shape_cast %119 : vector<8x1xf32> to vector<1x8x1xf32>
    tpu.vector_store %arg7[%c2_89, %c0_90, %c0_91], %146 {strides = array<i32>} : memref<4x8x1xf32, #tpu.memory_space<vmem>>, vector<1x8x1xf32>,
    %c0_92 = arith.constant 0 : index
    %c0_93 = arith.constant 0 : index
    %c24 = arith.constant 24 : index
    %147 = vector.load %arg3[%c0_92, %c0_93, %c24] : memref<1x8x96xbf16, #tpu.memory_space<vmem>>, vector<1x8x8xbf16>
    %148 = vector.shape_cast %147 : vector<1x8x8xbf16> to vector<8x8xbf16>
    %c0_94 = arith.constant 0 : index
    %c0_95 = arith.constant 0 : index
    %c56 = arith.constant 56 : index
    %149 = vector.load %arg4[%c0_94, %c0_95, %c56] : memref<1x8x96xbf16, #tpu.memory_space<vmem>>, vector<1x8x8xbf16>
    %150 = vector.shape_cast %149 : vector<1x8x8xbf16> to vector<8x8xbf16>
    %c0_96 = arith.constant 0 : index
    %c0_97 = arith.constant 0 : index
    %c88 = arith.constant 88 : index
    %151 = vector.load %arg4[%c0_96, %c0_97, %c88] : memref<1x8x96xbf16, #tpu.memory_space<vmem>>, vector<1x8x8xbf16>
    %152 = vector.shape_cast %151 : vector<1x8x8xbf16> to vector<8x8xbf16>
    %cst_98 = arith.constant dense<0.000000e+00> : vector<8x8xf32>
    %153 = tpu.matmul %148, %150, %cst_98 {dimension_numbers = #tpu.dot_dimension_numbers<[1], [1], [0], [0], [0, 0, 1, 0], [], []>} : vector<8x8xbf16>, vector<8x8xbf16>, vector<8x8xf32> -> vector<8x8xf32>
    %cst_99 = arith.constant 0.353553385 : f32
    %154 = vector.broadcast %cst_99 : f32 to vector<8x8xf32>
    %155 = arith.mulf %153, %154 : vector<8x8xf32>
    %156 = arith.addf %155, %20 : vector<8x8xf32>
    %c3 = arith.constant 3 : index
    %c0_100 = arith.constant 0 : index
    %c0_101 = arith.constant 0 : index
    %157 = vector.load %arg7[%c3, %c0_100, %c0_101] : memref<4x8x1xf32, #tpu.memory_space<vmem>>, vector<1x8x1xf32>
    %158 = vector.shape_cast %157 : vector<1x8x1xf32> to vector<8x1xf32>
    %cst_102 = arith.constant dense<0xFF800000> : vector<8xf32>
    %159 = vector.multi_reduction <maximumf>, %156, %cst_102 [1] : vector<8x8xf32> to vector<8xf32>
    %160 = vector.shape_cast %159 : vector<8xf32> to vector<8x1xf32>
    %161 = arith.maximumf %158, %160 : vector<8x1xf32>
    %162 = arith.subf %158, %161 : vector<8x1xf32>
    %163 = math.exp %162 : vector<8x1xf32>
    %164 = vector.broadcast %161 : vector<8x1xf32> to vector<8x8xf32>
    %165 = arith.subf %156, %164 : vector<8x8xf32>
    %166 = math.exp %165 : vector<8x8xf32>
    %c3_103 = arith.constant 3 : index
    %c0_104 = arith.constant 0 : index
    %c0_105 = arith.constant 0 : index
    %167 = vector.load %arg8[%c3_103, %c0_104, %c0_105] : memref<4x8x1xf32, #tpu.memory_space<vmem>>, vector<1x8x1xf32>
    %168 = vector.shape_cast %167 : vector<1x8x1xf32> to vector<8x1xf32>
    %169 = arith.mulf %163, %168 : vector<8x1xf32>
    %cst_106 = arith.constant dense<0.000000e+00> : vector<8xf32>
    %170 = vector.multi_reduction <add>, %166, %cst_106 [1] : vector<8x8xf32> to vector<8xf32>
    %171 = vector.shape_cast %170 : vector<8xf32> to vector<8x1xf32>
    %172 = arith.addf %169, %171 : vector<8x1xf32>
    %c3_107 = arith.constant 3 : index
    %c0_108 = arith.constant 0 : index
    %c0_109 = arith.constant 0 : index
    %173 = vector.load %arg8[%c3_107, %c0_108, %c0_109] : memref<4x8x1xf32, #tpu.memory_space<vmem>>, vector<1x8x1xf32>
    %174 = vector.shape_cast %173 : vector<1x8x1xf32> to vector<8x1xf32>
    %175 = vector.shape_cast %172 : vector<8x1xf32> to vector<1x8x1xf32>
    tpu.vector_store %arg8[%c3_107, %c0_108, %c0_109], %175 {strides = array<i32>} : memref<4x8x1xf32, #tpu.memory_space<vmem>>, vector<1x8x1xf32>,
    %c3_110 = arith.constant 3 : index
    %c0_111 = arith.constant 0 : index
    %c0_112 = arith.constant 0 : index
    %176 = vector.load %arg9[%c3_110, %c0_111, %c0_112] : memref<4x8x8xf32, #tpu.memory_space<vmem>>, vector<1x8x8xf32>
    %177 = vector.shape_cast %176 : vector<1x8x8xf32> to vector<8x8xf32>
    %178 = vector.broadcast %163 : vector<8x1xf32> to vector<8x8xf32>
    %179 = arith.mulf %178, %177 : vector<8x8xf32>
    %180 = arith.truncf %166 : vector<8x8xf32> to vector<8x8xbf16>
    %cst_113 = arith.constant dense<0.000000e+00> : vector<8x8xf32>
    %181 = tpu.matmul %180, %152, %cst_113 {dimension_numbers = #tpu.dot_dimension_numbers<[1], [0], [0], [1], [0, 0, 1, 1], [], []>} : vector<8x8xbf16>, vector<8x8xbf16>, vector<8x8xf32> -> vector<8x8xf32>
    %182 = arith.addf %179, %181 : vector<8x8xf32>
    %c3_114 = arith.constant 3 : index
    %c0_115 = arith.constant 0 : index
    %c0_116 = arith.constant 0 : index
    %183 = vector.load %arg9[%c3_114, %c0_115, %c0_116] : memref<4x8x8xf32, #tpu.memory_space<vmem>>, vector<1x8x8xf32>
    %184 = vector.shape_cast %183 : vector<1x8x8xf32> to vector<8x8xf32>
    %185 = vector.shape_cast %182 : vector<8x8xf32> to vector<1x8x8xf32>
    tpu.vector_store %arg9[%c3_114, %c0_115, %c0_116], %185 {strides = array<i32>} : memref<4x8x8xf32, #tpu.memory_space<vmem>>, vector<1x8x8xf32>,
    %c3_117 = arith.constant 3 : index
    %c0_118 = arith.constant 0 : index
    %c0_119 = arith.constant 0 : index
    %186 = vector.load %arg7[%c3_117, %c0_118, %c0_119] : memref<4x8x1xf32, #tpu.memory_space<vmem>>, vector<1x8x1xf32>
    %187 = vector.shape_cast %186 : vector<1x8x1xf32> to vector<8x1xf32>
    %188 = vector.shape_cast %161 : vector<8x1xf32> to vector<1x8x1xf32>
    tpu.vector_store %arg7[%c3_117, %c0_118, %c0_119], %188 {strides = array<i32>} : memref<4x8x1xf32, #tpu.memory_space<vmem>>, vector<1x8x1xf32>,
    %c0_i32_120 = arith.constant 0 : i32
    %189 = arith.cmpi eq, %arg2, %c0_i32_120 : i32
    %190 = arith.extui %189 : i1 to i32
    %c0_i32_121 = arith.constant 0 : i32
    %191 = arith.cmpi ne, %190, %c0_i32_121 : i32
    scf.if %191 {
      %c0_122 = arith.constant 0 : index
      %c0_123 = arith.constant 0 : index
      %c0_124 = arith.constant 0 : index
      %192 = vector.load %arg9[%c0_122, %c0_123, %c0_124] : memref<4x8x8xf32, #tpu.memory_space<vmem>>, vector<1x8x8xf32>
      %193 = vector.shape_cast %192 : vector<1x8x8xf32> to vector<8x8xf32>
      %c0_125 = arith.constant 0 : index
      %c0_126 = arith.constant 0 : index
      %c0_127 = arith.constant 0 : index
      %194 = vector.load %arg8[%c0_125, %c0_126, %c0_127] : memref<4x8x1xf32, #tpu.memory_space<vmem>>, vector<1x8x1xf32>
      %195 = vector.shape_cast %194 : vector<1x8x1xf32> to vector<8x1xf32>
      %196 = tpu.reciprocal %195 {approx = true} : vector<8x1xf32> -> vector<8x1xf32>
      %197 = vector.broadcast %196 : vector<8x1xf32> to vector<8x8xf32>
      %198 = arith.mulf %193, %197 : vector<8x8xf32>
      %199 = arith.truncf %198 : vector<8x8xf32> to vector<8x8xbf16>
      %c0_128 = arith.constant 0 : index
      %c0_129 = arith.constant 0 : index
      %c0_130 = arith.constant 0 : index
      %200 = vector.load %arg6[%c0_128, %c0_129, %c0_130] : memref<1x8x32xbf16, #tpu.memory_space<vmem>>, vector<1x8x8xbf16>
      %201 = vector.shape_cast %200 : vector<1x8x8xbf16> to vector<8x8xbf16>
      %202 = vector.shape_cast %199 : vector<8x8xbf16> to vector<1x8x8xbf16>
      tpu.vector_store %arg6[%c0_128, %c0_129, %c0_130], %202 {strides = array<i32>} : memref<1x8x32xbf16, #tpu.memory_space<vmem>>, vector<1x8x8xbf16>,
      %c1_131 = arith.constant 1 : index
      %c0_132 = arith.constant 0 : index
      %c0_133 = arith.constant 0 : index
      %203 = vector.load %arg9[%c1_131, %c0_132, %c0_133] : memref<4x8x8xf32, #tpu.memory_space<vmem>>, vector<1x8x8xf32>
      %204 = vector.shape_cast %203 : vector<1x8x8xf32> to vector<8x8xf32>
      %c1_134 = arith.constant 1 : index
      %c0_135 = arith.constant 0 : index
      %c0_136 = arith.constant 0 : index
      %205 = vector.load %arg8[%c1_134, %c0_135, %c0_136] : memref<4x8x1xf32, #tpu.memory_space<vmem>>, vector<1x8x1xf32>
      %206 = vector.shape_cast %205 : vector<1x8x1xf32> to vector<8x1xf32>
      %207 = tpu.reciprocal %206 {approx = true} : vector<8x1xf32> -> vector<8x1xf32>
      %208 = vector.broadcast %207 : vector<8x1xf32> to vector<8x8xf32>
      %209 = arith.mulf %204, %208 : vector<8x8xf32>
      %210 = arith.truncf %209 : vector<8x8xf32> to vector<8x8xbf16>
      %c0_137 = arith.constant 0 : index
      %c0_138 = arith.constant 0 : index
      %c8_139 = arith.constant 8 : index
      %211 = vector.load %arg6[%c0_137, %c0_138, %c8_139] : memref<1x8x32xbf16, #tpu.memory_space<vmem>>, vector<1x8x8xbf16>
      %212 = vector.shape_cast %211 : vector<1x8x8xbf16> to vector<8x8xbf16>
      %213 = vector.shape_cast %210 : vector<8x8xbf16> to vector<1x8x8xbf16>
      tpu.vector_store %arg6[%c0_137, %c0_138, %c8_139], %213 {strides = array<i32>} : memref<1x8x32xbf16, #tpu.memory_space<vmem>>, vector<1x8x8xbf16>,
      %c2_140 = arith.constant 2 : index
      %c0_141 = arith.constant 0 : index
      %c0_142 = arith.constant 0 : index
      %214 = vector.load %arg9[%c2_140, %c0_141, %c0_142] : memref<4x8x8xf32, #tpu.memory_space<vmem>>, vector<1x8x8xf32>
      %215 = vector.shape_cast %214 : vector<1x8x8xf32> to vector<8x8xf32>
      %c2_143 = arith.constant 2 : index
      %c0_144 = arith.constant 0 : index
      %c0_145 = arith.constant 0 : index
      %216 = vector.load %arg8[%c2_143, %c0_144, %c0_145] : memref<4x8x1xf32, #tpu.memory_space<vmem>>, vector<1x8x1xf32>
      %217 = vector.shape_cast %216 : vector<1x8x1xf32> to vector<8x1xf32>
      %218 = tpu.reciprocal %217 {approx = true} : vector<8x1xf32> -> vector<8x1xf32>
      %219 = vector.broadcast %218 : vector<8x1xf32> to vector<8x8xf32>
      %220 = arith.mulf %215, %219 : vector<8x8xf32>
      %221 = arith.truncf %220 : vector<8x8xf32> to vector<8x8xbf16>
      %c0_146 = arith.constant 0 : index
      %c0_147 = arith.constant 0 : index
      %c16_148 = arith.constant 16 : index
      %222 = vector.load %arg6[%c0_146, %c0_147, %c16_148] : memref<1x8x32xbf16, #tpu.memory_space<vmem>>, vector<1x8x8xbf16>
      %223 = vector.shape_cast %222 : vector<1x8x8xbf16> to vector<8x8xbf16>
      %224 = vector.shape_cast %221 : vector<8x8xbf16> to vector<1x8x8xbf16>
      tpu.vector_store %arg6[%c0_146, %c0_147, %c16_148], %224 {strides = array<i32>} : memref<1x8x32xbf16, #tpu.memory_space<vmem>>, vector<1x8x8xbf16>,
      %c3_149 = arith.constant 3 : index
      %c0_150 = arith.constant 0 : index
      %c0_151 = arith.constant 0 : index
      %225 = vector.load %arg9[%c3_149, %c0_150, %c0_151] : memref<4x8x8xf32, #tpu.memory_space<vmem>>, vector<1x8x8xf32>
      %226 = vector.shape_cast %225 : vector<1x8x8xf32> to vector<8x8xf32>
      %c3_152 = arith.constant 3 : index
      %c0_153 = arith.constant 0 : index
      %c0_154 = arith.constant 0 : index
      %227 = vector.load %arg8[%c3_152, %c0_153, %c0_154] : memref<4x8x1xf32, #tpu.memory_space<vmem>>, vector<1x8x1xf32>
      %228 = vector.shape_cast %227 : vector<1x8x1xf32> to vector<8x1xf32>
      %229 = tpu.reciprocal %228 {approx = true} : vector<8x1xf32> -> vector<8x1xf32>
      %230 = vector.broadcast %229 : vector<8x1xf32> to vector<8x8xf32>
      %231 = arith.mulf %226, %230 : vector<8x8xf32>
      %232 = arith.truncf %231 : vector<8x8xf32> to vector<8x8xbf16>
      %c0_155 = arith.constant 0 : index
      %c0_156 = arith.constant 0 : index
      %c24_157 = arith.constant 24 : index
      %233 = vector.load %arg6[%c0_155, %c0_156, %c24_157] : memref<1x8x32xbf16, #tpu.memory_space<vmem>>, vector<1x8x8xbf16>
      %234 = vector.shape_cast %233 : vector<1x8x8xbf16> to vector<8x8xbf16>
      %235 = vector.shape_cast %232 : vector<8x8xbf16> to vector<1x8x8xbf16>
      tpu.vector_store %arg6[%c0_155, %c0_156, %c24_157], %235 {strides = array<i32>} : memref<1x8x32xbf16, #tpu.memory_space<vmem>>, vector<1x8x8xbf16>,
    } else {
    }
    return
  }
  func.func @transform_0(%arg0: i32, %arg1: i32, %arg2: i32) -> (i32, i32, i32) {
    %c0_i32 = arith.constant 0 : i32
    %c0_i32_0 = arith.constant 0 : i32
    return %arg0, %arg1, %c0_i32 : i32, i32, i32
  }
  func.func @transform_1(%arg0: i32, %arg1: i32, %arg2: i32) -> (i32, i32, i32) {
    %c0_i32 = arith.constant 0 : i32
    %c0_i32_0 = arith.constant 0 : i32
    return %arg0, %arg2, %c0_i32 : i32, i32, i32
  }
  func.func @transform_2(%arg0: i32, %arg1: i32, %arg2: i32) -> (i32, i32, i32) {
    %c0_i32 = arith.constant 0 : i32
    %c0_i32_0 = arith.constant 0 : i32
    return %arg0, %arg1, %c0_i32 : i32, i32, i32
  }
  func.func @transform_3(%arg0: i32, %arg1: i32, %arg2: i32) -> (i32, i32, i32) {
    %c0_i32 = arith.constant 0 : i32
    %c0_i32_0 = arith.constant 0 : i32
    return %arg0, %arg1, %c0_i32 : i32, i32, i32
  }
}

module attributes {stable_mosaic.version = 11 : i64} {
  func.func @kernel(%arg0: i32, %arg1: i32, %arg2: i32, %arg3: memref<16x32xbf16, #tpu.memory_space<vmem>>, %arg4: memref<32x32xbf16, #tpu.memory_space<vmem>>, %arg5: memref<1x32xf32, #tpu.memory_space<vmem>>, %arg6: memref<16x32xbf16, #tpu.memory_space<vmem>>, %arg7: memref<16x32xf32, #tpu.memory_space<vmem>>) attributes {dimension_semantics = [#tpu.dimension_semantics<parallel>, #tpu.dimension_semantics<parallel>, #tpu.dimension_semantics<arbitrary>], iteration_bounds = array<i64: 1, 1, 1>, scalar_prefetch = 0 : i64, scratch_operands = 1 : i64, tpu.core_type = #tpu.core_type<tc>, window_params = [{transform_indices = @transform_0, window_bounds = array<i64: 16, 32>}, {transform_indices = @transform_1, window_bounds = array<i64: 32, 32>}, {transform_indices = @transform_2, window_bounds = array<i64: 1, 32>}, {transform_indices = @transform_3, window_bounds = array<i64: 16, 32>}]} {
    %c0_i32 = arith.constant 0 : i32
    %0 = arith.cmpi eq, %arg2, %c0_i32 : i32
    %1 = arith.extui %0 : i1 to i32
    %c0_i32_0 = arith.constant 0 : i32
    %2 = arith.cmpi ne, %1, %c0_i32_0 : i32
    scf.if %2 {
      %cst_10 = arith.constant 0.000000e+00 : f32
      %12 = vector.broadcast %cst_10 : f32 to vector<16x32xf32>
      %c0_11 = arith.constant 0 : index
      %c0_12 = arith.constant 0 : index
      %13 = vector.load %arg7[%c0_11, %c0_12] : memref<16x32xf32, #tpu.memory_space<vmem>>, vector<16x32xf32>
      tpu.vector_store %arg7[%c0_11, %c0_12], %12 {strides = array<i32>} : memref<16x32xf32, #tpu.memory_space<vmem>>, vector<16x32xf32>,
    } else {
    }
    %c0 = arith.constant 0 : index
    %c0_1 = arith.constant 0 : index
    %3 = vector.load %arg7[%c0, %c0_1] : memref<16x32xf32, #tpu.memory_space<vmem>>, vector<16x32xf32>
    %c0_2 = arith.constant 0 : index
    %c0_3 = arith.constant 0 : index
    %4 = vector.load %arg3[%c0_2, %c0_3] : memref<16x32xbf16, #tpu.memory_space<vmem>>, vector<16x32xbf16>
    %c0_4 = arith.constant 0 : index
    %c0_5 = arith.constant 0 : index
    %5 = vector.load %arg4[%c0_4, %c0_5] : memref<32x32xbf16, #tpu.memory_space<vmem>>, vector<32x32xbf16>
    %cst = arith.constant dense<0.000000e+00> : vector<16x32xf32>
    %6 = tpu.matmul %4, %5, %cst {dimension_numbers = #tpu.dot_dimension_numbers<[1], [0], [0], [1], [0, 0, 1, 1], [], []>} : vector<16x32xbf16>, vector<32x32xbf16>, vector<16x32xf32> -> vector<16x32xf32>
    %7 = arith.addf %3, %6 : vector<16x32xf32>
    %c0_6 = arith.constant 0 : index
    %c0_7 = arith.constant 0 : index
    %8 = vector.load %arg7[%c0_6, %c0_7] : memref<16x32xf32, #tpu.memory_space<vmem>>, vector<16x32xf32>
    tpu.vector_store %arg7[%c0_6, %c0_7], %7 {strides = array<i32>} : memref<16x32xf32, #tpu.memory_space<vmem>>, vector<16x32xf32>,
    %c0_i32_8 = arith.constant 0 : i32
    %9 = arith.cmpi eq, %arg2, %c0_i32_8 : i32
    %10 = arith.extui %9 : i1 to i32
    %c0_i32_9 = arith.constant 0 : i32
    %11 = arith.cmpi ne, %10, %c0_i32_9 : i32
    scf.if %11 {
      %c0_10 = arith.constant 0 : index
      %c0_11 = arith.constant 0 : index
      %12 = vector.load %arg7[%c0_10, %c0_11] : memref<16x32xf32, #tpu.memory_space<vmem>>, vector<16x32xf32>
      %c0_12 = arith.constant 0 : index
      %c0_13 = arith.constant 0 : index
      %13 = vector.load %arg5[%c0_12, %c0_13] : memref<1x32xf32, #tpu.memory_space<vmem>>, vector<1x32xf32>
      %14 = vector.broadcast %13 : vector<1x32xf32> to vector<16x32xf32>
      %15 = arith.addf %12, %14 : vector<16x32xf32>
      %16 = arith.truncf %15 : vector<16x32xf32> to vector<16x32xbf16>
      %c0_14 = arith.constant 0 : index
      %c0_15 = arith.constant 0 : index
      %17 = vector.load %arg6[%c0_14, %c0_15] : memref<16x32xbf16, #tpu.memory_space<vmem>>, vector<16x32xbf16>
      tpu.vector_store %arg6[%c0_14, %c0_15], %16 {strides = array<i32>} : memref<16x32xbf16, #tpu.memory_space<vmem>>, vector<16x32xbf16>,
    } else {
    }
    return
  }
  func.func @transform_0(%arg0: i32, %arg1: i32, %arg2: i32) -> (i32, i32) {
    %c0_i32 = arith.constant 0 : i32
    return %arg0, %arg2 : i32, i32
  }
  func.func @transform_1(%arg0: i32, %arg1: i32, %arg2: i32) -> (i32, i32) {
    %c0_i32 = arith.constant 0 : i32
    return %arg2, %arg1 : i32, i32
  }
  func.func @transform_2(%arg0: i32, %arg1: i32, %arg2: i32) -> (i32, i32) {
    %c0_i32 = arith.constant 0 : i32
    %c0_i32_0 = arith.constant 0 : i32
    return %c0_i32, %arg1 : i32, i32
  }
  func.func @transform_3(%arg0: i32, %arg1: i32, %arg2: i32) -> (i32, i32) {
    %c0_i32 = arith.constant 0 : i32
    return %arg0, %arg1 : i32, i32
  }
}

module attributes {stable_mosaic.version = 11 : i64} {
  func.func @kernel(%arg0: i32, %arg1: i32, %arg2: i32, %arg3: memref<1x8x32xbf16, #tpu.memory_space<vmem>>, %arg4: memref<1x8x64xbf16, #tpu.memory_space<vmem>>, %arg5: memref<1x1x8xf32, #tpu.memory_space<vmem>>, %arg6: memref<1x8x32xbf16, #tpu.memory_space<vmem>>, %arg7: memref<4x8x1xf32, #tpu.memory_space<vmem>>, %arg8: memref<4x8x1xf32, #tpu.memory_space<vmem>>, %arg9: memref<4x8x8xf32, #tpu.memory_space<vmem>>) attributes {dimension_semantics = [#tpu.dimension_semantics<parallel>, #tpu.dimension_semantics<parallel>, #tpu.dimension_semantics<arbitrary>], iteration_bounds = array<i64: 2, 1, 1>, scalar_prefetch = 0 : i64, scratch_operands = 3 : i64, tpu.core_type = #tpu.core_type<tc>, window_params = [{transform_indices = @transform_0, window_bounds = array<i64: 1, 8, 32>}, {transform_indices = @transform_1, window_bounds = array<i64: 1, 8, 64>}, {transform_indices = @transform_2, window_bounds = array<i64: 1, 1, 8>}, {transform_indices = @transform_3, window_bounds = array<i64: 1, 8, 32>}]} {
    %c0_i32 = arith.constant 0 : i32
    %0 = arith.cmpi eq, %arg2, %c0_i32 : i32
    %1 = arith.extui %0 : i1 to i32
    %c0_i32_0 = arith.constant 0 : i32
    %2 = arith.cmpi ne, %1, %c0_i32_0 : i32
    scf.if %2 {
      %cst_125 = arith.constant -1.000000e+30 : f32
      %185 = vector.broadcast %cst_125 : f32 to vector<4x8x1xf32>
      %c0_126 = arith.constant 0 : index
      %c0_127 = arith.constant 0 : index
      %c0_128 = arith.constant 0 : index
      %186 = vector.load %arg7[%c0_126, %c0_127, %c0_128] : memref<4x8x1xf32, #tpu.memory_space<vmem>>, vector<4x8x1xf32>
      tpu.vector_store %arg7[%c0_126, %c0_127, %c0_128], %185 {strides = array<i32>} : memref<4x8x1xf32, #tpu.memory_space<vmem>>, vector<4x8x1xf32>,
      %cst_129 = arith.constant 0.000000e+00 : f32
      %187 = vector.broadcast %cst_129 : f32 to vector<4x8x1xf32>
      %c0_130 = arith.constant 0 : index
      %c0_131 = arith.constant 0 : index
      %c0_132 = arith.constant 0 : index
      %188 = vector.load %arg8[%c0_130, %c0_131, %c0_132] : memref<4x8x1xf32, #tpu.memory_space<vmem>>, vector<4x8x1xf32>
      tpu.vector_store %arg8[%c0_130, %c0_131, %c0_132], %187 {strides = array<i32>} : memref<4x8x1xf32, #tpu.memory_space<vmem>>, vector<4x8x1xf32>,
      %cst_133 = arith.constant 0.000000e+00 : f32
      %189 = vector.broadcast %cst_133 : f32 to vector<4x8x8xf32>
      %c0_134 = arith.constant 0 : index
      %c0_135 = arith.constant 0 : index
      %c0_136 = arith.constant 0 : index
      %190 = vector.load %arg9[%c0_134, %c0_135, %c0_136] : memref<4x8x8xf32, #tpu.memory_space<vmem>>, vector<4x8x8xf32>
      tpu.vector_store %arg9[%c0_134, %c0_135, %c0_136], %189 {strides = array<i32>} : memref<4x8x8xf32, #tpu.memory_space<vmem>>, vector<4x8x8xf32>,
    } else {
    }
    %c0 = arith.constant 0 : index
    %c0_1 = arith.constant 0 : index
    %c0_2 = arith.constant 0 : index
    %3 = vector.load %arg5[%c0, %c0_1, %c0_2] : memref<1x1x8xf32, #tpu.memory_space<vmem>>, vector<1x1x8xf32>
    %4 = vector.shape_cast %3 : vector<1x1x8xf32> to vector<1x8xf32>
    %cst = arith.constant 5.000000e-01 : f32
    %5 = vector.broadcast %cst : f32 to vector<1x8xf32>
    %6 = arith.cmpf ogt, %4, %5 : vector<1x8xf32>
    %cst_3 = arith.constant 0.000000e+00 : f32
    %cst_4 = arith.constant -1.000000e+09 : f32
    %7 = vector.broadcast %cst_3 : f32 to vector<1x8xf32>
    %8 = vector.broadcast %cst_4 : f32 to vector<1x8xf32>
    %9 = arith.select %6, %7, %8 : vector<1x8xi1>, vector<1x8xf32>
    %c0_5 = arith.constant 0 : index
    %c0_6 = arith.constant 0 : index
    %c0_7 = arith.constant 0 : index
    %10 = vector.load %arg3[%c0_5, %c0_6, %c0_7] : memref<1x8x32xbf16, #tpu.memory_space<vmem>>, vector<1x8x8xbf16>
    %11 = vector.shape_cast %10 : vector<1x8x8xbf16> to vector<8x8xbf16>
    %c0_8 = arith.constant 0 : index
    %c0_9 = arith.constant 0 : index
    %c0_10 = arith.constant 0 : index
    %12 = vector.load %arg4[%c0_8, %c0_9, %c0_10] : memref<1x8x64xbf16, #tpu.memory_space<vmem>>, vector<1x8x8xbf16>
    %13 = vector.shape_cast %12 : vector<1x8x8xbf16> to vector<8x8xbf16>
    %c0_11 = arith.constant 0 : index
    %c0_12 = arith.constant 0 : index
    %c32 = arith.constant 32 : index
    %14 = vector.load %arg4[%c0_11, %c0_12, %c32] : memref<1x8x64xbf16, #tpu.memory_space<vmem>>, vector<1x8x8xbf16>
    %15 = vector.shape_cast %14 : vector<1x8x8xbf16> to vector<8x8xbf16>
    %cst_13 = arith.constant dense<0.000000e+00> : vector<8x8xf32>
    %16 = tpu.matmul %11, %13, %cst_13 {dimension_numbers = #tpu.dot_dimension_numbers<[1], [1], [0], [0], [0, 0, 1, 0], [], []>} : vector<8x8xbf16>, vector<8x8xbf16>, vector<8x8xf32> -> vector<8x8xf32>
    %cst_14 = arith.constant 0.353553385 : f32
    %17 = vector.broadcast %cst_14 : f32 to vector<8x8xf32>
    %18 = arith.mulf %16, %17 : vector<8x8xf32>
    %19 = vector.broadcast %9 : vector<1x8xf32> to vector<8x8xf32>
    %20 = arith.addf %18, %19 : vector<8x8xf32>
    %c0_15 = arith.constant 0 : index
    %c0_16 = arith.constant 0 : index
    %c0_17 = arith.constant 0 : index
    %21 = vector.load %arg7[%c0_15, %c0_16, %c0_17] : memref<4x8x1xf32, #tpu.memory_space<vmem>>, vector<1x8x1xf32>
    %22 = vector.shape_cast %21 : vector<1x8x1xf32> to vector<8x1xf32>
    %cst_18 = arith.constant dense<0xFF800000> : vector<8xf32>
    %23 = vector.multi_reduction <maximumf>, %20, %cst_18 [1] : vector<8x8xf32> to vector<8xf32>
    %24 = vector.shape_cast %23 : vector<8xf32> to vector<8x1xf32>
    %25 = arith.maximumf %22, %24 : vector<8x1xf32>
    %26 = arith.subf %22, %25 : vector<8x1xf32>
    %27 = math.exp %26 : vector<8x1xf32>
    %28 = vector.broadcast %25 : vector<8x1xf32> to vector<8x8xf32>
    %29 = arith.subf %20, %28 : vector<8x8xf32>
    %30 = math.exp %29 : vector<8x8xf32>
    %c0_19 = arith.constant 0 : index
    %c0_20 = arith.constant 0 : index
    %c0_21 = arith.constant 0 : index
    %31 = vector.load %arg8[%c0_19, %c0_20, %c0_21] : memref<4x8x1xf32, #tpu.memory_space<vmem>>, vector<1x8x1xf32>
    %32 = vector.shape_cast %31 : vector<1x8x1xf32> to vector<8x1xf32>
    %33 = arith.mulf %27, %32 : vector<8x1xf32>
    %cst_22 = arith.constant dense<0.000000e+00> : vector<8xf32>
    %34 = vector.multi_reduction <add>, %30, %cst_22 [1] : vector<8x8xf32> to vector<8xf32>
    %35 = vector.shape_cast %34 : vector<8xf32> to vector<8x1xf32>
    %36 = arith.addf %33, %35 : vector<8x1xf32>
    %c0_23 = arith.constant 0 : index
    %c0_24 = arith.constant 0 : index
    %c0_25 = arith.constant 0 : index
    %37 = vector.load %arg8[%c0_23, %c0_24, %c0_25] : memref<4x8x1xf32, #tpu.memory_space<vmem>>, vector<1x8x1xf32>
    %38 = vector.shape_cast %37 : vector<1x8x1xf32> to vector<8x1xf32>
    %39 = vector.shape_cast %36 : vector<8x1xf32> to vector<1x8x1xf32>
    tpu.vector_store %arg8[%c0_23, %c0_24, %c0_25], %39 {strides = array<i32>} : memref<4x8x1xf32, #tpu.memory_space<vmem>>, vector<1x8x1xf32>,
    %c0_26 = arith.constant 0 : index
    %c0_27 = arith.constant 0 : index
    %c0_28 = arith.constant 0 : index
    %40 = vector.load %arg9[%c0_26, %c0_27, %c0_28] : memref<4x8x8xf32, #tpu.memory_space<vmem>>, vector<1x8x8xf32>
    %41 = vector.shape_cast %40 : vector<1x8x8xf32> to vector<8x8xf32>
    %42 = vector.broadcast %27 : vector<8x1xf32> to vector<8x8xf32>
    %43 = arith.mulf %42, %41 : vector<8x8xf32>
    %44 = arith.truncf %30 : vector<8x8xf32> to vector<8x8xbf16>
    %cst_29 = arith.constant dense<0.000000e+00> : vector<8x8xf32>
    %45 = tpu.matmul %44, %15, %cst_29 {dimension_numbers = #tpu.dot_dimension_numbers<[1], [0], [0], [1], [0, 0, 1, 1], [], []>} : vector<8x8xbf16>, vector<8x8xbf16>, vector<8x8xf32> -> vector<8x8xf32>
    %46 = arith.addf %43, %45 : vector<8x8xf32>
    %c0_30 = arith.constant 0 : index
    %c0_31 = arith.constant 0 : index
    %c0_32 = arith.constant 0 : index
    %47 = vector.load %arg9[%c0_30, %c0_31, %c0_32] : memref<4x8x8xf32, #tpu.memory_space<vmem>>, vector<1x8x8xf32>
    %48 = vector.shape_cast %47 : vector<1x8x8xf32> to vector<8x8xf32>
    %49 = vector.shape_cast %46 : vector<8x8xf32> to vector<1x8x8xf32>
    tpu.vector_store %arg9[%c0_30, %c0_31, %c0_32], %49 {strides = array<i32>} : memref<4x8x8xf32, #tpu.memory_space<vmem>>, vector<1x8x8xf32>,
    %c0_33 = arith.constant 0 : index
    %c0_34 = arith.constant 0 : index
    %c0_35 = arith.constant 0 : index
    %50 = vector.load %arg7[%c0_33, %c0_34, %c0_35] : memref<4x8x1xf32, #tpu.memory_space<vmem>>, vector<1x8x1xf32>
    %51 = vector.shape_cast %50 : vector<1x8x1xf32> to vector<8x1xf32>
    %52 = vector.shape_cast %25 : vector<8x1xf32> to vector<1x8x1xf32>
    tpu.vector_store %arg7[%c0_33, %c0_34, %c0_35], %52 {strides = array<i32>} : memref<4x8x1xf32, #tpu.memory_space<vmem>>, vector<1x8x1xf32>,
    %c0_36 = arith.constant 0 : index
    %c0_37 = arith.constant 0 : index
    %c8 = arith.constant 8 : index
    %53 = vector.load %arg3[%c0_36, %c0_37, %c8] : memref<1x8x32xbf16, #tpu.memory_space<vmem>>, vector<1x8x8xbf16>
    %54 = vector.shape_cast %53 : vector<1x8x8xbf16> to vector<8x8xbf16>
    %c0_38 = arith.constant 0 : index
    %c0_39 = arith.constant 0 : index
    %c8_40 = arith.constant 8 : index
    %55 = vector.load %arg4[%c0_38, %c0_39, %c8_40] : memref<1x8x64xbf16, #tpu.memory_space<vmem>>, vector<1x8x8xbf16>
    %56 = vector.shape_cast %55 : vector<1x8x8xbf16> to vector<8x8xbf16>
    %c0_41 = arith.constant 0 : index
    %c0_42 = arith.constant 0 : index
    %c40 = arith.constant 40 : index
    %57 = vector.load %arg4[%c0_41, %c0_42, %c40] : memref<1x8x64xbf16, #tpu.memory_space<vmem>>, vector<1x8x8xbf16>
    %58 = vector.shape_cast %57 : vector<1x8x8xbf16> to vector<8x8xbf16>
    %cst_43 = arith.constant dense<0.000000e+00> : vector<8x8xf32>
    %59 = tpu.matmul %54, %56, %cst_43 {dimension_numbers = #tpu.dot_dimension_numbers<[1], [1], [0], [0], [0, 0, 1, 0], [], []>} : vector<8x8xbf16>, vector<8x8xbf16>, vector<8x8xf32> -> vector<8x8xf32>
    %cst_44 = arith.constant 0.353553385 : f32
    %60 = vector.broadcast %cst_44 : f32 to vector<8x8xf32>
    %61 = arith.mulf %59, %60 : vector<8x8xf32>
    %62 = vector.broadcast %9 : vector<1x8xf32> to vector<8x8xf32>
    %63 = arith.addf %61, %62 : vector<8x8xf32>
    %c1 = arith.constant 1 : index
    %c0_45 = arith.constant 0 : index
    %c0_46 = arith.constant 0 : index
    %64 = vector.load %arg7[%c1, %c0_45, %c0_46] : memref<4x8x1xf32, #tpu.memory_space<vmem>>, vector<1x8x1xf32>
    %65 = vector.shape_cast %64 : vector<1x8x1xf32> to vector<8x1xf32>
    %cst_47 = arith.constant dense<0xFF800000> : vector<8xf32>
    %66 = vector.multi_reduction <maximumf>, %63, %cst_47 [1] : vector<8x8xf32> to vector<8xf32>
    %67 = vector.shape_cast %66 : vector<8xf32> to vector<8x1xf32>
    %68 = arith.maximumf %65, %67 : vector<8x1xf32>
    %69 = arith.subf %65, %68 : vector<8x1xf32>
    %70 = math.exp %69 : vector<8x1xf32>
    %71 = vector.broadcast %68 : vector<8x1xf32> to vector<8x8xf32>
    %72 = arith.subf %63, %71 : vector<8x8xf32>
    %73 = math.exp %72 : vector<8x8xf32>
    %c1_48 = arith.constant 1 : index
    %c0_49 = arith.constant 0 : index
    %c0_50 = arith.constant 0 : index
    %74 = vector.load %arg8[%c1_48, %c0_49, %c0_50] : memref<4x8x1xf32, #tpu.memory_space<vmem>>, vector<1x8x1xf32>
    %75 = vector.shape_cast %74 : vector<1x8x1xf32> to vector<8x1xf32>
    %76 = arith.mulf %70, %75 : vector<8x1xf32>
    %cst_51 = arith.constant dense<0.000000e+00> : vector<8xf32>
    %77 = vector.multi_reduction <add>, %73, %cst_51 [1] : vector<8x8xf32> to vector<8xf32>
    %78 = vector.shape_cast %77 : vector<8xf32> to vector<8x1xf32>
    %79 = arith.addf %76, %78 : vector<8x1xf32>
    %c1_52 = arith.constant 1 : index
    %c0_53 = arith.constant 0 : index
    %c0_54 = arith.constant 0 : index
    %80 = vector.load %arg8[%c1_52, %c0_53, %c0_54] : memref<4x8x1xf32, #tpu.memory_space<vmem>>, vector<1x8x1xf32>
    %81 = vector.shape_cast %80 : vector<1x8x1xf32> to vector<8x1xf32>
    %82 = vector.shape_cast %79 : vector<8x1xf32> to vector<1x8x1xf32>
    tpu.vector_store %arg8[%c1_52, %c0_53, %c0_54], %82 {strides = array<i32>} : memref<4x8x1xf32, #tpu.memory_space<vmem>>, vector<1x8x1xf32>,
    %c1_55 = arith.constant 1 : index
    %c0_56 = arith.constant 0 : index
    %c0_57 = arith.constant 0 : index
    %83 = vector.load %arg9[%c1_55, %c0_56, %c0_57] : memref<4x8x8xf32, #tpu.memory_space<vmem>>, vector<1x8x8xf32>
    %84 = vector.shape_cast %83 : vector<1x8x8xf32> to vector<8x8xf32>
    %85 = vector.broadcast %70 : vector<8x1xf32> to vector<8x8xf32>
    %86 = arith.mulf %85, %84 : vector<8x8xf32>
    %87 = arith.truncf %73 : vector<8x8xf32> to vector<8x8xbf16>
    %cst_58 = arith.constant dense<0.000000e+00> : vector<8x8xf32>
    %88 = tpu.matmul %87, %58, %cst_58 {dimension_numbers = #tpu.dot_dimension_numbers<[1], [0], [0], [1], [0, 0, 1, 1], [], []>} : vector<8x8xbf16>, vector<8x8xbf16>, vector<8x8xf32> -> vector<8x8xf32>
    %89 = arith.addf %86, %88 : vector<8x8xf32>
    %c1_59 = arith.constant 1 : index
    %c0_60 = arith.constant 0 : index
    %c0_61 = arith.constant 0 : index
    %90 = vector.load %arg9[%c1_59, %c0_60, %c0_61] : memref<4x8x8xf32, #tpu.memory_space<vmem>>, vector<1x8x8xf32>
    %91 = vector.shape_cast %90 : vector<1x8x8xf32> to vector<8x8xf32>
    %92 = vector.shape_cast %89 : vector<8x8xf32> to vector<1x8x8xf32>
    tpu.vector_store %arg9[%c1_59, %c0_60, %c0_61], %92 {strides = array<i32>} : memref<4x8x8xf32, #tpu.memory_space<vmem>>, vector<1x8x8xf32>,
    %c1_62 = arith.constant 1 : index
    %c0_63 = arith.constant 0 : index
    %c0_64 = arith.constant 0 : index
    %93 = vector.load %arg7[%c1_62, %c0_63, %c0_64] : memref<4x8x1xf32, #tpu.memory_space<vmem>>, vector<1x8x1xf32>
    %94 = vector.shape_cast %93 : vector<1x8x1xf32> to vector<8x1xf32>
    %95 = vector.shape_cast %68 : vector<8x1xf32> to vector<1x8x1xf32>
    tpu.vector_store %arg7[%c1_62, %c0_63, %c0_64], %95 {strides = array<i32>} : memref<4x8x1xf32, #tpu.memory_space<vmem>>, vector<1x8x1xf32>,
    %c0_65 = arith.constant 0 : index
    %c0_66 = arith.constant 0 : index
    %c16 = arith.constant 16 : index
    %96 = vector.load %arg3[%c0_65, %c0_66, %c16] : memref<1x8x32xbf16, #tpu.memory_space<vmem>>, vector<1x8x8xbf16>
    %97 = vector.shape_cast %96 : vector<1x8x8xbf16> to vector<8x8xbf16>
    %c0_67 = arith.constant 0 : index
    %c0_68 = arith.constant 0 : index
    %c16_69 = arith.constant 16 : index
    %98 = vector.load %arg4[%c0_67, %c0_68, %c16_69] : memref<1x8x64xbf16, #tpu.memory_space<vmem>>, vector<1x8x8xbf16>
    %99 = vector.shape_cast %98 : vector<1x8x8xbf16> to vector<8x8xbf16>
    %c0_70 = arith.constant 0 : index
    %c0_71 = arith.constant 0 : index
    %c48 = arith.constant 48 : index
    %100 = vector.load %arg4[%c0_70, %c0_71, %c48] : memref<1x8x64xbf16, #tpu.memory_space<vmem>>, vector<1x8x8xbf16>
    %101 = vector.shape_cast %100 : vector<1x8x8xbf16> to vector<8x8xbf16>
    %cst_72 = arith.constant dense<0.000000e+00> : vector<8x8xf32>
    %102 = tpu.matmul %97, %99, %cst_72 {dimension_numbers = #tpu.dot_dimension_numbers<[1], [1], [0], [0], [0, 0, 1, 0], [], []>} : vector<8x8xbf16>, vector<8x8xbf16>, vector<8x8xf32> -> vector<8x8xf32>
    %cst_73 = arith.constant 0.353553385 : f32
    %103 = vector.broadcast %cst_73 : f32 to vector<8x8xf32>
    %104 = arith.mulf %102, %103 : vector<8x8xf32>
    %105 = vector.broadcast %9 : vector<1x8xf32> to vector<8x8xf32>
    %106 = arith.addf %104, %105 : vector<8x8xf32>
    %c2 = arith.constant 2 : index
    %c0_74 = arith.constant 0 : index
    %c0_75 = arith.constant 0 : index
    %107 = vector.load %arg7[%c2, %c0_74, %c0_75] : memref<4x8x1xf32, #tpu.memory_space<vmem>>, vector<1x8x1xf32>
    %108 = vector.shape_cast %107 : vector<1x8x1xf32> to vector<8x1xf32>
    %cst_76 = arith.constant dense<0xFF800000> : vector<8xf32>
    %109 = vector.multi_reduction <maximumf>, %106, %cst_76 [1] : vector<8x8xf32> to vector<8xf32>
    %110 = vector.shape_cast %109 : vector<8xf32> to vector<8x1xf32>
    %111 = arith.maximumf %108, %110 : vector<8x1xf32>
    %112 = arith.subf %108, %111 : vector<8x1xf32>
    %113 = math.exp %112 : vector<8x1xf32>
    %114 = vector.broadcast %111 : vector<8x1xf32> to vector<8x8xf32>
    %115 = arith.subf %106, %114 : vector<8x8xf32>
    %116 = math.exp %115 : vector<8x8xf32>
    %c2_77 = arith.constant 2 : index
    %c0_78 = arith.constant 0 : index
    %c0_79 = arith.constant 0 : index
    %117 = vector.load %arg8[%c2_77, %c0_78, %c0_79] : memref<4x8x1xf32, #tpu.memory_space<vmem>>, vector<1x8x1xf32>
    %118 = vector.shape_cast %117 : vector<1x8x1xf32> to vector<8x1xf32>
    %119 = arith.mulf %113, %118 : vector<8x1xf32>
    %cst_80 = arith.constant dense<0.000000e+00> : vector<8xf32>
    %120 = vector.multi_reduction <add>, %116, %cst_80 [1] : vector<8x8xf32> to vector<8xf32>
    %121 = vector.shape_cast %120 : vector<8xf32> to vector<8x1xf32>
    %122 = arith.addf %119, %121 : vector<8x1xf32>
    %c2_81 = arith.constant 2 : index
    %c0_82 = arith.constant 0 : index
    %c0_83 = arith.constant 0 : index
    %123 = vector.load %arg8[%c2_81, %c0_82, %c0_83] : memref<4x8x1xf32, #tpu.memory_space<vmem>>, vector<1x8x1xf32>
    %124 = vector.shape_cast %123 : vector<1x8x1xf32> to vector<8x1xf32>
    %125 = vector.shape_cast %122 : vector<8x1xf32> to vector<1x8x1xf32>
    tpu.vector_store %arg8[%c2_81, %c0_82, %c0_83], %125 {strides = array<i32>} : memref<4x8x1xf32, #tpu.memory_space<vmem>>, vector<1x8x1xf32>,
    %c2_84 = arith.constant 2 : index
    %c0_85 = arith.constant 0 : index
    %c0_86 = arith.constant 0 : index
    %126 = vector.load %arg9[%c2_84, %c0_85, %c0_86] : memref<4x8x8xf32, #tpu.memory_space<vmem>>, vector<1x8x8xf32>
    %127 = vector.shape_cast %126 : vector<1x8x8xf32> to vector<8x8xf32>
    %128 = vector.broadcast %113 : vector<8x1xf32> to vector<8x8xf32>
    %129 = arith.mulf %128, %127 : vector<8x8xf32>
    %130 = arith.truncf %116 : vector<8x8xf32> to vector<8x8xbf16>
    %cst_87 = arith.constant dense<0.000000e+00> : vector<8x8xf32>
    %131 = tpu.matmul %130, %101, %cst_87 {dimension_numbers = #tpu.dot_dimension_numbers<[1], [0], [0], [1], [0, 0, 1, 1], [], []>} : vector<8x8xbf16>, vector<8x8xbf16>, vector<8x8xf32> -> vector<8x8xf32>
    %132 = arith.addf %129, %131 : vector<8x8xf32>
    %c2_88 = arith.constant 2 : index
    %c0_89 = arith.constant 0 : index
    %c0_90 = arith.constant 0 : index
    %133 = vector.load %arg9[%c2_88, %c0_89, %c0_90] : memref<4x8x8xf32, #tpu.memory_space<vmem>>, vector<1x8x8xf32>
    %134 = vector.shape_cast %133 : vector<1x8x8xf32> to vector<8x8xf32>
    %135 = vector.shape_cast %132 : vector<8x8xf32> to vector<1x8x8xf32>
    tpu.vector_store %arg9[%c2_88, %c0_89, %c0_90], %135 {strides = array<i32>} : memref<4x8x8xf32, #tpu.memory_space<vmem>>, vector<1x8x8xf32>,
    %c2_91 = arith.constant 2 : index
    %c0_92 = arith.constant 0 : index
    %c0_93 = arith.constant 0 : index
    %136 = vector.load %arg7[%c2_91, %c0_92, %c0_93] : memref<4x8x1xf32, #tpu.memory_space<vmem>>, vector<1x8x1xf32>
    %137 = vector.shape_cast %136 : vector<1x8x1xf32> to vector<8x1xf32>
    %138 = vector.shape_cast %111 : vector<8x1xf32> to vector<1x8x1xf32>
    tpu.vector_store %arg7[%c2_91, %c0_92, %c0_93], %138 {strides = array<i32>} : memref<4x8x1xf32, #tpu.memory_space<vmem>>, vector<1x8x1xf32>,
    %c0_94 = arith.constant 0 : index
    %c0_95 = arith.constant 0 : index
    %c24 = arith.constant 24 : index
    %139 = vector.load %arg3[%c0_94, %c0_95, %c24] : memref<1x8x32xbf16, #tpu.memory_space<vmem>>, vector<1x8x8xbf16>
    %140 = vector.shape_cast %139 : vector<1x8x8xbf16> to vector<8x8xbf16>
    %c0_96 = arith.constant 0 : index
    %c0_97 = arith.constant 0 : index
    %c24_98 = arith.constant 24 : index
    %141 = vector.load %arg4[%c0_96, %c0_97, %c24_98] : memref<1x8x64xbf16, #tpu.memory_space<vmem>>, vector<1x8x8xbf16>
    %142 = vector.shape_cast %141 : vector<1x8x8xbf16> to vector<8x8xbf16>
    %c0_99 = arith.constant 0 : index
    %c0_100 = arith.constant 0 : index
    %c56 = arith.constant 56 : index
    %143 = vector.load %arg4[%c0_99, %c0_100, %c56] : memref<1x8x64xbf16, #tpu.memory_space<vmem>>, vector<1x8x8xbf16>
    %144 = vector.shape_cast %143 : vector<1x8x8xbf16> to vector<8x8xbf16>
    %cst_101 = arith.constant dense<0.000000e+00> : vector<8x8xf32>
    %145 = tpu.matmul %140, %142, %cst_101 {dimension_numbers = #tpu.dot_dimension_numbers<[1], [1], [0], [0], [0, 0, 1, 0], [], []>} : vector<8x8xbf16>, vector<8x8xbf16>, vector<8x8xf32> -> vector<8x8xf32>
    %cst_102 = arith.constant 0.353553385 : f32
    %146 = vector.broadcast %cst_102 : f32 to vector<8x8xf32>
    %147 = arith.mulf %145, %146 : vector<8x8xf32>
    %148 = vector.broadcast %9 : vector<1x8xf32> to vector<8x8xf32>
    %149 = arith.addf %147, %148 : vector<8x8xf32>
    %c3 = arith.constant 3 : index
    %c0_103 = arith.constant 0 : index
    %c0_104 = arith.constant 0 : index
    %150 = vector.load %arg7[%c3, %c0_103, %c0_104] : memref<4x8x1xf32, #tpu.memory_space<vmem>>, vector<1x8x1xf32>
    %151 = vector.shape_cast %150 : vector<1x8x1xf32> to vector<8x1xf32>
    %cst_105 = arith.constant dense<0xFF800000> : vector<8xf32>
    %152 = vector.multi_reduction <maximumf>, %149, %cst_105 [1] : vector<8x8xf32> to vector<8xf32>
    %153 = vector.shape_cast %152 : vector<8xf32> to vector<8x1xf32>
    %154 = arith.maximumf %151, %153 : vector<8x1xf32>
    %155 = arith.subf %151, %154 : vector<8x1xf32>
    %156 = math.exp %155 : vector<8x1xf32>
    %157 = vector.broadcast %154 : vector<8x1xf32> to vector<8x8xf32>
    %158 = arith.subf %149, %157 : vector<8x8xf32>
    %159 = math.exp %158 : vector<8x8xf32>
    %c3_106 = arith.constant 3 : index
    %c0_107 = arith.constant 0 : index
    %c0_108 = arith.constant 0 : index
    %160 = vector.load %arg8[%c3_106, %c0_107, %c0_108] : memref<4x8x1xf32, #tpu.memory_space<vmem>>, vector<1x8x1xf32>
    %161 = vector.shape_cast %160 : vector<1x8x1xf32> to vector<8x1xf32>
    %162 = arith.mulf %156, %161 : vector<8x1xf32>
    %cst_109 = arith.constant dense<0.000000e+00> : vector<8xf32>
    %163 = vector.multi_reduction <add>, %159, %cst_109 [1] : vector<8x8xf32> to vector<8xf32>
    %164 = vector.shape_cast %163 : vector<8xf32> to vector<8x1xf32>
    %165 = arith.addf %162, %164 : vector<8x1xf32>
    %c3_110 = arith.constant 3 : index
    %c0_111 = arith.constant 0 : index
    %c0_112 = arith.constant 0 : index
    %166 = vector.load %arg8[%c3_110, %c0_111, %c0_112] : memref<4x8x1xf32, #tpu.memory_space<vmem>>, vector<1x8x1xf32>
    %167 = vector.shape_cast %166 : vector<1x8x1xf32> to vector<8x1xf32>
    %168 = vector.shape_cast %165 : vector<8x1xf32> to vector<1x8x1xf32>
    tpu.vector_store %arg8[%c3_110, %c0_111, %c0_112], %168 {strides = array<i32>} : memref<4x8x1xf32, #tpu.memory_space<vmem>>, vector<1x8x1xf32>,
    %c3_113 = arith.constant 3 : index
    %c0_114 = arith.constant 0 : index
    %c0_115 = arith.constant 0 : index
    %169 = vector.load %arg9[%c3_113, %c0_114, %c0_115] : memref<4x8x8xf32, #tpu.memory_space<vmem>>, vector<1x8x8xf32>
    %170 = vector.shape_cast %169 : vector<1x8x8xf32> to vector<8x8xf32>
    %171 = vector.broadcast %156 : vector<8x1xf32> to vector<8x8xf32>
    %172 = arith.mulf %171, %170 : vector<8x8xf32>
    %173 = arith.truncf %159 : vector<8x8xf32> to vector<8x8xbf16>
    %cst_116 = arith.constant dense<0.000000e+00> : vector<8x8xf32>
    %174 = tpu.matmul %173, %144, %cst_116 {dimension_numbers = #tpu.dot_dimension_numbers<[1], [0], [0], [1], [0, 0, 1, 1], [], []>} : vector<8x8xbf16>, vector<8x8xbf16>, vector<8x8xf32> -> vector<8x8xf32>
    %175 = arith.addf %172, %174 : vector<8x8xf32>
    %c3_117 = arith.constant 3 : index
    %c0_118 = arith.constant 0 : index
    %c0_119 = arith.constant 0 : index
    %176 = vector.load %arg9[%c3_117, %c0_118, %c0_119] : memref<4x8x8xf32, #tpu.memory_space<vmem>>, vector<1x8x8xf32>
    %177 = vector.shape_cast %176 : vector<1x8x8xf32> to vector<8x8xf32>
    %178 = vector.shape_cast %175 : vector<8x8xf32> to vector<1x8x8xf32>
    tpu.vector_store %arg9[%c3_117, %c0_118, %c0_119], %178 {strides = array<i32>} : memref<4x8x8xf32, #tpu.memory_space<vmem>>, vector<1x8x8xf32>,
    %c3_120 = arith.constant 3 : index
    %c0_121 = arith.constant 0 : index
    %c0_122 = arith.constant 0 : index
    %179 = vector.load %arg7[%c3_120, %c0_121, %c0_122] : memref<4x8x1xf32, #tpu.memory_space<vmem>>, vector<1x8x1xf32>
    %180 = vector.shape_cast %179 : vector<1x8x1xf32> to vector<8x1xf32>
    %181 = vector.shape_cast %154 : vector<8x1xf32> to vector<1x8x1xf32>
    tpu.vector_store %arg7[%c3_120, %c0_121, %c0_122], %181 {strides = array<i32>} : memref<4x8x1xf32, #tpu.memory_space<vmem>>, vector<1x8x1xf32>,
    %c0_i32_123 = arith.constant 0 : i32
    %182 = arith.cmpi eq, %arg2, %c0_i32_123 : i32
    %183 = arith.extui %182 : i1 to i32
    %c0_i32_124 = arith.constant 0 : i32
    %184 = arith.cmpi ne, %183, %c0_i32_124 : i32
    scf.if %184 {
      %c0_125 = arith.constant 0 : index
      %c0_126 = arith.constant 0 : index
      %c0_127 = arith.constant 0 : index
      %185 = vector.load %arg9[%c0_125, %c0_126, %c0_127] : memref<4x8x8xf32, #tpu.memory_space<vmem>>, vector<1x8x8xf32>
      %186 = vector.shape_cast %185 : vector<1x8x8xf32> to vector<8x8xf32>
      %c0_128 = arith.constant 0 : index
      %c0_129 = arith.constant 0 : index
      %c0_130 = arith.constant 0 : index
      %187 = vector.load %arg8[%c0_128, %c0_129, %c0_130] : memref<4x8x1xf32, #tpu.memory_space<vmem>>, vector<1x8x1xf32>
      %188 = vector.shape_cast %187 : vector<1x8x1xf32> to vector<8x1xf32>
      %189 = tpu.reciprocal %188 {approx = true} : vector<8x1xf32> -> vector<8x1xf32>
      %190 = vector.broadcast %189 : vector<8x1xf32> to vector<8x8xf32>
      %191 = arith.mulf %186, %190 : vector<8x8xf32>
      %192 = arith.truncf %191 : vector<8x8xf32> to vector<8x8xbf16>
      %c0_131 = arith.constant 0 : index
      %c0_132 = arith.constant 0 : index
      %c0_133 = arith.constant 0 : index
      %193 = vector.load %arg6[%c0_131, %c0_132, %c0_133] : memref<1x8x32xbf16, #tpu.memory_space<vmem>>, vector<1x8x8xbf16>
      %194 = vector.shape_cast %193 : vector<1x8x8xbf16> to vector<8x8xbf16>
      %195 = vector.shape_cast %192 : vector<8x8xbf16> to vector<1x8x8xbf16>
      tpu.vector_store %arg6[%c0_131, %c0_132, %c0_133], %195 {strides = array<i32>} : memref<1x8x32xbf16, #tpu.memory_space<vmem>>, vector<1x8x8xbf16>,
      %c1_134 = arith.constant 1 : index
      %c0_135 = arith.constant 0 : index
      %c0_136 = arith.constant 0 : index
      %196 = vector.load %arg9[%c1_134, %c0_135, %c0_136] : memref<4x8x8xf32, #tpu.memory_space<vmem>>, vector<1x8x8xf32>
      %197 = vector.shape_cast %196 : vector<1x8x8xf32> to vector<8x8xf32>
      %c1_137 = arith.constant 1 : index
      %c0_138 = arith.constant 0 : index
      %c0_139 = arith.constant 0 : index
      %198 = vector.load %arg8[%c1_137, %c0_138, %c0_139] : memref<4x8x1xf32, #tpu.memory_space<vmem>>, vector<1x8x1xf32>
      %199 = vector.shape_cast %198 : vector<1x8x1xf32> to vector<8x1xf32>
      %200 = tpu.reciprocal %199 {approx = true} : vector<8x1xf32> -> vector<8x1xf32>
      %201 = vector.broadcast %200 : vector<8x1xf32> to vector<8x8xf32>
      %202 = arith.mulf %197, %201 : vector<8x8xf32>
      %203 = arith.truncf %202 : vector<8x8xf32> to vector<8x8xbf16>
      %c0_140 = arith.constant 0 : index
      %c0_141 = arith.constant 0 : index
      %c8_142 = arith.constant 8 : index
      %204 = vector.load %arg6[%c0_140, %c0_141, %c8_142] : memref<1x8x32xbf16, #tpu.memory_space<vmem>>, vector<1x8x8xbf16>
      %205 = vector.shape_cast %204 : vector<1x8x8xbf16> to vector<8x8xbf16>
      %206 = vector.shape_cast %203 : vector<8x8xbf16> to vector<1x8x8xbf16>
      tpu.vector_store %arg6[%c0_140, %c0_141, %c8_142], %206 {strides = array<i32>} : memref<1x8x32xbf16, #tpu.memory_space<vmem>>, vector<1x8x8xbf16>,
      %c2_143 = arith.constant 2 : index
      %c0_144 = arith.constant 0 : index
      %c0_145 = arith.constant 0 : index
      %207 = vector.load %arg9[%c2_143, %c0_144, %c0_145] : memref<4x8x8xf32, #tpu.memory_space<vmem>>, vector<1x8x8xf32>
      %208 = vector.shape_cast %207 : vector<1x8x8xf32> to vector<8x8xf32>
      %c2_146 = arith.constant 2 : index
      %c0_147 = arith.constant 0 : index
      %c0_148 = arith.constant 0 : index
      %209 = vector.load %arg8[%c2_146, %c0_147, %c0_148] : memref<4x8x1xf32, #tpu.memory_space<vmem>>, vector<1x8x1xf32>
      %210 = vector.shape_cast %209 : vector<1x8x1xf32> to vector<8x1xf32>
      %211 = tpu.reciprocal %210 {approx = true} : vector<8x1xf32> -> vector<8x1xf32>
      %212 = vector.broadcast %211 : vector<8x1xf32> to vector<8x8xf32>
      %213 = arith.mulf %208, %212 : vector<8x8xf32>
      %214 = arith.truncf %213 : vector<8x8xf32> to vector<8x8xbf16>
      %c0_149 = arith.constant 0 : index
      %c0_150 = arith.constant 0 : index
      %c16_151 = arith.constant 16 : index
      %215 = vector.load %arg6[%c0_149, %c0_150, %c16_151] : memref<1x8x32xbf16, #tpu.memory_space<vmem>>, vector<1x8x8xbf16>
      %216 = vector.shape_cast %215 : vector<1x8x8xbf16> to vector<8x8xbf16>
      %217 = vector.shape_cast %214 : vector<8x8xbf16> to vector<1x8x8xbf16>
      tpu.vector_store %arg6[%c0_149, %c0_150, %c16_151], %217 {strides = array<i32>} : memref<1x8x32xbf16, #tpu.memory_space<vmem>>, vector<1x8x8xbf16>,
      %c3_152 = arith.constant 3 : index
      %c0_153 = arith.constant 0 : index
      %c0_154 = arith.constant 0 : index
      %218 = vector.load %arg9[%c3_152, %c0_153, %c0_154] : memref<4x8x8xf32, #tpu.memory_space<vmem>>, vector<1x8x8xf32>
      %219 = vector.shape_cast %218 : vector<1x8x8xf32> to vector<8x8xf32>
      %c3_155 = arith.constant 3 : index
      %c0_156 = arith.constant 0 : index
      %c0_157 = arith.constant 0 : index
      %220 = vector.load %arg8[%c3_155, %c0_156, %c0_157] : memref<4x8x1xf32, #tpu.memory_space<vmem>>, vector<1x8x1xf32>
      %221 = vector.shape_cast %220 : vector<1x8x1xf32> to vector<8x1xf32>
      %222 = tpu.reciprocal %221 {approx = true} : vector<8x1xf32> -> vector<8x1xf32>
      %223 = vector.broadcast %222 : vector<8x1xf32> to vector<8x8xf32>
      %224 = arith.mulf %219, %223 : vector<8x8xf32>
      %225 = arith.truncf %224 : vector<8x8xf32> to vector<8x8xbf16>
      %c0_158 = arith.constant 0 : index
      %c0_159 = arith.constant 0 : index
      %c24_160 = arith.constant 24 : index
      %226 = vector.load %arg6[%c0_158, %c0_159, %c24_160] : memref<1x8x32xbf16, #tpu.memory_space<vmem>>, vector<1x8x8xbf16>
      %227 = vector.shape_cast %226 : vector<1x8x8xbf16> to vector<8x8xbf16>
      %228 = vector.shape_cast %225 : vector<8x8xbf16> to vector<1x8x8xbf16>
      tpu.vector_store %arg6[%c0_158, %c0_159, %c24_160], %228 {strides = array<i32>} : memref<1x8x32xbf16, #tpu.memory_space<vmem>>, vector<1x8x8xbf16>,
    } else {
    }
    return
  }
  func.func @transform_0(%arg0: i32, %arg1: i32, %arg2: i32) -> (i32, i32, i32) {
    %c0_i32 = arith.constant 0 : i32
    %c0_i32_0 = arith.constant 0 : i32
    return %arg0, %arg1, %c0_i32 : i32, i32, i32
  }
  func.func @transform_1(%arg0: i32, %arg1: i32, %arg2: i32) -> (i32, i32, i32) {
    %c0_i32 = arith.constant 0 : i32
    %c0_i32_0 = arith.constant 0 : i32
    return %arg0, %arg2, %c0_i32 : i32, i32, i32
  }
  func.func @transform_2(%arg0: i32, %arg1: i32, %arg2: i32) -> (i32, i32, i32) {
    %c0_i32 = arith.constant 0 : i32
    %c0_i32_0 = arith.constant 0 : i32
    return %arg0, %c0_i32, %arg2 : i32, i32, i32
  }
  func.func @transform_3(%arg0: i32, %arg1: i32, %arg2: i32) -> (i32, i32, i32) {
    %c0_i32 = arith.constant 0 : i32
    %c0_i32_0 = arith.constant 0 : i32
    return %arg0, %arg1, %c0_i32 : i32, i32, i32
  }
}

module attributes {stable_mosaic.version = 11 : i64} {
  func.func @kernel(%arg0: i32, %arg1: i32, %arg2: i32, %arg3: memref<16x32xbf16, #tpu.memory_space<vmem>>, %arg4: memref<32x32xbf16, #tpu.memory_space<vmem>>, %arg5: memref<1x32xf32, #tpu.memory_space<vmem>>, %arg6: memref<16x32xf32, #tpu.memory_space<vmem>>, %arg7: memref<16x32xf32, #tpu.memory_space<vmem>>) attributes {dimension_semantics = [#tpu.dimension_semantics<parallel>, #tpu.dimension_semantics<parallel>, #tpu.dimension_semantics<arbitrary>], iteration_bounds = array<i64: 1, 1, 1>, scalar_prefetch = 0 : i64, scratch_operands = 1 : i64, tpu.core_type = #tpu.core_type<tc>, window_params = [{transform_indices = @transform_0, window_bounds = array<i64: 16, 32>}, {transform_indices = @transform_1, window_bounds = array<i64: 32, 32>}, {transform_indices = @transform_2, window_bounds = array<i64: 1, 32>}, {transform_indices = @transform_3, window_bounds = array<i64: 16, 32>}]} {
    %c0_i32 = arith.constant 0 : i32
    %0 = arith.cmpi eq, %arg2, %c0_i32 : i32
    %1 = arith.extui %0 : i1 to i32
    %c0_i32_0 = arith.constant 0 : i32
    %2 = arith.cmpi ne, %1, %c0_i32_0 : i32
    scf.if %2 {
      %cst_10 = arith.constant 0.000000e+00 : f32
      %12 = vector.broadcast %cst_10 : f32 to vector<16x32xf32>
      %c0_11 = arith.constant 0 : index
      %c0_12 = arith.constant 0 : index
      %13 = vector.load %arg7[%c0_11, %c0_12] : memref<16x32xf32, #tpu.memory_space<vmem>>, vector<16x32xf32>
      tpu.vector_store %arg7[%c0_11, %c0_12], %12 {strides = array<i32>} : memref<16x32xf32, #tpu.memory_space<vmem>>, vector<16x32xf32>,
    } else {
    }
    %c0 = arith.constant 0 : index
    %c0_1 = arith.constant 0 : index
    %3 = vector.load %arg7[%c0, %c0_1] : memref<16x32xf32, #tpu.memory_space<vmem>>, vector<16x32xf32>
    %c0_2 = arith.constant 0 : index
    %c0_3 = arith.constant 0 : index
    %4 = vector.load %arg3[%c0_2, %c0_3] : memref<16x32xbf16, #tpu.memory_space<vmem>>, vector<16x32xbf16>
    %c0_4 = arith.constant 0 : index
    %c0_5 = arith.constant 0 : index
    %5 = vector.load %arg4[%c0_4, %c0_5] : memref<32x32xbf16, #tpu.memory_space<vmem>>, vector<32x32xbf16>
    %cst = arith.constant dense<0.000000e+00> : vector<16x32xf32>
    %6 = tpu.matmul %4, %5, %cst {dimension_numbers = #tpu.dot_dimension_numbers<[1], [0], [0], [1], [0, 0, 1, 1], [], []>} : vector<16x32xbf16>, vector<32x32xbf16>, vector<16x32xf32> -> vector<16x32xf32>
    %7 = arith.addf %3, %6 : vector<16x32xf32>
    %c0_6 = arith.constant 0 : index
    %c0_7 = arith.constant 0 : index
    %8 = vector.load %arg7[%c0_6, %c0_7] : memref<16x32xf32, #tpu.memory_space<vmem>>, vector<16x32xf32>
    tpu.vector_store %arg7[%c0_6, %c0_7], %7 {strides = array<i32>} : memref<16x32xf32, #tpu.memory_space<vmem>>, vector<16x32xf32>,
    %c0_i32_8 = arith.constant 0 : i32
    %9 = arith.cmpi eq, %arg2, %c0_i32_8 : i32
    %10 = arith.extui %9 : i1 to i32
    %c0_i32_9 = arith.constant 0 : i32
    %11 = arith.cmpi ne, %10, %c0_i32_9 : i32
    scf.if %11 {
      %c0_10 = arith.constant 0 : index
      %c0_11 = arith.constant 0 : index
      %12 = vector.load %arg7[%c0_10, %c0_11] : memref<16x32xf32, #tpu.memory_space<vmem>>, vector<16x32xf32>
      %c0_12 = arith.constant 0 : index
      %c0_13 = arith.constant 0 : index
      %13 = vector.load %arg5[%c0_12, %c0_13] : memref<1x32xf32, #tpu.memory_space<vmem>>, vector<1x32xf32>
      %14 = vector.broadcast %13 : vector<1x32xf32> to vector<16x32xf32>
      %15 = arith.addf %12, %14 : vector<16x32xf32>
      %c0_14 = arith.constant 0 : index
      %c0_15 = arith.constant 0 : index
      %16 = vector.load %arg6[%c0_14, %c0_15] : memref<16x32xf32, #tpu.memory_space<vmem>>, vector<16x32xf32>
      tpu.vector_store %arg6[%c0_14, %c0_15], %15 {strides = array<i32>} : memref<16x32xf32, #tpu.memory_space<vmem>>, vector<16x32xf32>,
    } else {
    }
    return
  }
  func.func @transform_0(%arg0: i32, %arg1: i32, %arg2: i32) -> (i32, i32) {
    %c0_i32 = arith.constant 0 : i32
    return %arg0, %arg2 : i32, i32
  }
  func.func @transform_1(%arg0: i32, %arg1: i32, %arg2: i32) -> (i32, i32) {
    %c0_i32 = arith.constant 0 : i32
    return %arg2, %arg1 : i32, i32
  }
  func.func @transform_2(%arg0: i32, %arg1: i32, %arg2: i32) -> (i32, i32) {
    %c0_i32 = arith.constant 0 : i32
    %c0_i32_0 = arith.constant 0 : i32
    return %c0_i32, %arg1 : i32, i32
  }
  func.func @transform_3(%arg0: i32, %arg1: i32, %arg2: i32) -> (i32, i32) {
    %c0_i32 = arith.constant 0 : i32
    return %arg0, %arg1 : i32, i32
  }
}

</mosaic_0001>

<bundles_post_ra>
// kernel: _lambda_.32
= control target key start
LH: loop header
LB: loop body
LE: loop exit
PB: predicated region body
PF: predicated region fallthrough
CT: control target
= control target key end

     0   :  { %vm19_vm0 = vcmask 523264   ;;  %v110_v1 = vmov 0.0   ;;  %vm47_vm1 = vcmask 261120   ;;  %vm85_vm2 = vcmask 519168   ;;  %s153_s1 = inlined_call_operand.vmem [shape: bf16[32,64], index: 1, kind: input, shape index: {}]   ;;  %s154_s2 = inlined_call_operand.vmem [shape: f32[1,64], index: 2, kind: input, shape index: {}]   ;;  %s155_s0 = inlined_call_operand.vmem [shape: bf16[16,32], index: 0, kind: input, shape index: {}]   ;;  %s156_s3 = inlined_call_operand.vmem [shape: bf16[16,64], index: 3, kind: output, shape index: {}]  }
   0x1   :  { %v107_v0 = vld [vmem:[%s153_s1 + $0x8] sm:$0xff]  ;;  %20 = vst.msk [vmem:[#allocation2] sm:$0xff] %vm19_vm0, %v110_v1  ;;  %v106_v2 = vld [vmem:[%s153_s1] sm:$0xff] }
   0x2   :  { %21 = vst.msk [vmem:[#allocation2 + $0x8] sm:$0xff] %vm19_vm0, %v110_v1  ;;  %57 = vmatpush.bf16.msra.mxu0 %v107_v0  ;;  %v105_v3 = vld [vmem:[%s155_s0] sm:$0xff] }
   0x3   :  { %v109_v8 = vld [vmem:[%s154_s2] ss:$0 sm:$0xff] }
   0x6   :  { %58 = vmatpush.bf16.msra.mxu0 %v106_v2 }
   0x8   :  { %v22_v4 = vld [vmem:[#allocation2] sm:$0xff] }
   0x9   :  { %104 = vmatmul.msk.bf16.vlgmr.msra.gmra.mxu0 %vm47_vm1, %v105_v3  ;;  %v23_v7 = vld [vmem:[#allocation2 + $0x8] sm:$0xff] }
  0x86   :  { %v60_v5 = vpop.f32.mrf.mxu0 }
  0x87   :  { %v65_v6 = vadd.f32 %v60_v5, %v22_v4 }
  0x89   :  { %68 = vst.msk [vmem:[#allocation2] sm:$0xff] %vm19_vm0, %v65_v6 }
  0x8e   :  { %v62_v9 = vpop.f32.mrf.mxu0 }
  0x8f   :  { %v66_v10 = vadd.f32 %v62_v9, %v23_v7 }
  0x90   :  { %v73_v11 = vld [vmem:[#allocation2] sm:$0xff] }
  0x91   :  { %v79_v12 = vadd.f32 %v109_v8, %v73_v11  ;;  %69 = vst.msk [vmem:[#allocation2 + $0x8] sm:$0xff] %vm19_vm0, %v66_v10 }
  0x93   :  { %v81_v13 = vmax.f32 %v79_v12, 0.0 }
  0x95   :  { %v83_v14 = vpack.c.bf16 %v81_v13, %v81_v13 }
  0x97   :  { %86 = vst.msk [vmem:[%s156_s3] sm:$0xf] %vm85_vm2, %v83_v14 }
  0x98   :  { %v74_v15 = vld [vmem:[#allocation2 + $0x8] sm:$0xff] }
  0x99   :  { %v80_v16 = vadd.f32 %v109_v8, %v74_v15 }
  0x9b   :  { %v82_v17 = vmax.f32 %v80_v16, 0.0 }
  0x9d   :  { %v84_v18 = vpack.c.bf16 %v82_v17, %v82_v17 }
  0x9f   :  { %87 = vst.msk [vmem:[%s156_s3 + $0x4] sm:$0xf] %vm85_vm2, %v84_v18 }

// kernel: _lambda_.29
= control target key start
LH: loop header
LB: loop body
LE: loop exit
PB: predicated region body
PF: predicated region fallthrough
CT: control target
= control target key end

     0   :  { %8 = vsyncpa [#allocation4], 0  ;;  %s240_s0 = inlined_call_operand.vmem [shape: bf16[16,32], index: 0, kind: input, shape index: {}]   ;;  %s241_s1 = inlined_call_operand.hbm [shape: bf16[32,96], index: 1, kind: input, shape index: {}]   ;;  %s242_s2 = inlined_call_operand.hbm [shape: f32[1,96], index: 2, kind: input, shape index: {}]   ;;  %s243_s3 = inlined_call_operand.vmem [shape: bf16[16,96], index: 3, kind: output, shape index: {}]  }
   0x1   :  { %s16_s14 = sshll.u32 %s241_s1, 4  ;;  %s17_s14 = int_to_ptr.hbm [resolvable:$true] %s16_s14 }
   0x2   :  { %9 = vsyncpa [#allocation6], 0  ;;  %s196_s15 = smov [#allocation3]   ;;  %s30_s19 = sshll.u32 %s242_s2, 4  ;;  %s31_s19 = int_to_ptr.hbm [resolvable:$true] %s30_s19 }
   0x3   :  { %s18_s16 = sshll.u32 %s196_s15, 4  ;;  %s197_s20 = smov 64   ;;  %s19_s16 = int_to_ptr.vmem [resolvable:$true] %s18_s16 }
   0x4   :  { %s198_s21 = smov 4   ;;  %s199_s22 = smov [#allocation5]  }
   0x5   :  { %24 = dma.hbm_to_vmem [thread:$0]  %s17_s14, 256, %s19_s16, [#allocation4], %s197_s20, %s197_s20, %s198_s21  }
   0x6   :  { %s32_s23 = sshll.u32 %s199_s22, 4  ;;  %s33_s23 = int_to_ptr.vmem [resolvable:$true] %s32_s23 }
   0x7   :  { %35 = dma.hbm_to_vmem [thread:$0]  %s31_s19, 16, %s33_s23, [#allocation6]  }
   0x8   :  { %192 = dma.done.wait [#allocation4], 256  }
   0x9   :  { %193 = vsyncadd [#allocation4], 4294967040 }
   0xa   :  { %194 = dma.done.wait [#allocation6], 16  }
   0xb   :  { %195 = vsyncadd [#allocation6], 4294967280  ;;  %vm49_vm0 = vcmask 785408   ;;  %v200_v0 = vmov 0.0   ;;  %v137_v1 = vld [vmem:[#allocation3 + $0x8] sm:$0xff]  ;;  %v136_v2 = vld [vmem:[#allocation3] sm:$0xff] }
   0xc   :  { %50 = vst.msk [vmem:[#allocation2] sm:$0xff] %vm49_vm0, %v200_v0  ;;  %87 = vmatpush.bf16.msra.mxu0 %v137_v1  ;;  %v135_v3 = vld [vmem:[%s240_s0] sm:$0xff]  ;;  %vm77_vm1 = vcmask 261120   ;;  %vm113_vm2 = vcmask 781312  }
   0xd   :  { %51 = vst.msk [vmem:[#allocation2 + $0x8] sm:$0xff] %vm49_vm0, %v200_v0  ;;  %v143_v8 = vld [vmem:[#allocation5] ss:$0 sm:$0xff] }
  0x10   :  { %88 = vmatpush.bf16.msra.mxu0 %v136_v2 }
  0x13   :  { %134 = vmatmul.msk.bf16.vlgmr.msra.gmra.mxu0 %vm77_vm1, %v135_v3  ;;  %v52_v4 = vld [vmem:[#allocation2] sm:$0xff] }
  0x14   :  { %v53_v7 = vld [vmem:[#allocation2 + $0x8] sm:$0xff] }
  0x90   :  { %v90_v5 = vpop.f32.mrf.mxu0 }
  0x91   :  { %v95_v6 = vadd.f32 %v90_v5, %v52_v4 }
  0x93   :  { %98 = vst.msk [vmem:[#allocation2] sm:$0xff] %vm49_vm0, %v95_v6 }
  0x98   :  { %v92_v9 = vpop.f32.mrf.mxu0 }
  0x99   :  { %v96_v10 = vadd.f32 %v92_v9, %v53_v7 }
  0x9a   :  { %v103_v11 = vld [vmem:[#allocation2] sm:$0xff] }
  0x9b   :  { %v109_v12 = vadd.f32 %v143_v8, %v103_v11  ;;  %99 = vst.msk [vmem:[#allocation2 + $0x8] sm:$0xff] %vm49_vm0, %v96_v10 }
  0x9d   :  { %v111_v13 = vpack.c.bf16 %v109_v12, %v109_v12 }
  0x9f   :  { %114 = vst.msk [vmem:[%s243_s3] sm:$0xf] %vm113_vm2, %v111_v13 }
  0xa2   :  { %v104_v14 = vld [vmem:[#allocation2 + $0x8] sm:$0xff] }
  0xa3   :  { %v110_v15 = vadd.f32 %v143_v8, %v104_v14 }
  0xa5   :  { %v112_v16 = vpack.c.bf16 %v110_v15, %v110_v15 }
  0xa7   :  { %115 = vst.msk [vmem:[%s243_s3 + $0x4] sm:$0xf] %vm113_vm2, %v112_v16 }
  0xa8   :  { %120 = vsyncpa [#allocation4], 1 }
  0xa9   :  { %121 = vsyncpa [#allocation6], 1 }

// kernel: _lambda_.31
= control target key start
LH: loop header
LB: loop body
LE: loop exit
PB: predicated region body
PF: predicated region fallthrough
CT: control target
= control target key end

     0   :  { %11 = vsyncpa [#allocation4], 0  ;;  %s244_s24 = smov [#allocation3]   ;;  %s245_s26 = smov 64   ;;  %s317_s0 = inlined_call_operand.vmem [shape: bf16[16,32], index: 0, kind: input, shape index: {}]   ;;  %s318_s1 = inlined_call_operand.hbm [shape: bf16[32,32], index: 1, kind: input, shape index: {}]   ;;  %s319_s2 = inlined_call_operand.vmem [shape: f32[1,32], index: 2, kind: input, shape index: {}]   ;;  %s320_s3 = inlined_call_operand.vmem [shape: bf16[16,32], index: 3, kind: input, shape index: {}]   ;;  %s321_s4 = inlined_call_operand.vmem [shape: f32[1,32], index: 4, kind: input, shape index: {}]   ;;  %s322_s5 = inlined_call_operand.vmem [shape: f32[1,32], index: 5, kind: input, shape index: {}]   ;;  %s323_s6 = inlined_call_operand.vmem [shape: bf16[16,32], index: 6, kind: output, shape index: {}]  }
   0x1   :  { %s18_s23 = sshll.u32 %s318_s1, 4  ;;  %s20_s25 = sshll.u32 %s244_s24, 4  ;;  %s19_s23 = int_to_ptr.hbm [resolvable:$true] %s18_s23  ;;  %s21_s25 = int_to_ptr.vmem [resolvable:$true] %s20_s25 }
   0x2   :  { %s246_s27 = smov 4  }
   0x3   :  { %26 = dma.hbm_to_vmem [thread:$0]  %s19_s23, 256, %s21_s25, [#allocation4], %s245_s26, %s245_s26, %s246_s27  }
   0x4   :  { %242 = dma.done.wait [#allocation4], 256  }
   0x5   :  { %243 = vsyncadd [#allocation4], 4294967040  ;;  %vm44_vm0 = vcmask 261120   ;;  %v247_v0 = vmov 0.0   ;;  %v199_v1 = vld [vmem:[#allocation3 + $0x8] sm:$0xff]  ;;  %v198_v2 = vld [vmem:[#allocation3] sm:$0xff] }
   0x6   :  { %45 = vst.msk [vmem:[#allocation2] sm:$0xff] %vm44_vm0, %v247_v0  ;;  %82 = vmatpush.bf16.msra.mxu0 %v199_v1  ;;  %v197_v3 = vld [vmem:[%s317_s0] sm:$0xff]  ;;  %v248_v22 = vmov 32.0   ;;  %vm176_vm6 = vcmask 257024  }
   0x7   :  { %46 = vst.msk [vmem:[#allocation2 + $0x8] sm:$0xff] %vm44_vm0, %v247_v0  ;;  %v201_v8 = vld [vmem:[%s320_s3] sm:$0xff]   ;;  %212 = vrcp.f32 %v248_v22 }
   0x8   :  { %v209_v9 = vld [vmem:[%s319_s2] ss:$0 sm:$0xff]  ;;  %v202_v12 = vunpack.c.l.bf16 %v201_v8  ;;  %v203_v17 = vunpack.c.h.bf16 %v201_v8 }
   0x9   :  { %v210_v53 = vld [vmem:[%s321_s4] ss:$0 sm:$0xff] }
   0xa   :  { %83 = vmatpush.bf16.msra.mxu0 %v198_v2  ;;  %v211_v56 = vld [vmem:[%s322_s5] ss:$0 sm:$0xff] }
   0xd   :  { %196 = vmatmul.msk.bf16.vlgmr.msra.gmra.mxu0 %vm44_vm0, %v197_v3  ;;  %v47_v4 = vld [vmem:[#allocation2] sm:$0xff]  ;;  %v213_v23 = vpop.eup %212 }
   0xe   :  { %v48_v7 = vld [vmem:[#allocation2 + $0x8] sm:$0xff]  ;;  %v118_v24 = vmul.f32 32.0, %v213_v23  ;;  %vm122_vm1 = vweird.f32 %v213_v23 }
  0x10   :  { %v119_v25 = vsub.f32 1.0, %v118_v24 }
  0x12   :  { %v120_v26 = vmul.f32 %v213_v23, %v119_v25 }
  0x14   :  { %v121_v27 = vadd.f32 %v213_v23, %v120_v26 }
  0x16   :  { %v123_v28 = vsel %vm122_vm1, %v213_v23, %v121_v27 }
  0x8a   :  { %v85_v5 = vpop.f32.mrf.mxu0 }
  0x8b   :  { %v90_v6 = vadd.f32 %v85_v5, %v47_v4 }
  0x8d   :  { %92 = vst.msk [vmem:[#allocation2] sm:$0xff] %vm44_vm0, %v90_v6 }
  0x92   :  { %v87_v10 = vpop.f32.mrf.mxu0 }
  0x93   :  { %v91_v11 = vadd.f32 %v87_v10, %v48_v7 }
  0x94   :  { %v97_v13 = vld [vmem:[#allocation2] sm:$0xff] }
  0x95   :  { %93 = vst.msk [vmem:[#allocation2 + $0x8] sm:$0xff] %vm44_vm0, %v91_v11  ;;  %v103_v14 = vadd.f32 %v209_v9, %v97_v13 }
  0x97   :  { %v109_v15 = vadd.f32 %v202_v12, %v103_v14 }
  0x99   :  { %v111_v16 = vsel %vm44_vm0, %v109_v15, 0.0 }
  0x9a   :  { %112 = vadd.xlane.f32.xlu0 %v111_v16 }
  0x9c   :  { %v98_v18 = vld [vmem:[#allocation2 + $0x8] sm:$0xff] }
  0x9d   :  { %v104_v19 = vadd.f32 %v209_v9, %v98_v18 }
  0x9f   :  { %v110_v20 = vadd.f32 %v203_v17, %v104_v19 }
  0xa1   :  { %v114_v21 = vsel %vm44_vm0, %v110_v20, 0.0 }
  0xa2   :  { %115 = vadd.xlane.f32.xlu0 %v114_v21 }
 0x10d   :  { %v113_v29 = vpop.xlane.xlu0 %112 }
 0x10e   :  { %v124_v30 = vmul.f32 %v123_v28, %v113_v29 }
 0x110   :  { %v126_v31 = vsub.f32 %v109_v15, %v124_v30 }
 0x112   :  { %v128_v32 = vmul.f32 %v126_v31, %v126_v31 }
 0x114   :  { %v130_v33 = vsel %vm44_vm0, %v128_v32, 0.0 }
 0x115   :  { %131 = vadd.xlane.f32.xlu1 %v130_v33  ;;  %v116_v34 = vpop.xlane.xlu0 %115 }
 0x116   :  { %v125_v35 = vmul.f32 %v123_v28, %v116_v34 }
 0x118   :  { %v127_v36 = vsub.f32 %v110_v20, %v125_v35 }
 0x11a   :  { %v129_v37 = vmul.f32 %v127_v36, %v127_v36 }
 0x11c   :  { %v133_v38 = vsel %vm44_vm0, %v129_v37, 0.0 }
 0x11d   :  { %134 = vadd.xlane.f32.xlu1 %v133_v38 }
 0x188   :  { %v132_v39 = vpop.xlane.xlu1 %131 }
 0x189   :  { %v136_v40 = vmul.f32 %v132_v39, %v123_v28 }
 0x18b   :  { %v138_v41 = vadd.f32 1e-05, %v136_v40 }
 0x18d   :  { %214 = vrsqrt.f32 %v138_v41  ;;  %vm146_vm3 = vweird.f32 %v138_v41 }
 0x190   :  { %v135_v42 = vpop.xlane.xlu1 %134 }
 0x191   :  { %v137_v43 = vmul.f32 %v135_v42, %v123_v28 }
 0x193   :  { %v215_v44 = vpop.eup %214  ;;  %v139_v45 = vadd.f32 1e-05, %v137_v43 }
 0x194   :  { %v141_v46 = vmul.f32 %v215_v44, %v138_v41  ;;  %vm147_vm2 = vweird.f32 %v215_v44 }
 0x195   :  { %216 = vrsqrt.f32 %v139_v45  ;;  %vm148_vm4 = vmor %vm146_vm3, %vm147_vm2  ;;  %vm156_vm7 = vweird.f32 %v139_v45 }
 0x196   :  { %v142_v47 = vmul.f32 %v215_v44, %v141_v46 }
 0x198   :  { %v143_v48 = vmul.f32 0.5, %v142_v47 }
 0x19a   :  { %v144_v49 = vsub.f32 1.5, %v143_v48 }
 0x19b   :  { %v217_v50 = vpop.eup %216 }
 0x19c   :  { %v145_v51 = vmul.f32 %v215_v44, %v144_v49  ;;  %v151_v52 = vmul.f32 %v217_v50, %v139_v45  ;;  %vm157_vm5 = vweird.f32 %v217_v50 }
 0x19d   :  { %vm158_vm8 = vmor %vm156_vm7, %vm157_vm5 }
 0x19e   :  { %v149_v54 = vsel %vm148_vm4, %v215_v44, %v145_v51  ;;  %v152_v55 = vmul.f32 %v217_v50, %v151_v52 }
 0x19f   :  { %v160_v57 = vmul.f32 %v149_v54, %v126_v31 }
 0x1a0   :  { %v153_v58 = vmul.f32 0.5, %v152_v55 }
 0x1a1   :  { %v166_v59 = vmul.f32 %v210_v53, %v160_v57 }
 0x1a2   :  { %v154_v60 = vsub.f32 1.5, %v153_v58 }
 0x1a3   :  { %v172_v61 = vadd.f32 %v211_v56, %v166_v59 }
 0x1a4   :  { %v155_v62 = vmul.f32 %v217_v50, %v154_v60 }
 0x1a5   :  { %v174_v63 = vpack.c.bf16 %v172_v61, %v172_v61 }
 0x1a6   :  { %v159_v0 = vsel %vm158_vm8, %v217_v50, %v155_v62 }
 0x1a7   :  { %177 = vst.msk [vmem:[%s323_s6] sm:$0xf] %vm176_vm6, %v174_v63  ;;  %v161_v1 = vmul.f32 %v159_v0, %v127_v36 }
 0x1a9   :  { %v167_v2 = vmul.f32 %v210_v53, %v161_v1 }
 0x1ab   :  { %v173_v3 = vadd.f32 %v211_v56, %v167_v2 }
 0x1ad   :  { %v175_v4 = vpack.c.bf16 %v173_v3, %v173_v3 }
 0x1af   :  { %178 = vst.msk [vmem:[%s323_s6 + $0x4] sm:$0xf] %vm176_vm6, %v175_v4 }
 0x1b0   :  { %183 = vsyncpa [#allocation4], 1 }

// kernel: _lambda_.30
= control target key start
LH: loop header
LB: loop body
LE: loop exit
PB: predicated region body
PF: predicated region fallthrough
CT: control target
= control target key end

     0   :  { %s957_s12 = smov 0   ;;  %s959_s13 = smov 0   ;;  %s1101_s0 = inlined_call_operand.vmem [shape: bf16[2,8,96], index: 0, kind: input, shape index: {}, may-alias: {0,1}]   ;;  %s1102_s1 = inlined_call_operand.vmem [shape: bf16[2,8,96], index: 1, kind: input, shape index: {}, may-alias: {0,1}]   ;;  %s1103_s2 = inlined_call_operand.vmem [shape: f32[2,1,8], index: 2, kind: input, shape index: {}]   ;;  %s1104_s3 = inlined_call_operand.vmem [shape: bf16[2,8,32], index: 3, kind: output, shape index: {}]  }
   0x1   :  { %s961_s14 = smov 0  }
   0x2 LB: > { %s32_s15 = sadd.s32 1, %s913_s13  ;;  %p812_p0 = scmp.ge.s32.totalorder %s917_s14, 1  ;;  %s917_s14 = sphi %s961_s14, %s13_s14   ;;  %s913_s13 = sphi %s959_s13, %s1106_s13   ;;  %s909_s12 = sphi %s957_s12, %s1105_s12  }
   0x3   : > { %p34_p1 = scmp.ge.s32.totalorder %s32_s15, 2  ;;  %p189_p2 = scmp.lt.s32.totalorder %s917_s14, 3 }
   0x5   : > { %s1108_s15 = smov (%p34_p1, %s32_s15), 0  ;;  %p190_p3 = pnand %p812_p0, %p189_p2 }
   0x6   : > { %p230_p4 = scmp.lt.s32.totalorder (!%p190_p3), %s909_s12, 1  ;;  %s919_s20 = smov (!%p190_p3), 96  }
   0x7   : > { %193 = sbr.rel (%p190_p3) target bundleno = 1233 (0x4d1), region = 32  ;;  %s920_s24 = smov (!%p190_p3), 88  }
   0x8   : > { %s921_s25 = smov (!%p190_p3), 120   ;;  %s922_s26 = smov (!%p190_p3), 64  }
   0x9   : > { %s924_s27 = smov (!%p190_p3), 72   ;;  %s925_s4 = smov (!%p190_p3), 104  }
   0xa   : > { %s929_s5 = smov (!%p190_p3), 80   ;;  %s930_s6 = smov (!%p190_p3), 112  }
   0xb   : > { %s931_s7 = smov (!%p190_p3), 48   ;;  %s932_s8 = smov (!%p190_p3), 56  }
   0xc   : > { %s1110_s12 = smov (!%p230_p4, %s909_s12), 1  ;;  %vm271_vm0 = vcmask 64512   ;;  %vm262_vm1 = vcmask 7168   ;;  %v923_v17 = vmov -1e+30   ;;  %v927_v31 = vmov 0  }
   0xd   : > { %s978_s16 = sshll.u32 %s1110_s12, 2  ;;  %263 = vst.msk [vmem:[#allocation2] sm:$0xff] %vm262_vm1, %v923_v17  ;;  %s249_s30 = scalar_lea.vmem %s1103_s2, %s1110_s12  ;;  %v926_v23 = vmov -1e+09   ;;  %868 = vset.pattern.permute.xlu1 %v927_v31  ;;  %869 = vset.pattern.permute.xlu0 %v927_v31  ;;  %v928_v32 = vmov 0.0   ;;  %vm348_vm3 = vcmask 1043456  }
   0xe   : > { %s984_s19 = scalar_lea.vmem %s1102_s1, %s978_s16  ;;  %s991_s23 = scalar_lea.vmem %s1101_s0, %s978_s16  ;;  %264 = vst.msk [vmem:[#allocation2 + $0x8] sm:$0xff] %vm262_vm1, %v923_v17  ;;  %v276_v22 = vld [vmem:[%s249_s30] sm:$0x1]  ;;  %870 = vset.pattern.permute.xlu2 %v927_v31  ;;  %vm654_vm4 = vcmask 60416   ;;  %vm670_vm5 = vcmask 126016   ;;  %vm686_vm6 = vcmask 191616  }
   0xf   : > { %v280_v0 = vld [vmem:[%s984_s19] sm:$0xf]  ;;  %265 = vst.msk [vmem:[#allocation2 + $0x10] sm:$0xff] %vm262_vm1, %v923_v17  ;;  %vm277_vm2 = vcmp.gt.f32.partialorder %v276_v22, 0.5  ;;  %s933_s9 = smov 40   ;;  %s1086_s12 = scalar_lea.vmem %s1104_s3, %s978_s16  ;;  %vm702_vm7 = vcmask 257216  }
  0x10   : > { %v282_v1 = vunpack.c.l.b16 %v280_v0  ;;  %v369_v3 = vld [vmem:[%s984_s19] sm:$0xf]  ;;  %266 = vst.msk [vmem:[#allocation2 + $0x18] sm:$0xff] %vm262_vm1, %v923_v17  ;;  %v278_v24 = vsel %vm277_vm2, 0.0, %v926_v23  ;;  %s934_s17 = smov 8   ;;  %s935_s16 = smov 24  }
  0x11   : > { %v368_v4 = vld [vmem:[%s991_s23] sm:$0xf]  ;;  %v376_v5 = vunpack.c.l.b16 %v369_v3  ;;  %v1016_v25 = vperm.slane %v278_v24, 0  ;;  %272 = vst.msk [vmem:[#allocation4] sm:$0xff] %vm271_vm0, %v928_v32  ;;  %s936_s18 = smov 16  }
  0x12   : > { %v283_v2 = vpack.c.b16 %v282_v1, %v282_v1  ;;  %v371_v6 = vunpack.c.l.b16 %v368_v4  ;;  %v279_v11 = vld [vmem:[%s991_s23] sm:$0xf]  ;;  %267 = vst.msk [vmem:[#allocation3] sm:$0xff] %vm262_vm1, %v928_v32 }
  0x13   : > { %v995_v7 = vpack.c.b16 %v376_v5, %v376_v5  ;;  %v551_v13 = vld [vmem:[%s984_s19] sm:$0xf]  ;;  %268 = vst.msk [vmem:[#allocation3 + $0x8] sm:$0xff] %vm262_vm1, %v928_v32 }
  0x14   : > { %284 = vrot.lane.b32.xlu0 %v283_v2, %s919_s20  ;;  %v372_v8 = vpack.c.b16 %v371_v6, %v371_v6  ;;  %v558_v15 = vunpack.c.l.b16 %v551_v13  ;;  %v550_v16 = vld [vmem:[%s991_s23] sm:$0xf]  ;;  %269 = vst.msk [vmem:[#allocation3 + $0x10] sm:$0xff] %vm262_vm1, %v928_v32 }
  0x15   : > { %378 = vrot.lane.b32.xlu1 %v995_v7, %s920_s24  ;;  %v553_v19 = vunpack.c.l.b16 %v550_v16  ;;  %270 = vst.msk [vmem:[#allocation3 + $0x18] sm:$0xff] %vm262_vm1, %v928_v32  ;;  %v311_v38 = vld [vmem:[#allocation2] sm:$0xff] }
  0x16   : > { %373 = vrot.lane.b32.xlu2 %v372_v8, %s921_s25  ;;  %v1005_v18 = vpack.c.b16 %v558_v15, %v558_v15  ;;  %273 = vst.msk [vmem:[#allocation4 + $0x8] sm:$0xff] %vm271_vm0, %v928_v32  ;;  %v460_v40 = vld [vmem:[%s984_s19] sm:$0xf] }
  0x17   : > { %v554_v21 = vpack.c.b16 %v553_v19, %v553_v19  ;;  %274 = vst.msk [vmem:[#allocation4 + $0x10] sm:$0xff] %vm271_vm0, %v928_v32  ;;  %v467_v43 = vunpack.c.l.b16 %v460_v40  ;;  %v459_v46 = vld [vmem:[%s991_s23] sm:$0xf] }
  0x18   : > { %275 = vst.msk [vmem:[#allocation4 + $0x18] sm:$0xff] %vm271_vm0, %v928_v32  ;;  %v462_v47 = vunpack.c.l.b16 %v459_v46  ;;  %v493_v32 = vld [vmem:[#allocation2 + $0x10] sm:$0xff] }
  0x19   : > { %v468_v45 = vpack.c.b16 %v467_v43, %v467_v43 }
  0x1a   : > { %v463_v48 = vpack.c.b16 %v462_v47, %v462_v47  ;;  %v327_v47 = vld [vmem:[#allocation3] sm:$0xff] }
  0x1e   : > { %343 = vrot.lane.b32.xlu2 %v283_v2, %s922_s26  ;;  %v402_v2 = vld [vmem:[#allocation2 + $0x8] sm:$0xff] }
  0x26   : > { %560 = vrot.lane.b32.xlu2 %v1005_v18, %s924_s27 }
  0x2e   : > { %555 = vrot.lane.b32.xlu2 %v554_v21, %s925_s4 }
  0x70   : > { %v374_v20 = vpop.permute.xlu2 %373 }
  0x78   : > { %v344_v33 = vpop.permute.xlu2 %343 }
  0x79   : > { %v350_v49 = vsel %vm348_vm3, %v344_v33, 0 }
  0x7a   : > { %359 = vmatpush.bf16.msra.mxu1 %v350_v49 }
  0x80   : > { %v561_v34 = vpop.permute.xlu2 %560 }
  0x81   : > { %v566_v35 = vsel %vm271_vm0, %v561_v34, 0 }
  0x86   : > { %v285_v9 = vpop.permute.xlu0 %284 }
  0x87   : > { %v291_v10 = vsel %vm271_vm0, %v285_v9, 0  ;;  %v379_v12 = vpop.permute.xlu1 %378 }
  0x88   : > { %300 = vmatpush.bf16.xpose.msra.mxu0 %v291_v10  ;;  %v384_v14 = vsel %vm271_vm0, %v379_v12, 0  ;;  %v556_v36 = vpop.permute.xlu2 %555 }
  0x89   : > { %393 = vmatpush.bf16.xpose.msra.mxu2 %v384_v14 }
  0x8f   : > { %816 = vmatmul.msk.bf16.vlgmr.msra.gmra.mxu0 %vm271_vm0, %v279_v11  ;;  %v584_v11 = vld [vmem:[#allocation2 + $0x18] sm:$0xff] }
  0x90   : > { %818 = vmatmul.msk.bf16.vlgmr.msra.gmra.mxu2 %vm271_vm0, %v374_v20  ;;  %575 = vmatpush.bf16.xpose.msrb.mxu0 %v566_v35 }
  0x9f   : > { %822 = vmatmul.msk.bf16.vlgmr.msrb.gmra.mxu0 %vm271_vm0, %v556_v36 }
 0x10c   : > { %v302_v26 = vpop.f32.mrf.mxu0 }
 0x10d   : > { %v306_v27 = vmul.f32 0.35355338, %v302_v26  ;;  %v335_v26 = vld [vmem:[#allocation4] sm:$0xff] }
 0x10f   : > { %v310_v28 = vadd.f32 %v1016_v25, %v306_v27 }
 0x111   : > { %v312_v29 = vsel %vm271_vm0, %v310_v28, -inf }
 0x112   : > { %313 = vmax.xlane.f32.xlu0 %v312_v29 }
 0x113   : > { %v395_v37 = vpop.f32.mrf.mxu2 }
 0x114   : > { %v304_v30 = vpop.f32.mrf.mxu0  ;;  %v399_v50 = vmul.f32 0.35355338, %v395_v37 }
 0x116   : > { %v1035_v51 = vadd.f32 %v399_v50, %v1016_v25 }
 0x118   : > { %v403_v52 = vsel %vm271_vm0, %v1035_v51, -inf }
 0x11b   : > { %v397_v44 = vpop.f32.mrf.mxu2 }
 0x11c   : > { %v577_v56 = vpop.f32.mrf.mxu0 }
 0x11d   : > { %v581_v57 = vmul.f32 0.35355338, %v577_v56 }
 0x11f   : > { %v1040_v58 = vadd.f32 %v581_v57, %v1016_v25 }
 0x121   : > { %v585_v60 = vsel %vm271_vm0, %v1040_v58, -inf }
 0x122   : > { %586 = vmax.xlane.f32.xlu0 %v585_v60 }
 0x124   : > { %v579_v63 = vpop.f32.mrf.mxu0 }
 0x185   : > { %v314_v39 = vpop.xlane.xlu0 %313 }
 0x186   : > { %v315_v41 = vmax.f32 %v311_v38, %v314_v39 }
 0x188   : > { %v316_v42 = vsub.f32 %v311_v38, %v315_v41  ;;  %367 = vst.msk [vmem:[#allocation2] sm:$0xff] %vm262_vm1, %v315_v41  ;;  %321 = vperm.xlu1 %868, %v315_v41  }
 0x18a   : > { %v317_v5 = vmul.f32 1.442695, %v316_v42 }
 0x190   : > { %469 = vrot.lane.b32.xlu1 %v468_v45, %s929_s5 }
 0x195   : > { %v587_v12 = vpop.xlane.xlu0 %586 }
 0x196   : > { %v588_v13 = vmax.f32 %v584_v11, %v587_v12  ;;  %v419_v12 = vld [vmem:[#allocation3 + $0x8] sm:$0xff] }
 0x198   : > { %464 = vrot.lane.b32.xlu1 %v463_v48, %s930_s6  ;;  %v589_v14 = vsub.f32 %v584_v11, %v588_v13  ;;  %640 = vst.msk [vmem:[#allocation2 + $0x18] sm:$0xff] %vm262_vm1, %v588_v13 }
 0x19a   : > { %v590_v44 = vmul.f32 1.442695, %v589_v14 }
 0x1c2   : > { %404 = vmax.xlane.f32.xlu1 %v403_v52 }
 0x1fa   : > { %v322_v53 = vpop.permute.xlu1 %321 }
 0x1fb   : > { %v324_v54 = vsub.f32 %v310_v28, %v322_v53 }
 0x1fd   : > { %v325_v55 = vmul.f32 1.442695, %v324_v54 }
 0x1ff   : > { %871 = vpow2.f32 %v325_v55 }
 0x200   : > { %873 = vpow2.f32 %v317_v5 }
 0x202   : > { %v470_v59 = vpop.permute.xlu1 %469 }
 0x203   : > { %v475_v61 = vsel %vm271_vm0, %v470_v59, 0 }
 0x204   : > { %484 = vmatpush.bf16.xpose.msrb.mxu1 %v475_v61 }
 0x205   : > { %v872_v62 = vpop.eup %871 }
 0x206   : > { %v342_v0 = vpack.c.bf16 %v872_v62, %v872_v62  ;;  %v1048_v9 = vpop.eup %873  ;;  %v329_v30 = vsel %vm271_vm0, %v872_v62, 0.0  ;;  %v427_v62 = vld [vmem:[#allocation4 + $0x8] sm:$0xff] }
 0x207   : > { %v328_v48 = vmul.f32 %v1048_v9, %v327_v47 }
 0x208   : > { %817 = vmatmul.msk.bf16.vlgmr.msra.gmra.mxu1 %vm271_vm0, %v342_v0  ;;  %v601_v0 = vld [vmem:[#allocation3 + $0x18] sm:$0xff] }
 0x20a   : > { %v465_v1 = vpop.permute.xlu1 %464 }
 0x218   : > { %820 = vmatmul.msk.bf16.vlgmr.msrb.gmra.mxu1 %vm271_vm0, %v465_v1 }
 0x235   : > { %v405_v3 = vpop.xlane.xlu1 %404 }
 0x236   : > { %v406_v4 = vmax.f32 %v402_v2, %v405_v3 }
 0x238   : > { %458 = vst.msk [vmem:[#allocation2 + $0x8] sm:$0xff] %vm262_vm1, %v406_v4  ;;  %412 = vperm.xlu0 %869, %v406_v4   ;;  %v407_v6 = vsub.f32 %v402_v2, %v406_v4 }
 0x23a   : > { %v408_v8 = vmul.f32 1.442695, %v407_v6 }
 0x23c   : > { %875 = vpow2.f32 %v408_v8 }
 0x240   : > { %526 = vrot.lane.b32.xlu0 %v468_v45, %s931_s7 }
 0x242   : > { %v1051_v10 = vpop.eup %875 }
 0x248   : > { %338 = vperm.xlu0 %869, %v1048_v9  }
 0x250   : > { %430 = vperm.xlu0 %869, %v1051_v10  }
 0x285   : > { %v361_v15 = vpop.f32.mrf.mxu1 }
 0x28d   : > { %v363_v16 = vpop.f32.mrf.mxu1 }
 0x295   : > { %v486_v17 = vpop.f32.mrf.mxu1 }
 0x296   : > { %v490_v19 = vmul.f32 0.35355338, %v486_v17 }
 0x298   : > { %v491_v20 = vadd.f32 %v490_v19, %v1016_v25 }
 0x29a   : > { %v494_v21 = vsel %vm271_vm0, %v491_v20, -inf }
 0x29b   : > { %495 = vmax.xlane.f32.xlu2 %v494_v21  ;;  %v510_v21 = vld [vmem:[#allocation3 + $0x10] sm:$0xff] }
 0x29d   : > { %v488_v22 = vpop.f32.mrf.mxu1 }
 0x2aa   : > { %v413_v23 = vpop.permute.xlu0 %412 }
 0x2ab   : > { %v415_v25 = vsub.f32 %v1035_v51, %v413_v23 }
 0x2ad   : > { %v416_v31 = vmul.f32 1.442695, %v415_v25 }
 0x2af   : > { %877 = vpow2.f32 %v416_v31 }
 0x2b2   : > { %v527_v24 = vpop.permute.xlu0 %526 }
 0x2b3   : > { %435 = vrot.lane.b32.xlu2 %v995_v7, %s932_s8  ;;  %v532_v52 = vsel %vm348_vm3, %v527_v24, 0 }
 0x2b5   : > { %v878_v7 = vpop.eup %877 }
 0x2b6   : > { %v434_v38 = vpack.c.bf16 %v878_v7, %v878_v7  ;;  %v421_v46 = vsel %vm271_vm0, %v878_v7, 0.0 }
 0x2ba   : > { %v339_v27 = vpop.permute.xlu0 %338 }
 0x2bb   : > { %v341_v28 = vmul.f32 %v339_v27, %v335_v26  ;;  %594 = vperm.xlu2 %870, %v588_v13   ;;  %v420_v13 = vmul.f32 %v1051_v10, %v419_v12  ;;  %v609_v10 = vld [vmem:[#allocation4 + $0x18] sm:$0xff] }
 0x2bd   : > { %v365_v29 = vadd.f32 %v361_v15, %v341_v28  ;;  %v518_v28 = vld [vmem:[#allocation4 + $0x10] sm:$0xff] }
 0x2bf   : > { %366 = vst.msk [vmem:[#allocation4] sm:$0xff] %vm271_vm0, %v365_v29 }
 0x2c2   : > { %v431_v63 = vpop.permute.xlu0 %430 }
 0x2c3   : > { %v433_v2 = vmul.f32 %v431_v63, %v427_v62 }
 0x2c6   : > { %v644_v7 = vld [vmem:[#allocation4] sm:$0xff] }
 0x2e4   : > { %330 = vadd.xlane.f32.xlu2 %v329_v30 }
 0x30e   : > { %v496_v33 = vpop.xlane.xlu2 %495 }
 0x30f   : > { %v497_v34 = vmax.f32 %v493_v32, %v496_v33 }
 0x311   : > { %v498_v35 = vsub.f32 %v493_v32, %v497_v34  ;;  %549 = vst.msk [vmem:[#allocation2 + $0x10] sm:$0xff] %vm262_vm1, %v497_v34  ;;  %503 = vperm.xlu1 %868, %v497_v34  }
 0x316   : > { %v436_v36 = vpop.permute.xlu2 %435 }
 0x317   : > { %v441_v37 = vsel %vm348_vm3, %v436_v36, 0 }
 0x318   : > { %450 = vmatpush.bf16.msra.mxu3 %v441_v37 }
 0x319   : > { %617 = vrot.lane.b32.xlu1 %v1005_v18, %s933_s9  ;;  %v499_v18 = vmul.f32 1.442695, %v498_v35 }
 0x31b   : > { %819 = vmatmul.msk.bf16.vlgmr.msra.gmra.mxu3 %vm271_vm0, %v434_v38 }
 0x31c   : > { %541 = vmatpush.bf16.msrb.mxu3 %v532_v52 }
 0x31e   : > { %v595_v39 = vpop.permute.xlu2 %594 }
 0x31f   : > { %v597_v40 = vsub.f32 %v1040_v58, %v595_v39 }
 0x321   : > { %v598_v41 = vmul.f32 1.442695, %v597_v40 }
 0x323   : > { %879 = vpow2.f32 %v598_v41 }
 0x324   : > { %881 = vpow2.f32 %v590_v44 }
 0x325   : > { %883 = vpow2.f32 %v499_v18 }
 0x329   : > { %v880_v42 = vpop.eup %879 }
 0x32a   : > { %v603_v43 = vsel %vm271_vm0, %v880_v42, 0.0  ;;  %v882_v45 = vpop.eup %881  ;;  %v616_v59 = vpack.c.bf16 %v880_v42, %v880_v42 }
 0x32b   : > { %604 = vadd.xlane.f32.xlu2 %v603_v43  ;;  %v884_v51 = vpop.eup %883  ;;  %v602_v3 = vmul.f32 %v882_v45, %v601_v0 }
 0x32c   : > { %v511_v22 = vmul.f32 %v884_v51, %v510_v21 }
 0x343   : > { %612 = vperm.xlu2 %870, %v882_v45   ;;  %422 = vadd.xlane.f32.xlu1 %v421_v46 }
 0x357   : > { %v331_v49 = vpop.xlane.xlu2 %330 }
 0x358   : > { %v332_v50 = vadd.f32 %v331_v49, %v328_v48 }
 0x35a   : > { %334 = vst.msk [vmem:[#allocation3] sm:$0xff] %vm262_vm1, %v332_v50 }
 0x35c   : > { %521 = vperm.xlu1 %868, %v884_v51  }
 0x361   : > { %v645_v1 = vld [vmem:[#allocation3] sm:$0xff] }
 0x383   : > { %v504_v53 = vpop.permute.xlu1 %503 }
 0x384   : > { %v506_v54 = vsub.f32 %v491_v20, %v504_v53 }
 0x386   : > { %v507_v55 = vmul.f32 1.442695, %v506_v54 }
 0x388   : > { %885 = vpow2.f32 %v507_v55 }
 0x389   : > { %887 = vrcp.f32 %v645_v1 }
 0x38b   : > { %v618_v56 = vpop.permute.xlu1 %617 }
 0x38c   : > { %v623_v57 = vsel %vm348_vm3, %v618_v56, 0 }
 0x38d   : > { %632 = vmatpush.bf16.msrb.mxu2 %v623_v57 }
 0x38e   : > { %v886_v58 = vpop.eup %885 }
 0x38f   : > { %v512_v60 = vsel %vm271_vm0, %v886_v58, 0.0  ;;  %v525_v61 = vpack.c.bf16 %v886_v58, %v886_v58  ;;  %v888_v9 = vpop.eup %887 }
 0x390   : > { %513 = vadd.xlane.f32.xlu0 %v512_v60  ;;  %823 = vmatmul.msk.bf16.vlgmr.msrb.gmra.mxu2 %vm271_vm0, %v616_v59 }
 0x391   : > { %821 = vmatmul.msk.bf16.vlgmr.msrb.gmra.mxu3 %vm271_vm0, %v525_v61 }
 0x39e   : > { %v605_v4 = vpop.xlane.xlu2 %604  ;;  %v452_v5 = vpop.f32.mrf.mxu3 }
 0x39f   : > { %v606_v6 = vadd.f32 %v605_v4, %v602_v3  ;;  %v456_v8 = vadd.f32 %v452_v5, %v433_v2 }
 0x3a1   : > { %607 = vst.msk [vmem:[#allocation3 + $0x18] sm:$0xff] %vm262_vm1, %v606_v6 }
 0x3a2   : > { %457 = vst.msk [vmem:[#allocation4 + $0x8] sm:$0xff] %vm271_vm0, %v456_v8 }
 0x3a4   : > { %649 = vperm.xlu0 %869, %v888_v9  }
 0x3a6   : > { %v454_v11 = vpop.f32.mrf.mxu3  ;;  %v613_v27 = vpop.permute.xlu2 %612 }
 0x3a7   : > { %v615_v30 = vmul.f32 %v613_v27, %v609_v10 }
 0x3a8   : > { %v689_v17 = vld [vmem:[#allocation3 + $0x18] sm:$0xff] }
 0x3a9   : > { %v656_v42 = vld [vmem:[#allocation4 + $0x8] sm:$0xff] }
 0x3b6   : > { %v423_v14 = vpop.xlane.xlu1 %422 }
 0x3b7   : > { %v424_v15 = vadd.f32 %v423_v14, %v420_v13 }
 0x3b9   : > { %425 = vst.msk [vmem:[#allocation3 + $0x8] sm:$0xff] %vm262_vm1, %v424_v15 }
 0x3c0   : > { %v657_v16 = vld [vmem:[#allocation3 + $0x8] sm:$0xff] }
 0x3c1   : > { %889 = vrcp.f32 %v657_v16 }
 0x3c2   : > { %891 = vrcp.f32 %v689_v17 }
 0x3c7   : > { %v890_v19 = vpop.eup %889 }
 0x3c8   : > { %661 = vperm.xlu1 %868, %v890_v19   ;;  %v892_v20 = vpop.eup %891 }
 0x3ce   : > { %v522_v29 = vpop.permute.xlu1 %521 }
 0x3cf   : > { %v524_v25 = vmul.f32 %v522_v29, %v518_v28 }
 0x3d0   : > { %693 = vperm.xlu1 %868, %v892_v20  }
 0x403   : > { %v514_v23 = vpop.xlane.xlu0 %513 }
 0x404   : > { %v515_v24 = vadd.f32 %v514_v23, %v511_v22 }
 0x406   : > { %516 = vst.msk [vmem:[#allocation3 + $0x10] sm:$0xff] %vm262_vm1, %v515_v24 }
 0x40d   : > { %v673_v26 = vld [vmem:[#allocation3 + $0x10] sm:$0xff] }
 0x40e   : > { %893 = vrcp.f32 %v673_v26 }
 0x413   : > { %v634_v31 = vpop.f32.mrf.mxu2 }
 0x414   : > { %v894_v32 = vpop.eup %893  ;;  %v638_v33 = vadd.f32 %v634_v31, %v615_v30  ;;  %v543_v34 = vpop.f32.mrf.mxu3 }
 0x415   : > { %v547_v35 = vadd.f32 %v543_v34, %v524_v25  ;;  %677 = vperm.xlu2 %870, %v894_v32  }
 0x416   : > { %639 = vst.msk [vmem:[#allocation4 + $0x18] sm:$0xff] %vm271_vm0, %v638_v33  ;;  %v650_v36 = vpop.permute.xlu0 %649 }
 0x417   : > { %548 = vst.msk [vmem:[#allocation4 + $0x10] sm:$0xff] %vm271_vm0, %v547_v35  ;;  %v652_v37 = vmul.f32 %v650_v36, %v644_v7 }
 0x419   : > { %v653_v38 = vpack.c.bf16 %v652_v37, %v652_v37 }
 0x41b   : > { %655 = vst.msk [vmem:[%s1086_s12] sm:$0xf] %vm654_vm4, %v653_v38  ;;  %v636_v39 = vpop.f32.mrf.mxu2 }
 0x41c   : > { %v545_v40 = vpop.f32.mrf.mxu3 }
 0x41d   : > { %v688_v45 = vld [vmem:[#allocation4 + $0x18] sm:$0xff] }
 0x41e   : > { %v672_v48 = vld [vmem:[#allocation4 + $0x10] sm:$0xff] }
 0x43a   : > { %v662_v41 = vpop.permute.xlu1 %661 }
 0x43b   : > { %v664_v43 = vmul.f32 %v662_v41, %v656_v42 }
 0x43d   : > { %v665_v44 = vpack.c.bf16 %v664_v43, %v664_v43 }
 0x43f   : > { %667 = vrot.lane.b32.xlu0 %v665_v44, %s934_s17 }
 0x442   : > { %v694_v46 = vpop.permute.xlu1 %693 }
 0x443   : > { %v696_v18 = vmul.f32 %v694_v46, %v688_v45 }
 0x445   : > { %v697_v47 = vpack.c.bf16 %v696_v18, %v696_v18 }
 0x447   : > { %699 = vrot.lane.b32.xlu1 %v697_v47, %s935_s16 }
 0x46f   : > { %v678_v49 = vpop.permute.xlu2 %677 }
 0x470   : > { %v680_v50 = vmul.f32 %v678_v49, %v672_v48 }
 0x472   : > { %v681_v51 = vpack.c.bf16 %v680_v50, %v680_v50 }
 0x474   : > { %683 = vrot.lane.b32.xlu2 %v681_v51, %s936_s18 }
 0x4b1   : > { %v668_v52 = vpop.permute.xlu0 %667 }
 0x4b2   : > { %671 = vst.msk [vmem:[%s1086_s12] sm:$0xf] %vm670_vm5, %v668_v52 }
 0x4b9   : > { %v700_v54 = vpop.permute.xlu1 %699 }
 0x4ce   : > { %v684_v53 = vpop.permute.xlu2 %683 }
 0x4cf   : > { %687 = vst.msk [vmem:[%s1086_s12] sm:$0xf] %vm686_vm6, %v684_v53 }
 0x4d0   : > { %703 = vst.msk [vmem:[%s1086_s12] sm:$0xf] %vm702_vm7, %v700_v54 }
 0x4d1 PF: > { %s13_s14 = sadd.s32 1, %s917_s14   ;;  %s1105_s12 = smov %s913_s13 }
 0x4d2   : > { %p10_p5 = scmp.ge.s32.totalorder %s13_s14, 4   ;;  %s1106_s13 = smov %s1108_s15 }
 0x4d4   :  { %12 = sbr.rel (!%p10_p5) target bundleno = 2 (0x2), region = 85 }

// kernel: _lambda_.33
= control target key start
LH: loop header
LB: loop body
LE: loop exit
PB: predicated region body
PF: predicated region fallthrough
CT: control target
= control target key end

     0   :  { %vm28_vm0 = vcmask 261120   ;;  %v225_v1 = vmov 0.0   ;;  %vm72_vm1 = vcmask 523264   ;;  %v226_v24 = vmov 32.0   ;;  %s303_s1 = inlined_call_operand.vmem [shape: bf16[64,32], index: 1, kind: input, shape index: {}]   ;;  %s304_s0 = inlined_call_operand.vmem [shape: bf16[16,64], index: 0, kind: input, shape index: {}]   ;;  %s305_s2 = inlined_call_operand.vmem [shape: f32[1,32], index: 2, kind: input, shape index: {}]   ;;  %s306_s3 = inlined_call_operand.vmem [shape: bf16[16,32], index: 3, kind: input, shape index: {}]   ;;  %s307_s4 = inlined_call_operand.vmem [shape: f32[1,32], index: 4, kind: input, shape index: {}]   ;;  %s308_s5 = inlined_call_operand.vmem [shape: f32[1,32], index: 5, kind: input, shape index: {}]   ;;  %s309_s6 = inlined_call_operand.vmem [shape: bf16[16,32], index: 6, kind: output, shape index: {}]  }
   0x1   :  { %v209_v0 = vld [vmem:[%s303_s1 + $0x18] sm:$0xff]  ;;  %29 = vst.msk [vmem:[#allocation2] sm:$0xff] %vm28_vm0, %v225_v1  ;;  %v208_v2 = vld [vmem:[%s303_s1 + $0x10] sm:$0xff]  ;;  %v207_v3 = vld [vmem:[%s303_s1 + $0x8] sm:$0xff]  ;;  %219 = vrcp.f32 %v226_v24  ;;  %vm177_vm7 = vcmask 257024  }
   0x2   :  { %30 = vst.msk [vmem:[#allocation2 + $0x8] sm:$0xff] %vm28_vm0, %v225_v1  ;;  %80 = vmatpush.bf16.msra.mxu0 %v209_v0  ;;  %v206_v4 = vld [vmem:[%s303_s1] sm:$0xff] }
   0x3   :  { %v205_v5 = vld [vmem:[%s304_s0] sm:$0xff] }
   0x4   :  { %v211_v10 = vld [vmem:[%s306_s3] sm:$0xff]  }
   0x5   :  { %v216_v11 = vld [vmem:[%s305_s2] ss:$0 sm:$0xff]  ;;  %v212_v14 = vunpack.c.l.bf16 %v211_v10  ;;  %v213_v19 = vunpack.c.h.bf16 %v211_v10 }
   0x6   :  { %81 = vmatpush.bf16.msra.mxu0 %v208_v2  ;;  %v217_v55 = vld [vmem:[%s307_s4] ss:$0 sm:$0xff] }
   0x7   :  { %v220_v25 = vpop.eup %219  ;;  %v218_v58 = vld [vmem:[%s308_s5] ss:$0 sm:$0xff] }
   0x8   :  { %v31_v6 = vld [vmem:[#allocation2] sm:$0xff]  ;;  %v119_v26 = vmul.f32 32.0, %v220_v25  ;;  %vm123_vm2 = vweird.f32 %v220_v25 }
   0x9   :  { %v32_v9 = vld [vmem:[#allocation2 + $0x8] sm:$0xff] }
   0xa   :  { %82 = vmatpush.bf16.msra.mxu0 %v207_v3  ;;  %v120_v27 = vsub.f32 1.0, %v119_v26 }
   0xc   :  { %v121_v28 = vmul.f32 %v220_v25, %v120_v27 }
   0xe   :  { %83 = vmatpush.bf16.msra.mxu0 %v206_v4  ;;  %v122_v29 = vadd.f32 %v220_v25, %v121_v28 }
  0x10   :  { %v124_v30 = vsel %vm123_vm2, %v220_v25, %v122_v29 }
  0x11   :  { %204 = vmatmul.msk.bf16.vlgmr.msra.gmra.mxu0 %vm72_vm1, %v205_v5 }
  0x8e   :  { %v85_v7 = vpop.f32.mrf.mxu0 }
  0x8f   :  { %v90_v8 = vadd.f32 %v85_v7, %v31_v6 }
  0x91   :  { %93 = vst.msk [vmem:[#allocation2] sm:$0xff] %vm28_vm0, %v90_v8 }
  0x96   :  { %v87_v12 = vpop.f32.mrf.mxu0 }
  0x97   :  { %v91_v13 = vadd.f32 %v87_v12, %v32_v9 }
  0x98   :  { %v98_v15 = vld [vmem:[#allocation2] sm:$0xff] }
  0x99   :  { %94 = vst.msk [vmem:[#allocation2 + $0x8] sm:$0xff] %vm28_vm0, %v91_v13  ;;  %v104_v16 = vadd.f32 %v216_v11, %v98_v15 }
  0x9b   :  { %v110_v17 = vadd.f32 %v212_v14, %v104_v16 }
  0x9d   :  { %v112_v18 = vsel %vm28_vm0, %v110_v17, 0.0 }
  0x9e   :  { %113 = vadd.xlane.f32.xlu0 %v112_v18 }
  0xa0   :  { %v99_v20 = vld [vmem:[#allocation2 + $0x8] sm:$0xff] }
  0xa1   :  { %v105_v21 = vadd.f32 %v216_v11, %v99_v20 }
  0xa3   :  { %v111_v22 = vadd.f32 %v213_v19, %v105_v21 }
  0xa5   :  { %v115_v23 = vsel %vm28_vm0, %v111_v22, 0.0 }
  0xa6   :  { %116 = vadd.xlane.f32.xlu0 %v115_v23 }
 0x111   :  { %v114_v31 = vpop.xlane.xlu0 %113 }
 0x112   :  { %v125_v32 = vmul.f32 %v124_v30, %v114_v31 }
 0x114   :  { %v127_v33 = vsub.f32 %v110_v17, %v125_v32 }
 0x116   :  { %v129_v34 = vmul.f32 %v127_v33, %v127_v33 }
 0x118   :  { %v131_v35 = vsel %vm28_vm0, %v129_v34, 0.0 }
 0x119   :  { %132 = vadd.xlane.f32.xlu1 %v131_v35  ;;  %v117_v36 = vpop.xlane.xlu0 %116 }
 0x11a   :  { %v126_v37 = vmul.f32 %v124_v30, %v117_v36 }
 0x11c   :  { %v128_v38 = vsub.f32 %v111_v22, %v126_v37 }
 0x11e   :  { %v130_v39 = vmul.f32 %v128_v38, %v128_v38 }
 0x120   :  { %v134_v40 = vsel %vm28_vm0, %v130_v39, 0.0 }
 0x121   :  { %135 = vadd.xlane.f32.xlu1 %v134_v40 }
 0x18c   :  { %v133_v41 = vpop.xlane.xlu1 %132 }
 0x18d   :  { %v137_v42 = vmul.f32 %v133_v41, %v124_v30 }
 0x18f   :  { %v139_v43 = vadd.f32 1e-05, %v137_v42 }
 0x191   :  { %221 = vrsqrt.f32 %v139_v43  ;;  %vm147_vm4 = vweird.f32 %v139_v43 }
 0x194   :  { %v136_v44 = vpop.xlane.xlu1 %135 }
 0x195   :  { %v138_v45 = vmul.f32 %v136_v44, %v124_v30 }
 0x197   :  { %v222_v46 = vpop.eup %221  ;;  %v140_v47 = vadd.f32 1e-05, %v138_v45 }
 0x198   :  { %v142_v48 = vmul.f32 %v222_v46, %v139_v43  ;;  %vm148_vm3 = vweird.f32 %v222_v46 }
 0x199   :  { %223 = vrsqrt.f32 %v140_v47  ;;  %vm149_vm5 = vmor %vm147_vm4, %vm148_vm3  ;;  %vm157_vm8 = vweird.f32 %v140_v47 }
 0x19a   :  { %v143_v49 = vmul.f32 %v222_v46, %v142_v48 }
 0x19c   :  { %v144_v50 = vmul.f32 0.5, %v143_v49 }
 0x19e   :  { %v145_v51 = vsub.f32 1.5, %v144_v50 }
 0x19f   :  { %v224_v52 = vpop.eup %223 }
 0x1a0   :  { %v146_v53 = vmul.f32 %v222_v46, %v145_v51  ;;  %v152_v54 = vmul.f32 %v224_v52, %v140_v47  ;;  %vm158_vm6 = vweird.f32 %v224_v52 }
 0x1a1   :  { %vm159_vm9 = vmor %vm157_vm8, %vm158_vm6 }
 0x1a2   :  { %v150_v56 = vsel %vm149_vm5, %v222_v46, %v146_v53  ;;  %v153_v57 = vmul.f32 %v224_v52, %v152_v54 }
 0x1a3   :  { %v161_v59 = vmul.f32 %v150_v56, %v127_v33 }
 0x1a4   :  { %v154_v60 = vmul.f32 0.5, %v153_v57 }
 0x1a5   :  { %v167_v61 = vmul.f32 %v217_v55, %v161_v59 }
 0x1a6   :  { %v155_v62 = vsub.f32 1.5, %v154_v60 }
 0x1a7   :  { %v173_v63 = vadd.f32 %v218_v58, %v167_v61 }
 0x1a8   :  { %v156_v0 = vmul.f32 %v224_v52, %v155_v62 }
 0x1a9   :  { %v175_v1 = vpack.c.bf16 %v173_v63, %v173_v63 }
 0x1aa   :  { %v160_v2 = vsel %vm159_vm9, %v224_v52, %v156_v0 }
 0x1ab   :  { %178 = vst.msk [vmem:[%s309_s6] sm:$0xf] %vm177_vm7, %v175_v1  ;;  %v162_v3 = vmul.f32 %v160_v2, %v128_v38 }
 0x1ad   :  { %v168_v4 = vmul.f32 %v217_v55, %v162_v3 }
 0x1af   :  { %v174_v5 = vadd.f32 %v218_v58, %v168_v4 }
 0x1b1   :  { %v176_v6 = vpack.c.bf16 %v174_v5, %v174_v5 }
 0x1b3   :  { %179 = vst.msk [vmem:[%s309_s6 + $0x4] sm:$0xf] %vm177_vm7, %v176_v6 }

// kernel: _lambda_.34
= control target key start
LH: loop header
LB: loop body
LE: loop exit
PB: predicated region body
PF: predicated region fallthrough
CT: control target
= control target key end

     0   :  { %vm19_vm0 = vcmask 785408   ;;  %v108_v1 = vmov 0.0   ;;  %vm47_vm1 = vcmask 261120   ;;  %vm83_vm2 = vcmask 781312   ;;  %s151_s1 = inlined_call_operand.vmem [shape: bf16[32,96], index: 1, kind: input, shape index: {}]   ;;  %s152_s2 = inlined_call_operand.vmem [shape: f32[1,96], index: 2, kind: input, shape index: {}]   ;;  %s153_s0 = inlined_call_operand.vmem [shape: bf16[16,32], index: 0, kind: input, shape index: {}]   ;;  %s154_s3 = inlined_call_operand.vmem [shape: bf16[16,96], index: 3, kind: output, shape index: {}]  }
   0x1   :  { %v105_v0 = vld [vmem:[%s151_s1 + $0x8] sm:$0xff]  ;;  %20 = vst.msk [vmem:[#allocation2] sm:$0xff] %vm19_vm0, %v108_v1  ;;  %v104_v2 = vld [vmem:[%s151_s1] sm:$0xff] }
   0x2   :  { %21 = vst.msk [vmem:[#allocation2 + $0x8] sm:$0xff] %vm19_vm0, %v108_v1  ;;  %57 = vmatpush.bf16.msra.mxu0 %v105_v0  ;;  %v103_v3 = vld [vmem:[%s153_s0] sm:$0xff] }
   0x3   :  { %v107_v8 = vld [vmem:[%s152_s2] ss:$0 sm:$0xff] }
   0x6   :  { %58 = vmatpush.bf16.msra.mxu0 %v104_v2 }
   0x8   :  { %v22_v4 = vld [vmem:[#allocation2] sm:$0xff] }
   0x9   :  { %102 = vmatmul.msk.bf16.vlgmr.msra.gmra.mxu0 %vm47_vm1, %v103_v3  ;;  %v23_v7 = vld [vmem:[#allocation2 + $0x8] sm:$0xff] }
  0x86   :  { %v60_v5 = vpop.f32.mrf.mxu0 }
  0x87   :  { %v65_v6 = vadd.f32 %v60_v5, %v22_v4 }
  0x89   :  { %68 = vst.msk [vmem:[#allocation2] sm:$0xff] %vm19_vm0, %v65_v6 }
  0x8e   :  { %v62_v9 = vpop.f32.mrf.mxu0 }
  0x8f   :  { %v66_v10 = vadd.f32 %v62_v9, %v23_v7 }
  0x90   :  { %v73_v11 = vld [vmem:[#allocation2] sm:$0xff] }
  0x91   :  { %v79_v12 = vadd.f32 %v107_v8, %v73_v11  ;;  %69 = vst.msk [vmem:[#allocation2 + $0x8] sm:$0xff] %vm19_vm0, %v66_v10 }
  0x93   :  { %v81_v13 = vpack.c.bf16 %v79_v12, %v79_v12 }
  0x95   :  { %84 = vst.msk [vmem:[%s154_s3] sm:$0xf] %vm83_vm2, %v81_v13 }
  0x98   :  { %v74_v14 = vld [vmem:[#allocation2 + $0x8] sm:$0xff] }
  0x99   :  { %v80_v15 = vadd.f32 %v107_v8, %v74_v14 }
  0x9b   :  { %v82_v16 = vpack.c.bf16 %v80_v15, %v80_v15 }
  0x9d   :  { %85 = vst.msk [vmem:[%s154_s3 + $0x4] sm:$0xf] %vm83_vm2, %v82_v16 }

// kernel: _lambda_.36
= control target key start
LH: loop header
LB: loop body
LE: loop exit
PB: predicated region body
PF: predicated region fallthrough
CT: control target
= control target key end

     0   :  { %vm28_vm0 = vcmask 261120   ;;  %v198_v1 = vmov 0.0   ;;  %v199_v22 = vmov 32.0   ;;  %vm160_vm6 = vcmask 257024   ;;  %s271_s1 = inlined_call_operand.vmem [shape: bf16[32,32], index: 1, kind: input, shape index: {}]   ;;  %s272_s0 = inlined_call_operand.vmem [shape: bf16[16,32], index: 0, kind: input, shape index: {}]   ;;  %s273_s2 = inlined_call_operand.vmem [shape: f32[1,32], index: 2, kind: input, shape index: {}]   ;;  %s274_s3 = inlined_call_operand.vmem [shape: bf16[16,32], index: 3, kind: input, shape index: {}]   ;;  %s275_s4 = inlined_call_operand.vmem [shape: f32[1,32], index: 4, kind: input, shape index: {}]   ;;  %s276_s5 = inlined_call_operand.vmem [shape: f32[1,32], index: 5, kind: input, shape index: {}]   ;;  %s277_s6 = inlined_call_operand.vmem [shape: bf16[16,32], index: 6, kind: output, shape index: {}]  }
   0x1   :  { %v182_v0 = vld [vmem:[%s271_s1 + $0x8] sm:$0xff]  ;;  %29 = vst.msk [vmem:[#allocation2] sm:$0xff] %vm28_vm0, %v198_v1  ;;  %v181_v2 = vld [vmem:[%s271_s1] sm:$0xff]  ;;  %192 = vrcp.f32 %v199_v22 }
   0x2   :  { %30 = vst.msk [vmem:[#allocation2 + $0x8] sm:$0xff] %vm28_vm0, %v198_v1  ;;  %66 = vmatpush.bf16.msra.mxu0 %v182_v0  ;;  %v180_v3 = vld [vmem:[%s272_s0] sm:$0xff] }
   0x3   :  { %v184_v8 = vld [vmem:[%s274_s3] sm:$0xff]  }
   0x4   :  { %v189_v9 = vld [vmem:[%s273_s2] ss:$0 sm:$0xff]  ;;  %v185_v12 = vunpack.c.l.bf16 %v184_v8  ;;  %v186_v17 = vunpack.c.h.bf16 %v184_v8 }
   0x5   :  { %v190_v53 = vld [vmem:[%s275_s4] ss:$0 sm:$0xff] }
   0x6   :  { %67 = vmatpush.bf16.msra.mxu0 %v181_v2  ;;  %v191_v56 = vld [vmem:[%s276_s5] ss:$0 sm:$0xff] }
   0x7   :  { %v193_v23 = vpop.eup %192 }
   0x8   :  { %v31_v4 = vld [vmem:[#allocation2] sm:$0xff]  ;;  %v102_v24 = vmul.f32 32.0, %v193_v23  ;;  %vm106_vm1 = vweird.f32 %v193_v23 }
   0x9   :  { %179 = vmatmul.msk.bf16.vlgmr.msra.gmra.mxu0 %vm28_vm0, %v180_v3  ;;  %v32_v7 = vld [vmem:[#allocation2 + $0x8] sm:$0xff] }
   0xa   :  { %v103_v25 = vsub.f32 1.0, %v102_v24 }
   0xc   :  { %v104_v26 = vmul.f32 %v193_v23, %v103_v25 }
   0xe   :  { %v105_v27 = vadd.f32 %v193_v23, %v104_v26 }
  0x10   :  { %v107_v28 = vsel %vm106_vm1, %v193_v23, %v105_v27 }
  0x86   :  { %v69_v5 = vpop.f32.mrf.mxu0 }
  0x87   :  { %v74_v6 = vadd.f32 %v69_v5, %v31_v4 }
  0x89   :  { %76 = vst.msk [vmem:[#allocation2] sm:$0xff] %vm28_vm0, %v74_v6 }
  0x8e   :  { %v71_v10 = vpop.f32.mrf.mxu0 }
  0x8f   :  { %v75_v11 = vadd.f32 %v71_v10, %v32_v7 }
  0x90   :  { %v81_v13 = vld [vmem:[#allocation2] sm:$0xff] }
  0x91   :  { %77 = vst.msk [vmem:[#allocation2 + $0x8] sm:$0xff] %vm28_vm0, %v75_v11  ;;  %v87_v14 = vadd.f32 %v189_v9, %v81_v13 }
  0x93   :  { %v93_v15 = vadd.f32 %v185_v12, %v87_v14 }
  0x95   :  { %v95_v16 = vsel %vm28_vm0, %v93_v15, 0.0 }
  0x96   :  { %96 = vadd.xlane.f32.xlu0 %v95_v16 }
  0x98   :  { %v82_v18 = vld [vmem:[#allocation2 + $0x8] sm:$0xff] }
  0x99   :  { %v88_v19 = vadd.f32 %v189_v9, %v82_v18 }
  0x9b   :  { %v94_v20 = vadd.f32 %v186_v17, %v88_v19 }
  0x9d   :  { %v98_v21 = vsel %vm28_vm0, %v94_v20, 0.0 }
  0x9e   :  { %99 = vadd.xlane.f32.xlu0 %v98_v21 }
 0x109   :  { %v97_v29 = vpop.xlane.xlu0 %96 }
 0x10a   :  { %v108_v30 = vmul.f32 %v107_v28, %v97_v29 }
 0x10c   :  { %v110_v31 = vsub.f32 %v93_v15, %v108_v30 }
 0x10e   :  { %v112_v32 = vmul.f32 %v110_v31, %v110_v31 }
 0x110   :  { %v114_v33 = vsel %vm28_vm0, %v112_v32, 0.0 }
 0x111   :  { %115 = vadd.xlane.f32.xlu1 %v114_v33  ;;  %v100_v34 = vpop.xlane.xlu0 %99 }
 0x112   :  { %v109_v35 = vmul.f32 %v107_v28, %v100_v34 }
 0x114   :  { %v111_v36 = vsub.f32 %v94_v20, %v109_v35 }
 0x116   :  { %v113_v37 = vmul.f32 %v111_v36, %v111_v36 }
 0x118   :  { %v117_v38 = vsel %vm28_vm0, %v113_v37, 0.0 }
 0x119   :  { %118 = vadd.xlane.f32.xlu1 %v117_v38 }
 0x184   :  { %v116_v39 = vpop.xlane.xlu1 %115 }
 0x185   :  { %v120_v40 = vmul.f32 %v116_v39, %v107_v28 }
 0x187   :  { %v122_v41 = vadd.f32 1e-05, %v120_v40 }
 0x189   :  { %194 = vrsqrt.f32 %v122_v41  ;;  %vm130_vm3 = vweird.f32 %v122_v41 }
 0x18c   :  { %v119_v42 = vpop.xlane.xlu1 %118 }
 0x18d   :  { %v121_v43 = vmul.f32 %v119_v42, %v107_v28 }
 0x18f   :  { %v195_v44 = vpop.eup %194  ;;  %v123_v45 = vadd.f32 1e-05, %v121_v43 }
 0x190   :  { %v125_v46 = vmul.f32 %v195_v44, %v122_v41  ;;  %vm131_vm2 = vweird.f32 %v195_v44 }
 0x191   :  { %196 = vrsqrt.f32 %v123_v45  ;;  %vm132_vm4 = vmor %vm130_vm3, %vm131_vm2  ;;  %vm140_vm7 = vweird.f32 %v123_v45 }
 0x192   :  { %v126_v47 = vmul.f32 %v195_v44, %v125_v46 }
 0x194   :  { %v127_v48 = vmul.f32 0.5, %v126_v47 }
 0x196   :  { %v128_v49 = vsub.f32 1.5, %v127_v48 }
 0x197   :  { %v197_v50 = vpop.eup %196 }
 0x198   :  { %v129_v51 = vmul.f32 %v195_v44, %v128_v49  ;;  %v135_v52 = vmul.f32 %v197_v50, %v123_v45  ;;  %vm141_vm5 = vweird.f32 %v197_v50 }
 0x199   :  { %vm142_vm8 = vmor %vm140_vm7, %vm141_vm5 }
 0x19a   :  { %v133_v54 = vsel %vm132_vm4, %v195_v44, %v129_v51  ;;  %v136_v55 = vmul.f32 %v197_v50, %v135_v52 }
 0x19b   :  { %v144_v57 = vmul.f32 %v133_v54, %v110_v31 }
 0x19c   :  { %v137_v58 = vmul.f32 0.5, %v136_v55 }
 0x19d   :  { %v150_v59 = vmul.f32 %v190_v53, %v144_v57 }
 0x19e   :  { %v138_v60 = vsub.f32 1.5, %v137_v58 }
 0x19f   :  { %v156_v61 = vadd.f32 %v191_v56, %v150_v59 }
 0x1a0   :  { %v139_v62 = vmul.f32 %v197_v50, %v138_v60 }
 0x1a1   :  { %v158_v63 = vpack.c.bf16 %v156_v61, %v156_v61 }
 0x1a2   :  { %v143_v0 = vsel %vm142_vm8, %v197_v50, %v139_v62 }
 0x1a3   :  { %161 = vst.msk [vmem:[%s277_s6] sm:$0xf] %vm160_vm6, %v158_v63  ;;  %v145_v1 = vmul.f32 %v143_v0, %v111_v36 }
 0x1a5   :  { %v151_v2 = vmul.f32 %v190_v53, %v145_v1 }
 0x1a7   :  { %v157_v3 = vadd.f32 %v191_v56, %v151_v2 }
 0x1a9   :  { %v159_v4 = vpack.c.bf16 %v157_v3, %v157_v3 }
 0x1ab   :  { %162 = vst.msk [vmem:[%s277_s6 + $0x4] sm:$0xf] %vm160_vm6, %v159_v4 }

// kernel: _lambda_.37
= control target key start
LH: loop header
LB: loop body
LE: loop exit
PB: predicated region body
PF: predicated region fallthrough
CT: control target
= control target key end

     0   :  { %8 = vsyncpa [#allocation4], 0  ;;  %s152_s15 = smov [#allocation3]   ;;  %s196_s0 = inlined_call_operand.vmem [shape: bf16[16,32], index: 0, kind: input, shape index: {}]   ;;  %s197_s1 = inlined_call_operand.vmem [shape: bf16[32,64], index: 1, kind: input, shape index: {}]   ;;  %s198_s2 = inlined_call_operand.hbm [shape: f32[1,64], index: 2, kind: input, shape index: {}]   ;;  %s199_s3 = inlined_call_operand.vmem [shape: bf16[16,64], index: 3, kind: output, shape index: {}]  }
   0x1   :  { %s18_s14 = sshll.u32 %s198_s2, 4  ;;  %s20_s16 = sshll.u32 %s152_s15, 4  ;;  %s19_s14 = int_to_ptr.hbm [resolvable:$true] %s18_s14  ;;  %s21_s16 = int_to_ptr.vmem [resolvable:$true] %s20_s16 }
   0x2   :  { %23 = dma.hbm_to_vmem [thread:$0]  %s19_s14, 16, %s21_s16, [#allocation4]  }
   0x3   :  { %150 = dma.done.wait [#allocation4], 16  }
   0x4   :  { %151 = vsyncadd [#allocation4], 4294967280  ;;  %vm33_vm0 = vcmask 523264   ;;  %v153_v0 = vmov 0.0   ;;  %v122_v1 = vld [vmem:[%s197_s1 + $0x8] sm:$0xff]  ;;  %v121_v2 = vld [vmem:[%s197_s1] sm:$0xff] }
   0x5   :  { %34 = vst.msk [vmem:[#allocation2] sm:$0xff] %vm33_vm0, %v153_v0  ;;  %71 = vmatpush.bf16.msra.mxu0 %v122_v1  ;;  %v120_v3 = vld [vmem:[%s196_s0] sm:$0xff]  ;;  %vm61_vm1 = vcmask 261120   ;;  %v125_v8 = vld [vmem:[#allocation3] ss:$0 sm:$0xff]  ;;  %vm99_vm2 = vcmask 519168  }
   0x6   :  { %35 = vst.msk [vmem:[#allocation2 + $0x8] sm:$0xff] %vm33_vm0, %v153_v0 }
   0x9   :  { %72 = vmatpush.bf16.msra.mxu0 %v121_v2 }
   0xc   :  { %119 = vmatmul.msk.bf16.vlgmr.msra.gmra.mxu0 %vm61_vm1, %v120_v3  ;;  %v36_v4 = vld [vmem:[#allocation2] sm:$0xff] }
   0xd   :  { %v37_v7 = vld [vmem:[#allocation2 + $0x8] sm:$0xff] }
  0x89   :  { %v74_v5 = vpop.f32.mrf.mxu0 }
  0x8a   :  { %v79_v6 = vadd.f32 %v74_v5, %v36_v4 }
  0x8c   :  { %82 = vst.msk [vmem:[#allocation2] sm:$0xff] %vm33_vm0, %v79_v6 }
  0x91   :  { %v76_v9 = vpop.f32.mrf.mxu0 }
  0x92   :  { %v80_v10 = vadd.f32 %v76_v9, %v37_v7 }
  0x93   :  { %v87_v11 = vld [vmem:[#allocation2] sm:$0xff] }
  0x94   :  { %v93_v12 = vadd.f32 %v125_v8, %v87_v11  ;;  %83 = vst.msk [vmem:[#allocation2 + $0x8] sm:$0xff] %vm33_vm0, %v80_v10 }
  0x96   :  { %v95_v13 = vmax.f32 %v93_v12, 0.0 }
  0x98   :  { %v97_v14 = vpack.c.bf16 %v95_v13, %v95_v13 }
  0x9a   :  { %100 = vst.msk [vmem:[%s199_s3] sm:$0xf] %vm99_vm2, %v97_v14 }
  0x9b   :  { %v88_v15 = vld [vmem:[#allocation2 + $0x8] sm:$0xff] }
  0x9c   :  { %v94_v16 = vadd.f32 %v125_v8, %v88_v15 }
  0x9e   :  { %v96_v17 = vmax.f32 %v94_v16, 0.0 }
  0xa0   :  { %v98_v18 = vpack.c.bf16 %v96_v17, %v96_v17 }
  0xa2   :  { %101 = vst.msk [vmem:[%s199_s3 + $0x4] sm:$0xf] %vm99_vm2, %v98_v18 }
  0xa3   :  { %106 = vsyncpa [#allocation4], 1 }

// kernel: _lambda_.38
= control target key start
LH: loop header
LB: loop body
LE: loop exit
PB: predicated region body
PF: predicated region fallthrough
CT: control target
= control target key end

     0   :  { %11 = vsyncpa [#allocation4], 0  ;;  %s267_s24 = smov [#allocation3]   ;;  %s346_s0 = inlined_call_operand.vmem [shape: bf16[16,64], index: 0, kind: input, shape index: {}]   ;;  %s347_s1 = inlined_call_operand.vmem [shape: bf16[64,32], index: 1, kind: input, shape index: {}]   ;;  %s348_s2 = inlined_call_operand.hbm [shape: f32[1,32], index: 2, kind: input, shape index: {}]   ;;  %s349_s3 = inlined_call_operand.vmem [shape: bf16[16,32], index: 3, kind: input, shape index: {}]   ;;  %s350_s4 = inlined_call_operand.vmem [shape: f32[1,32], index: 4, kind: input, shape index: {}]   ;;  %s351_s5 = inlined_call_operand.vmem [shape: f32[1,32], index: 5, kind: input, shape index: {}]   ;;  %s352_s6 = inlined_call_operand.vmem [shape: bf16[16,32], index: 6, kind: output, shape index: {}]  }
   0x1   :  { %s21_s23 = sshll.u32 %s348_s2, 4  ;;  %s23_s25 = sshll.u32 %s267_s24, 4  ;;  %s22_s23 = int_to_ptr.hbm [resolvable:$true] %s21_s23  ;;  %s24_s25 = int_to_ptr.vmem [resolvable:$true] %s23_s25 }
   0x2   :  { %26 = dma.hbm_to_vmem [thread:$0]  %s22_s23, 16, %s24_s25, [#allocation4]  }
   0x3   :  { %265 = dma.done.wait [#allocation4], 16  }
   0x4   :  { %266 = vsyncadd [#allocation4], 4294967280  ;;  %vm42_vm0 = vcmask 261120   ;;  %v268_v0 = vmov 0.0   ;;  %v224_v1 = vld [vmem:[%s347_s1 + $0x18] sm:$0xff]  ;;  %v223_v2 = vld [vmem:[%s347_s1 + $0x10] sm:$0xff] }
   0x5   :  { %43 = vst.msk [vmem:[#allocation2] sm:$0xff] %vm42_vm0, %v268_v0  ;;  %94 = vmatpush.bf16.msra.mxu0 %v224_v1  ;;  %v222_v3 = vld [vmem:[%s347_s1 + $0x8] sm:$0xff]  ;;  %v221_v4 = vld [vmem:[%s347_s1] sm:$0xff]  ;;  %vm86_vm1 = vcmask 523264   ;;  %v232_v11 = vld [vmem:[#allocation3] ss:$0 sm:$0xff] }
   0x6   :  { %44 = vst.msk [vmem:[#allocation2 + $0x8] sm:$0xff] %vm42_vm0, %v268_v0  ;;  %v220_v5 = vld [vmem:[%s346_s0] sm:$0xff]  ;;  %v269_v24 = vmov 32.0   ;;  %vm191_vm7 = vcmask 257024  }
   0x7   :  { %v226_v10 = vld [vmem:[%s349_s3] sm:$0xff]   ;;  %235 = vrcp.f32 %v269_v24 }
   0x8   :  { %v227_v14 = vunpack.c.l.bf16 %v226_v10  ;;  %v228_v19 = vunpack.c.h.bf16 %v226_v10  ;;  %v233_v55 = vld [vmem:[%s350_s4] ss:$0 sm:$0xff] }
   0x9   :  { %95 = vmatpush.bf16.msra.mxu0 %v223_v2  ;;  %v234_v58 = vld [vmem:[%s351_s5] ss:$0 sm:$0xff] }
   0xc   :  { %v45_v6 = vld [vmem:[#allocation2] sm:$0xff] }
   0xd   :  { %96 = vmatpush.bf16.msra.mxu0 %v222_v3  ;;  %v46_v9 = vld [vmem:[#allocation2 + $0x8] sm:$0xff]  ;;  %v236_v25 = vpop.eup %235 }
   0xe   :  { %v133_v26 = vmul.f32 32.0, %v236_v25  ;;  %vm137_vm2 = vweird.f32 %v236_v25 }
  0x10   :  { %v134_v27 = vsub.f32 1.0, %v133_v26 }
  0x11   :  { %97 = vmatpush.bf16.msra.mxu0 %v221_v4 }
  0x12   :  { %v135_v28 = vmul.f32 %v236_v25, %v134_v27 }
  0x14   :  { %219 = vmatmul.msk.bf16.vlgmr.msra.gmra.mxu0 %vm86_vm1, %v220_v5  ;;  %v136_v29 = vadd.f32 %v236_v25, %v135_v28 }
  0x16   :  { %v138_v30 = vsel %vm137_vm2, %v236_v25, %v136_v29 }
  0x91   :  { %v99_v7 = vpop.f32.mrf.mxu0 }
  0x92   :  { %v104_v8 = vadd.f32 %v99_v7, %v45_v6 }
  0x94   :  { %107 = vst.msk [vmem:[#allocation2] sm:$0xff] %vm42_vm0, %v104_v8 }
  0x99   :  { %v101_v12 = vpop.f32.mrf.mxu0 }
  0x9a   :  { %v105_v13 = vadd.f32 %v101_v12, %v46_v9 }
  0x9b   :  { %v112_v15 = vld [vmem:[#allocation2] sm:$0xff] }
  0x9c   :  { %108 = vst.msk [vmem:[#allocation2 + $0x8] sm:$0xff] %vm42_vm0, %v105_v13  ;;  %v118_v16 = vadd.f32 %v232_v11, %v112_v15 }
  0x9e   :  { %v124_v17 = vadd.f32 %v227_v14, %v118_v16 }
  0xa0   :  { %v126_v18 = vsel %vm42_vm0, %v124_v17, 0.0 }
  0xa1   :  { %127 = vadd.xlane.f32.xlu0 %v126_v18 }
  0xa3   :  { %v113_v20 = vld [vmem:[#allocation2 + $0x8] sm:$0xff] }
  0xa4   :  { %v119_v21 = vadd.f32 %v232_v11, %v113_v20 }
  0xa6   :  { %v125_v22 = vadd.f32 %v228_v19, %v119_v21 }
  0xa8   :  { %v129_v23 = vsel %vm42_vm0, %v125_v22, 0.0 }
  0xa9   :  { %130 = vadd.xlane.f32.xlu0 %v129_v23 }
 0x114   :  { %v128_v31 = vpop.xlane.xlu0 %127 }
 0x115   :  { %v139_v32 = vmul.f32 %v138_v30, %v128_v31 }
 0x117   :  { %v141_v33 = vsub.f32 %v124_v17, %v139_v32 }
 0x119   :  { %v143_v34 = vmul.f32 %v141_v33, %v141_v33 }
 0x11b   :  { %v145_v35 = vsel %vm42_vm0, %v143_v34, 0.0 }
 0x11c   :  { %146 = vadd.xlane.f32.xlu1 %v145_v35  ;;  %v131_v36 = vpop.xlane.xlu0 %130 }
 0x11d   :  { %v140_v37 = vmul.f32 %v138_v30, %v131_v36 }
 0x11f   :  { %v142_v38 = vsub.f32 %v125_v22, %v140_v37 }
 0x121   :  { %v144_v39 = vmul.f32 %v142_v38, %v142_v38 }
 0x123   :  { %v148_v40 = vsel %vm42_vm0, %v144_v39, 0.0 }
 0x124   :  { %149 = vadd.xlane.f32.xlu1 %v148_v40 }
 0x18f   :  { %v147_v41 = vpop.xlane.xlu1 %146 }
 0x190   :  { %v151_v42 = vmul.f32 %v147_v41, %v138_v30 }
 0x192   :  { %v153_v43 = vadd.f32 1e-05, %v151_v42 }
 0x194   :  { %237 = vrsqrt.f32 %v153_v43  ;;  %vm161_vm4 = vweird.f32 %v153_v43 }
 0x197   :  { %v150_v44 = vpop.xlane.xlu1 %149 }
 0x198   :  { %v152_v45 = vmul.f32 %v150_v44, %v138_v30 }
 0x19a   :  { %v238_v46 = vpop.eup %237  ;;  %v154_v47 = vadd.f32 1e-05, %v152_v45 }
 0x19b   :  { %v156_v48 = vmul.f32 %v238_v46, %v153_v43  ;;  %vm162_vm3 = vweird.f32 %v238_v46 }
 0x19c   :  { %239 = vrsqrt.f32 %v154_v47  ;;  %vm163_vm5 = vmor %vm161_vm4, %vm162_vm3  ;;  %vm171_vm8 = vweird.f32 %v154_v47 }
 0x19d   :  { %v157_v49 = vmul.f32 %v238_v46, %v156_v48 }
 0x19f   :  { %v158_v50 = vmul.f32 0.5, %v157_v49 }
 0x1a1   :  { %v159_v51 = vsub.f32 1.5, %v158_v50 }
 0x1a2   :  { %v240_v52 = vpop.eup %239 }
 0x1a3   :  { %v160_v53 = vmul.f32 %v238_v46, %v159_v51  ;;  %v166_v54 = vmul.f32 %v240_v52, %v154_v47  ;;  %vm172_vm6 = vweird.f32 %v240_v52 }
 0x1a4   :  { %vm173_vm9 = vmor %vm171_vm8, %vm172_vm6 }
 0x1a5   :  { %v164_v56 = vsel %vm163_vm5, %v238_v46, %v160_v53  ;;  %v167_v57 = vmul.f32 %v240_v52, %v166_v54 }
 0x1a6   :  { %v175_v59 = vmul.f32 %v164_v56, %v141_v33 }
 0x1a7   :  { %v168_v60 = vmul.f32 0.5, %v167_v57 }
 0x1a8   :  { %v181_v61 = vmul.f32 %v233_v55, %v175_v59 }
 0x1a9   :  { %v169_v62 = vsub.f32 1.5, %v168_v60 }
 0x1aa   :  { %v187_v63 = vadd.f32 %v234_v58, %v181_v61 }
 0x1ab   :  { %v170_v0 = vmul.f32 %v240_v52, %v169_v62 }
 0x1ac   :  { %v189_v1 = vpack.c.bf16 %v187_v63, %v187_v63 }
 0x1ad   :  { %v174_v2 = vsel %vm173_vm9, %v240_v52, %v170_v0 }
 0x1ae   :  { %192 = vst.msk [vmem:[%s352_s6] sm:$0xf] %vm191_vm7, %v189_v1  ;;  %v176_v3 = vmul.f32 %v174_v2, %v142_v38 }
 0x1b0   :  { %v182_v4 = vmul.f32 %v233_v55, %v176_v3 }
 0x1b2   :  { %v188_v5 = vadd.f32 %v234_v58, %v182_v4 }
 0x1b4   :  { %v190_v6 = vpack.c.bf16 %v188_v5, %v188_v5 }
 0x1b6   :  { %193 = vst.msk [vmem:[%s352_s6 + $0x4] sm:$0xf] %vm191_vm7, %v190_v6 }
 0x1b7   :  { %198 = vsyncpa [#allocation4], 1 }

// kernel: _lambda_.52
= control target key start
LH: loop header
LB: loop body
LE: loop exit
PB: predicated region body
PF: predicated region fallthrough
CT: control target
= control target key end

     0   :  { %vm19_vm0 = vcmask 523264   ;;  %v108_v1 = vmov 0.0   ;;  %vm47_vm1 = vcmask 261120   ;;  %vm83_vm2 = vcmask 519168   ;;  %s151_s1 = inlined_call_operand.vmem [shape: bf16[32,64], index: 1, kind: input, shape index: {}]   ;;  %s152_s2 = inlined_call_operand.vmem [shape: f32[1,64], index: 2, kind: input, shape index: {}]   ;;  %s153_s0 = inlined_call_operand.vmem [shape: bf16[16,32], index: 0, kind: input, shape index: {}]   ;;  %s154_s3 = inlined_call_operand.vmem [shape: bf16[16,64], index: 3, kind: output, shape index: {}]  }
   0x1   :  { %v105_v0 = vld [vmem:[%s151_s1 + $0x8] sm:$0xff]  ;;  %20 = vst.msk [vmem:[#allocation2] sm:$0xff] %vm19_vm0, %v108_v1  ;;  %v104_v2 = vld [vmem:[%s151_s1] sm:$0xff] }
   0x2   :  { %21 = vst.msk [vmem:[#allocation2 + $0x8] sm:$0xff] %vm19_vm0, %v108_v1  ;;  %57 = vmatpush.bf16.msra.mxu0 %v105_v0  ;;  %v103_v3 = vld [vmem:[%s153_s0] sm:$0xff] }
   0x3   :  { %v107_v8 = vld [vmem:[%s152_s2] ss:$0 sm:$0xff] }
   0x6   :  { %58 = vmatpush.bf16.msra.mxu0 %v104_v2 }
   0x8   :  { %v22_v4 = vld [vmem:[#allocation2] sm:$0xff] }
   0x9   :  { %102 = vmatmul.msk.bf16.vlgmr.msra.gmra.mxu0 %vm47_vm1, %v103_v3  ;;  %v23_v7 = vld [vmem:[#allocation2 + $0x8] sm:$0xff] }
  0x86   :  { %v60_v5 = vpop.f32.mrf.mxu0 }
  0x87   :  { %v65_v6 = vadd.f32 %v60_v5, %v22_v4 }
  0x89   :  { %68 = vst.msk [vmem:[#allocation2] sm:$0xff] %vm19_vm0, %v65_v6 }
  0x8e   :  { %v62_v9 = vpop.f32.mrf.mxu0 }
  0x8f   :  { %v66_v10 = vadd.f32 %v62_v9, %v23_v7 }
  0x90   :  { %v73_v11 = vld [vmem:[#allocation2] sm:$0xff] }
  0x91   :  { %v79_v12 = vadd.f32 %v107_v8, %v73_v11  ;;  %69 = vst.msk [vmem:[#allocation2 + $0x8] sm:$0xff] %vm19_vm0, %v66_v10 }
  0x93   :  { %v81_v13 = vpack.c.bf16 %v79_v12, %v79_v12 }
  0x95   :  { %84 = vst.msk [vmem:[%s154_s3] sm:$0xf] %vm83_vm2, %v81_v13 }
  0x98   :  { %v74_v14 = vld [vmem:[#allocation2 + $0x8] sm:$0xff] }
  0x99   :  { %v80_v15 = vadd.f32 %v107_v8, %v74_v14 }
  0x9b   :  { %v82_v16 = vpack.c.bf16 %v80_v15, %v80_v15 }
  0x9d   :  { %85 = vst.msk [vmem:[%s154_s3 + $0x4] sm:$0xf] %vm83_vm2, %v82_v16 }

// kernel: _lambda_.42
= control target key start
LH: loop header
LB: loop body
LE: loop exit
PB: predicated region body
PF: predicated region fallthrough
CT: control target
= control target key end

     0   :  { %vm19_vm0 = vcmask 261120   ;;  %v107_v1 = vmov 0.0   ;;  %vm82_vm1 = vcmask 257024   ;;  %s151_s1 = inlined_call_operand.vmem [shape: bf16[32,32], index: 1, kind: input, shape index: {}]   ;;  %s152_s2 = inlined_call_operand.vmem [shape: f32[1,32], index: 2, kind: input, shape index: {}]   ;;  %s153_s0 = inlined_call_operand.vmem [shape: bf16[16,32], index: 0, kind: input, shape index: {}]   ;;  %s154_s3 = inlined_call_operand.vmem [shape: bf16[16,32], index: 3, kind: output, shape index: {}]  }
   0x1   :  { %v104_v0 = vld [vmem:[%s151_s1 + $0x8] sm:$0xff]  ;;  %20 = vst.msk [vmem:[#allocation2] sm:$0xff] %vm19_vm0, %v107_v1  ;;  %v103_v2 = vld [vmem:[%s151_s1] sm:$0xff] }
   0x2   :  { %21 = vst.msk [vmem:[#allocation2 + $0x8] sm:$0xff] %vm19_vm0, %v107_v1  ;;  %57 = vmatpush.bf16.msra.mxu0 %v104_v0  ;;  %v102_v3 = vld [vmem:[%s153_s0] sm:$0xff] }
   0x3   :  { %v106_v8 = vld [vmem:[%s152_s2] ss:$0 sm:$0xff] }
   0x6   :  { %58 = vmatpush.bf16.msra.mxu0 %v103_v2 }
   0x8   :  { %v22_v4 = vld [vmem:[#allocation2] sm:$0xff] }
   0x9   :  { %101 = vmatmul.msk.bf16.vlgmr.msra.gmra.mxu0 %vm19_vm0, %v102_v3  ;;  %v23_v7 = vld [vmem:[#allocation2 + $0x8] sm:$0xff] }
  0x86   :  { %v60_v5 = vpop.f32.mrf.mxu0 }
  0x87   :  { %v65_v6 = vadd.f32 %v60_v5, %v22_v4 }
  0x89   :  { %67 = vst.msk [vmem:[#allocation2] sm:$0xff] %vm19_vm0, %v65_v6 }
  0x8e   :  { %v62_v9 = vpop.f32.mrf.mxu0 }
  0x8f   :  { %v66_v10 = vadd.f32 %v62_v9, %v23_v7 }
  0x90   :  { %v72_v11 = vld [vmem:[#allocation2] sm:$0xff] }
  0x91   :  { %v78_v12 = vadd.f32 %v106_v8, %v72_v11  ;;  %68 = vst.msk [vmem:[#allocation2 + $0x8] sm:$0xff] %vm19_vm0, %v66_v10 }
  0x93   :  { %v80_v13 = vpack.c.bf16 %v78_v12, %v78_v12 }
  0x95   :  { %83 = vst.msk [vmem:[%s154_s3] sm:$0xf] %vm82_vm1, %v80_v13 }
  0x98   :  { %v73_v14 = vld [vmem:[#allocation2 + $0x8] sm:$0xff] }
  0x99   :  { %v79_v15 = vadd.f32 %v106_v8, %v73_v14 }
  0x9b   :  { %v81_v16 = vpack.c.bf16 %v79_v15, %v79_v15 }
  0x9d   :  { %84 = vst.msk [vmem:[%s154_s3 + $0x4] sm:$0xf] %vm82_vm1, %v81_v16 }

// kernel: _lambda_.57
= control target key start
LH: loop header
LB: loop body
LE: loop exit
PB: predicated region body
PF: predicated region fallthrough
CT: control target
= control target key end

     0   :  { %vm20_vm0 = vcmask 261120   ;;  %v148_v1 = vmov 0.0   ;;  %s194_s0 = inlined_call_operand.vmem [shape: bf16[16,32], index: 0, kind: input, shape index: {}]   ;;  %s195_s1 = inlined_call_operand.vmem [shape: bf16[32,32], index: 1, kind: input, shape index: {}]   ;;  %s196_s2 = inlined_call_operand.vmem [shape: f32[1,32], index: 2, kind: input, shape index: {}]   ;;  %s197_s3 = inlined_call_operand.hbm [shape: f32[16,32], index: 3, kind: output, shape index: {}]  }
   0x1   :  { %v116_v0 = vld [vmem:[%s195_s1 + $0x8] sm:$0xff]  ;;  %21 = vst.msk [vmem:[#allocation2] sm:$0xff] %vm20_vm0, %v148_v1 }
   0x2   :  { %8 = vsyncpa [#allocation4], 0  ;;  %58 = vmatpush.bf16.msra.mxu0 %v116_v0  ;;  %v115_v2 = vld [vmem:[%s195_s1] sm:$0xff]  ;;  %22 = vst.msk [vmem:[#allocation2 + $0x8] sm:$0xff] %vm20_vm0, %v148_v1  ;;  %s89_s22 = sshll.u32 %s197_s3, 4  ;;  %s151_s23 = smov 8   ;;  %s90_s22 = int_to_ptr.hbm [resolvable:$true] %s89_s22 }
   0x3   :  { %v114_v3 = vld [vmem:[%s194_s0] sm:$0xff]  ;;  %s149_s0 = smov [#allocation3]  }
   0x4   :  { %v121_v8 = vld [vmem:[%s196_s2] ss:$0 sm:$0xff]  ;;  %s87_s1 = sshll.u32 %s149_s0, 4  ;;  %s150_s2 = smov 128   ;;  %s88_s1 = int_to_ptr.vmem [resolvable:$true] %s87_s1 }
   0x6   :  { %59 = vmatpush.bf16.msra.mxu0 %v115_v2 }
   0x8   :  { %v23_v4 = vld [vmem:[#allocation2] sm:$0xff] }
   0x9   :  { %113 = vmatmul.msk.bf16.vlgmr.msra.gmra.mxu0 %vm20_vm0, %v114_v3  ;;  %v24_v7 = vld [vmem:[#allocation2 + $0x8] sm:$0xff] }
  0x86   :  { %v61_v5 = vpop.f32.mrf.mxu0 }
  0x87   :  { %v66_v6 = vadd.f32 %v61_v5, %v23_v4 }
  0x89   :  { %68 = vst.msk [vmem:[#allocation2] sm:$0xff] %vm20_vm0, %v66_v6 }
  0x8e   :  { %v63_v9 = vpop.f32.mrf.mxu0 }
  0x8f   :  { %v67_v10 = vadd.f32 %v63_v9, %v24_v7 }
  0x90   :  { %v73_v11 = vld [vmem:[#allocation2] sm:$0xff] }
  0x91   :  { %69 = vst.msk [vmem:[#allocation2 + $0x8] sm:$0xff] %vm20_vm0, %v67_v10  ;;  %v79_v12 = vadd.f32 %v121_v8, %v73_v11 }
  0x93   :  { %81 = vst.msk [vmem:[#allocation3] sm:$0xff] %vm20_vm0, %v79_v12 }
  0x98   :  { %v74_v13 = vld [vmem:[#allocation2 + $0x8] sm:$0xff] }
  0x99   :  { %v80_v14 = vadd.f32 %v121_v8, %v74_v13 }
  0x9b   :  { %82 = vst.msk [vmem:[#allocation3 + $0x8] sm:$0xff] %vm20_vm0, %v80_v14 }
  0x9c   :  { %95 = dma.vmem_to_hbm [thread:$0]  %s88_s1, 256, %s90_s22, [#allocation4], %s150_s2, %s150_s2, %s151_s23  }
  0x9d   :  { %146 = dma.done.wait [#allocation4], 256  }
  0x9e   :  { %147 = vsyncadd [#allocation4], 4294967040 }
  0x9f   :  { %100 = vsyncpa [#allocation4], 1 }

// kernel: _lambda_.40
= control target key start
LH: loop header
LB: loop body
LE: loop exit
PB: predicated region body
PF: predicated region fallthrough
CT: control target
= control target key end

     0   :  { %s978_s12 = smov 0   ;;  %s980_s13 = smov 0   ;;  %s1136_s0 = inlined_call_operand.vmem [shape: bf16[2,8,96], index: 0, kind: input, shape index: {}, may-alias: {0,1}]   ;;  %s1137_s1 = inlined_call_operand.vmem [shape: bf16[2,8,96], index: 1, kind: input, shape index: {}, may-alias: {0,1}]   ;;  %s1138_s2 = inlined_call_operand.vmem [shape: f32[2,8,1], index: 2, kind: input, shape index: {}]   ;;  %s1139_s3 = inlined_call_operand.vmem [shape: bf16[2,8,32], index: 3, kind: output, shape index: {}]  }
   0x1   :  { %s982_s14 = smov 0  }
   0x2 LB: > { %s32_s15 = sadd.s32 1, %s934_s13  ;;  %p832_p0 = scmp.ge.s32.totalorder %s938_s14, 1  ;;  %s938_s14 = sphi %s982_s14, %s13_s14   ;;  %s934_s13 = sphi %s980_s13, %s1141_s13   ;;  %s930_s12 = sphi %s978_s12, %s1140_s12  }
   0x3   : > { %p34_p1 = scmp.ge.s32.totalorder %s32_s15, 2  ;;  %p190_p2 = scmp.lt.s32.totalorder %s938_s14, 3 }
   0x5   : > { %s1143_s15 = smov (%p34_p1, %s32_s15), 0  ;;  %p191_p3 = pnand %p832_p0, %p190_p2 }
   0x6   : > { %p232_p4 = scmp.lt.s32.totalorder (!%p191_p3), %s930_s12, 1  ;;  %s940_s20 = smov (!%p191_p3), 96  }
   0x7   : > { %194 = sbr.rel (%p191_p3) target bundleno = 1264 (0x4f0), region = 32  ;;  %s944_s28 = smov (!%p191_p3), 80  }
   0x8   : > { %s945_s29 = smov (!%p191_p3), 88   ;;  %s947_s30 = smov (!%p191_p3), 112  }
   0x9   : > { %s948_s4 = smov (!%p191_p3), 120   ;;  %s949_s5 = smov (!%p191_p3), 64  }
   0xa   : > { %s950_s6 = smov (!%p191_p3), 72   ;;  %s951_s7 = smov (!%p191_p3), 104  }
   0xb   : > { %s952_s8 = smov (!%p191_p3), 56   ;;  %s953_s9 = smov (!%p191_p3), 40  }
   0xc   : > { %s1145_s12 = smov (!%p232_p4, %s930_s12), 1  ;;  %v941_v4 = vmov 0   ;;  %vm274_vm1 = vcmask 64512   ;;  %v281_v9 = vlaneseq  ;;  %vm265_vm5 = vcmask 7168   ;;  %s954_s10 = smov 48  }
   0xd   : > { %s996_s16 = sshll.u32 %s1145_s12, 2  ;;  %s835_s21 = sshll.u32 %s1145_s12, 3  ;;  %889 = vset.pattern.permute.xlu0 %v941_v4  ;;  %890 = vset.pattern.permute.xlu2 %v941_v4  ;;  %v942_v14 = vmov -1e+09   ;;  %v943_v18 = vmov -1e+30  }
   0xe   : > { %s1002_s19 = scalar_lea.vmem %s1137_s1, %s996_s16  ;;  %s252_s24 = scalar_lea.vmem %s1138_s2, %s835_s21  ;;  %891 = vset.pattern.permute.xlu1 %v941_v4  ;;  %v282_v10 = vshrl.u32 %v281_v9, 7  ;;  %v287_v11 = vand.u32 127, %v281_v9  ;;  %266 = vst.msk [vmem:[#allocation2] sm:$0xff] %vm265_vm5, %v943_v18  ;;  %v946_v27 = vmov 0.0   ;;  %vm365_vm6 = vcmask 1043456  }
   0xf   : > { %v300_v0 = vld [vmem:[%s1002_s19] sm:$0xf]  ;;  %s1016_s27 = scalar_lea.vmem %s1136_s0, %s996_s16  ;;  %267 = vst.msk [vmem:[#allocation2 + $0x8] sm:$0xff] %vm265_vm5, %v943_v18  ;;  %s259_s17 = scalar_lea.vmem %s1139_s3, %s996_s16  ;;  %vm671_vm7 = vcmask 60416   ;;  %vm687_vm8 = vcmask 126016   ;;  %vm703_vm9 = vcmask 191616  }
  0x10   : > { %v302_v1 = vunpack.c.l.b16 %v300_v0  ;;  %v279_v3 = vld [vmem:[%s252_s24] sm:$0xff]  ;;  %vm290_vm2 = vcmp.le.s32.totalorder %v287_v11, %v282_v10  ;;  %268 = vst.msk [vmem:[#allocation2 + $0x10] sm:$0xff] %vm265_vm5, %v943_v18  ;;  %s955_s18 = smov 8   ;;  %s957_s16 = smov 16   ;;  %vm719_vm10 = vcmask 257216  }
  0x11   : > { %vm291_vm0 = vcmp.gt.f32.partialorder %v279_v3, 0.5  ;;  %v299_v8 = vld [vmem:[%s1016_s27] sm:$0xf]  ;;  %269 = vst.msk [vmem:[#allocation2 + $0x18] sm:$0xff] %vm265_vm5, %v943_v18 }
  0x12   : > { %v1005_v2 = vpack.c.b16 %v302_v1, %v302_v1  ;;  %v292_v5 = vsel %vm291_vm0, 1, %v941_v4  ;;  %v477_v13 = vld [vmem:[%s1002_s19] sm:$0xf]  ;;  %275 = vst.msk [vmem:[#allocation4] sm:$0xff] %vm274_vm1, %v946_v27 }
  0x13   : > { %v484_v17 = vunpack.c.l.b16 %v477_v13  ;;  %v386_v24 = vld [vmem:[%s1002_s19] sm:$0xf]  ;;  %270 = vst.msk [vmem:[#allocation3] sm:$0xff] %vm265_vm5, %v946_v27 }
  0x14   : > { %304 = vrot.lane.b32.xlu0 %v1005_v2, %s940_s20  ;;  %v393_v25 = vunpack.c.l.b16 %v386_v24  ;;  %271 = vst.msk [vmem:[#allocation3 + $0x8] sm:$0xff] %vm265_vm5, %v946_v27  ;;  %v476_v28 = vld [vmem:[%s1016_s27] sm:$0xf] }
  0x15   : > { %v1025_v20 = vpack.c.b16 %v484_v17, %v484_v17  ;;  %272 = vst.msk [vmem:[#allocation3 + $0x10] sm:$0xff] %vm265_vm5, %v946_v27  ;;  %v479_v29 = vunpack.c.l.b16 %v476_v28  ;;  %v1045_v31 = vld [vmem:[#allocation2] sm:$0xff] }
  0x16   : > { %v1033_v26 = vpack.c.b16 %v393_v25, %v393_v25  ;;  %273 = vst.msk [vmem:[#allocation3 + $0x18] sm:$0xff] %vm265_vm5, %v946_v27  ;;  %v385_v33 = vld [vmem:[%s1016_s27] sm:$0xf]  ;;  %v419_v13 = vld [vmem:[#allocation2 + $0x8] sm:$0xff] }
  0x17   : > { %276 = vst.msk [vmem:[#allocation4 + $0x8] sm:$0xff] %vm274_vm1, %v946_v27  ;;  %v480_v30 = vpack.c.b16 %v479_v29, %v479_v29  ;;  %v388_v36 = vunpack.c.l.b16 %v385_v33  ;;  %v568_v38 = vld [vmem:[%s1002_s19] sm:$0xf]  ;;  %s956_s19 = smov 24  }
  0x18   : > { %277 = vst.msk [vmem:[#allocation4 + $0x10] sm:$0xff] %vm274_vm1, %v946_v27  ;;  %v575_v39 = vunpack.c.l.b16 %v568_v38  ;;  %v567_v41 = vld [vmem:[%s1016_s27] sm:$0xf]  ;;  %v1081_v17 = vld [vmem:[#allocation2 + $0x18] sm:$0xff] }
  0x19   : > { %278 = vst.msk [vmem:[#allocation4 + $0x18] sm:$0xff] %vm274_vm1, %v946_v27  ;;  %v389_v37 = vpack.c.b16 %v388_v36, %v388_v36  ;;  %v570_v42 = vunpack.c.l.b16 %v567_v41 }
  0x1a   : > { %v576_v40 = vpack.c.b16 %v575_v39, %v575_v39 }
  0x1b   : > { %v571_v43 = vpack.c.b16 %v570_v42, %v570_v42 }
  0x1c   : > { %294 = vperm.xlu0 %889, %v292_v5  }
  0x24   : > { %486 = vrot.lane.b32.xlu0 %v1025_v20, %s944_s28 }
  0x2c   : > { %481 = vrot.lane.b32.xlu0 %v480_v30, %s947_s30 }
  0x86   : > { %v305_v6 = vpop.permute.xlu0 %304 }
  0x87   : > { %v311_v7 = vsel %vm274_vm1, %v305_v6, 0 }
  0x88   : > { %320 = vmatpush.bf16.xpose.msra.mxu0 %v311_v7 }
  0x8e   : > { %v295_v12 = vpop.permute.xlu0 %294 }
  0x8f   : > { %837 = vmatmul.msk.bf16.vlgmr.msra.gmra.mxu0 %vm274_vm1, %v299_v8  ;;  %vm296_vm3 = vcmp.eq.s32.totalorder %v295_v12, 1 }
  0x90   : > { %vm297_vm4 = vmand %vm290_vm2, %vm296_vm3 }
  0x91   : > { %v1021_v15 = vsel %vm297_vm4, 0.0, %v942_v14 }
  0x96   : > { %v487_v50 = vpop.permute.xlu0 %486 }
  0x97   : > { %v492_v53 = vsel %vm274_vm1, %v487_v50, 0 }
  0x9e   : > { %v482_v59 = vpop.permute.xlu0 %481 }
 0x10c   : > { %v322_v16 = vpop.f32.mrf.mxu0 }
 0x10d   : > { %v326_v19 = vmul.f32 0.35355338, %v322_v16 }
 0x10f   : > { %v327_v21 = vadd.f32 %v326_v19, %v1021_v15  ;;  %v510_v19 = vld [vmem:[#allocation2 + $0x10] sm:$0xff] }
 0x111   : > { %v329_v22 = vsel %vm274_vm1, %v327_v21, -inf }
 0x112   : > { %330 = vmax.xlane.f32.xlu1 %v329_v22 }
 0x114   : > { %v324_v23 = vpop.f32.mrf.mxu0 }
 0x12b   : > { %395 = vrot.lane.b32.xlu1 %v1033_v26, %s945_s29 }
 0x185   : > { %v331_v32 = vpop.xlane.xlu1 %330 }
 0x186   : > { %v1049_v34 = vmax.f32 %v1045_v31, %v331_v32 }
 0x188   : > { %v333_v35 = vsub.f32 %v1045_v31, %v1049_v34  ;;  %384 = vst.msk [vmem:[#allocation2] sm:$0xff] %vm265_vm5, %v1049_v34  ;;  %338 = vperm.xlu2 %890, %v1049_v34  }
 0x18a   : > { %v334_v25 = vmul.f32 1.442695, %v333_v35 }
 0x190   : > { %390 = vrot.lane.b32.xlu2 %v389_v37, %s948_s4 }
 0x198   : > { %360 = vrot.lane.b32.xlu2 %v1005_v2, %s949_s5 }
 0x19d   : > { %v396_v44 = vpop.permute.xlu1 %395 }
 0x19e   : > { %v401_v45 = vsel %vm274_vm1, %v396_v44, 0 }
 0x19f   : > { %410 = vmatpush.bf16.xpose.msra.mxu2 %v401_v45 }
 0x1a0   : > { %577 = vrot.lane.b32.xlu2 %v576_v40, %s950_s6 }
 0x1a8   : > { %572 = vrot.lane.b32.xlu2 %v571_v43, %s951_s7 }
 0x1e2   : > { %v339_v46 = vpop.permute.xlu2 %338 }
 0x1e3   : > { %v341_v47 = vsub.f32 %v327_v21, %v339_v46 }
 0x1e5   : > { %v342_v48 = vmul.f32 1.442695, %v341_v47 }
 0x1e7   : > { %892 = vpow2.f32 %v342_v48 }
 0x1e8   : > { %894 = vpow2.f32 %v334_v25 }
 0x1ea   : > { %v391_v49 = vpop.permute.xlu2 %390 }
 0x1eb   : > { %839 = vmatmul.msk.bf16.vlgmr.msra.gmra.mxu2 %vm274_vm1, %v391_v49 }
 0x1ed   : > { %v1061_v51 = vpop.eup %892 }
 0x1ee   : > { %v359_v55 = vpack.c.bf16 %v1061_v51, %v1061_v51  ;;  %v895_v28 = vpop.eup %894  ;;  %v346_v30 = vsel %vm274_vm1, %v1061_v51, 0.0 }
 0x1f2   : > { %v361_v52 = vpop.permute.xlu2 %360 }
 0x1f3   : > { %v367_v54 = vsel %vm365_vm6, %v361_v52, 0 }
 0x1f4   : > { %376 = vmatpush.bf16.msra.mxu1 %v367_v54 }
 0x1f7   : > { %838 = vmatmul.msk.bf16.vlgmr.msra.gmra.mxu1 %vm274_vm1, %v359_v55 }
 0x1f8   : > { %501 = vmatpush.bf16.xpose.msrb.mxu1 %v492_v53 }
 0x1fa   : > { %v578_v56 = vpop.permute.xlu2 %577 }
 0x1fb   : > { %v583_v57 = vsel %vm274_vm1, %v578_v56, 0  ;;  %v352_v56 = vld [vmem:[#allocation4] sm:$0xff] }
 0x1fc   : > { %592 = vmatpush.bf16.xpose.msrb.mxu0 %v583_v57 }
 0x202   : > { %v573_v58 = vpop.permute.xlu2 %572 }
 0x203   : > { %843 = vmatmul.msk.bf16.vlgmr.msrb.gmra.mxu0 %vm274_vm1, %v573_v58 }
 0x207   : > { %841 = vmatmul.msk.bf16.vlgmr.msrb.gmra.mxu1 %vm274_vm1, %v482_v59 }
 0x26e   : > { %v412_v60 = vpop.f32.mrf.mxu2 }
 0x26f   : > { %v416_v61 = vmul.f32 0.35355338, %v412_v60 }
 0x271   : > { %v417_v62 = vadd.f32 %v416_v61, %v1021_v15 }
 0x273   : > { %v420_v63 = vsel %vm274_vm1, %v417_v62, -inf }
 0x274   : > { %v1073_v0 = vpop.f32.mrf.mxu1  ;;  %421 = vmax.xlane.f32.xlu1 %v420_v63 }
 0x276   : > { %v414_v1 = vpop.f32.mrf.mxu2 }
 0x27c   : > { %v380_v2 = vpop.f32.mrf.mxu1 }
 0x280   : > { %v594_v3 = vpop.f32.mrf.mxu0 }
 0x281   : > { %v598_v4 = vmul.f32 0.35355338, %v594_v3 }
 0x283   : > { %v599_v5 = vadd.f32 %v598_v4, %v1021_v15 }
 0x284   : > { %v503_v6 = vpop.f32.mrf.mxu1 }
 0x285   : > { %v507_v7 = vmul.f32 0.35355338, %v503_v6  ;;  %v602_v8 = vsel %vm274_vm1, %v599_v5, -inf }
 0x286   : > { %603 = vmax.xlane.f32.xlu2 %v602_v8 }
 0x287   : > { %v508_v9 = vadd.f32 %v507_v7, %v1021_v15 }
 0x288   : > { %v596_v10 = vpop.f32.mrf.mxu0 }
 0x289   : > { %v511_v11 = vsel %vm274_vm1, %v508_v9, -inf }
 0x28a   : > { %512 = vmax.xlane.f32.xlu0 %v511_v11  ;;  %v618_v11 = vld [vmem:[#allocation3 + $0x18] sm:$0xff] }
 0x28c   : > { %v505_v12 = vpop.f32.mrf.mxu1 }
 0x29e   : > { %452 = vrot.lane.b32.xlu2 %v1033_v26, %s952_s8 }
 0x2a6   : > { %634 = vrot.lane.b32.xlu2 %v576_v40, %s953_s9 }
 0x2e7   : > { %v422_v14 = vpop.xlane.xlu1 %421 }
 0x2e8   : > { %v423_v16 = vmax.f32 %v419_v13, %v422_v14 }
 0x2ea   : > { %475 = vst.msk [vmem:[#allocation2 + $0x8] sm:$0xff] %vm265_vm5, %v423_v16  ;;  %429 = vperm.xlu1 %891, %v423_v16   ;;  %v424_v26 = vsub.f32 %v419_v13, %v423_v16 }
 0x2ec   : > { %v425_v27 = vmul.f32 1.442695, %v424_v26 }
 0x2ee   : > { %896 = vpow2.f32 %v425_v27 }
 0x2f4   : > { %v1096_v29 = vpop.eup %896 }
 0x2f9   : > { %v604_v18 = vpop.xlane.xlu2 %603 }
 0x2fa   : > { %v1084_v15 = vmax.f32 %v1081_v17, %v604_v18 }
 0x2fc   : > { %v606_v21 = vsub.f32 %v1081_v17, %v1084_v15  ;;  %657 = vst.msk [vmem:[#allocation2 + $0x18] sm:$0xff] %vm265_vm5, %v1084_v15  ;;  %611 = vperm.xlu1 %891, %v1084_v15   ;;  %v527_v15 = vld [vmem:[#allocation3 + $0x10] sm:$0xff] }
 0x2fd   : > { %v513_v22 = vpop.xlane.xlu0 %512 }
 0x2fe   : > { %v514_v23 = vmax.f32 %v510_v19, %v513_v22  ;;  %v607_v60 = vmul.f32 1.442695, %v606_v21 }
 0x300   : > { %v515_v24 = vsub.f32 %v510_v19, %v514_v23  ;;  %566 = vst.msk [vmem:[#allocation2 + $0x10] sm:$0xff] %vm265_vm5, %v514_v23  ;;  %520 = vperm.xlu0 %889, %v514_v23  }
 0x301   : > { %v453_v32 = vpop.permute.xlu2 %452 }
 0x302   : > { %v458_v31 = vsel %vm365_vm6, %v453_v32, 0  ;;  %v516_v46 = vmul.f32 1.442695, %v515_v24 }
 0x303   : > { %467 = vmatpush.bf16.msra.mxu3 %v458_v31 }
 0x308   : > { %543 = vrot.lane.b32.xlu0 %v1025_v20, %s954_s10 }
 0x309   : > { %v635_v33 = vpop.permute.xlu2 %634 }
 0x30a   : > { %v640_v20 = vsel %vm365_vm6, %v635_v33, 0 }
 0x30b   : > { %649 = vmatpush.bf16.msrb.mxu2 %v640_v20 }
 0x310   : > { %355 = vperm.xlu0 %889, %v895_v28  }
 0x318   : > { %447 = vperm.xlu0 %889, %v1096_v29  }
 0x326   : > { %347 = vadd.xlane.f32.xlu1 %v346_v30 }
 0x35c   : > { %v430_v34 = vpop.permute.xlu1 %429 }
 0x35d   : > { %v432_v35 = vsub.f32 %v417_v62, %v430_v34  ;;  %v344_v62 = vld [vmem:[#allocation3] sm:$0xff]  ;;  %v626_v34 = vld [vmem:[#allocation4 + $0x18] sm:$0xff] }
 0x35e   : > { %v345_v63 = vmul.f32 %v895_v28, %v344_v62  ;;  %v535_v28 = vld [vmem:[#allocation4 + $0x10] sm:$0xff] }
 0x35f   : > { %v433_v36 = vmul.f32 1.442695, %v432_v35 }
 0x361   : > { %898 = vpow2.f32 %v433_v36 }
 0x367   : > { %v899_v37 = vpop.eup %898 }
 0x368   : > { %v438_v38 = vsel %vm274_vm1, %v899_v37, 0.0  ;;  %v451_v39 = vpack.c.bf16 %v899_v37, %v899_v37 }
 0x369   : > { %439 = vadd.xlane.f32.xlu2 %v438_v38 }
 0x36a   : > { %840 = vmatmul.msk.bf16.vlgmr.msra.gmra.mxu3 %vm274_vm1, %v451_v39 }
 0x36e   : > { %v612_v40 = vpop.permute.xlu1 %611 }
 0x36f   : > { %v614_v41 = vsub.f32 %v599_v5, %v612_v40 }
 0x371   : > { %v615_v42 = vmul.f32 1.442695, %v614_v41 }
 0x372   : > { %v521_v43 = vpop.permute.xlu0 %520 }
 0x373   : > { %900 = vpow2.f32 %v615_v42  ;;  %v523_v44 = vsub.f32 %v508_v9, %v521_v43  ;;  %v444_v9 = vld [vmem:[#allocation4 + $0x8] sm:$0xff] }
 0x375   : > { %v524_v45 = vmul.f32 1.442695, %v523_v44 }
 0x377   : > { %902 = vpow2.f32 %v524_v45 }
 0x378   : > { %904 = vpow2.f32 %v516_v46 }
 0x379   : > { %v901_v47 = vpop.eup %900  ;;  %906 = vpow2.f32 %v607_v60 }
 0x37a   : > { %v544_v48 = vpop.permute.xlu0 %543  ;;  %v620_v49 = vsel %vm274_vm1, %v901_v47, 0.0  ;;  %v633_v50 = vpack.c.bf16 %v901_v47, %v901_v47 }
 0x37b   : > { %621 = vadd.xlane.f32.xlu1 %v620_v49  ;;  %v549_v51 = vsel %vm365_vm6, %v544_v48, 0 }
 0x37c   : > { %844 = vmatmul.msk.bf16.vlgmr.msrb.gmra.mxu2 %vm274_vm1, %v633_v50  ;;  %558 = vmatpush.bf16.msrb.mxu3 %v549_v51 }
 0x37d   : > { %v903_v52 = vpop.eup %902 }
 0x37e   : > { %v529_v53 = vsel %vm274_vm1, %v903_v52, 0.0  ;;  %v542_v54 = vpack.c.bf16 %v903_v52, %v903_v52  ;;  %v905_v55 = vpop.eup %904 }
 0x37f   : > { %530 = vadd.xlane.f32.xlu0 %v529_v53  ;;  %v907_v61 = vpop.eup %906  ;;  %v528_v21 = vmul.f32 %v905_v55, %v527_v15 }
 0x380   : > { %842 = vmatmul.msk.bf16.vlgmr.msrb.gmra.mxu3 %vm274_vm1, %v542_v54  ;;  %v619_v16 = vmul.f32 %v907_v61, %v618_v11 }
 0x381   : > { %538 = vperm.xlu2 %890, %v905_v55  }
 0x382   : > { %v356_v57 = vpop.permute.xlu0 %355 }
 0x383   : > { %v358_v58 = vmul.f32 %v356_v57, %v352_v56 }
 0x385   : > { %v382_v59 = vadd.f32 %v1073_v0, %v358_v58  ;;  %v436_v0 = vld [vmem:[#allocation3 + $0x8] sm:$0xff] }
 0x386   : > { %v437_v5 = vmul.f32 %v1096_v29, %v436_v0 }
 0x387   : > { %383 = vst.msk [vmem:[#allocation4] sm:$0xff] %vm274_vm1, %v382_v59 }
 0x38a   : > { %v448_v10 = vpop.permute.xlu0 %447 }
 0x38b   : > { %v450_v12 = vmul.f32 %v448_v10, %v444_v9 }
 0x38e   : > { %v661_v40 = vld [vmem:[#allocation4] sm:$0xff] }
 0x394   : > { %629 = vperm.xlu1 %891, %v907_v61  }
 0x399   : > { %v348_v1 = vpop.xlane.xlu1 %347 }
 0x39a   : > { %v349_v2 = vadd.f32 %v348_v1, %v345_v63 }
 0x39c   : > { %351 = vst.msk [vmem:[#allocation3] sm:$0xff] %vm265_vm5, %v349_v2 }
 0x3a3   : > { %v662_v3 = vld [vmem:[#allocation3] sm:$0xff] }
 0x3a4   : > { %908 = vrcp.f32 %v662_v3 }
 0x3aa   : > { %v909_v4 = vpop.eup %908 }
 0x3ab   : > { %666 = vperm.xlu0 %889, %v909_v4  }
 0x3dc   : > { %v440_v6 = vpop.xlane.xlu2 %439 }
 0x3dd   : > { %v441_v7 = vadd.f32 %v440_v6, %v437_v5 }
 0x3df   : > { %442 = vst.msk [vmem:[#allocation3 + $0x8] sm:$0xff] %vm265_vm5, %v441_v7 }
 0x3e4   : > { %v539_v29 = vpop.permute.xlu2 %538 }
 0x3e5   : > { %v541_v32 = vmul.f32 %v539_v29, %v535_v28 }
 0x3e6   : > { %v674_v8 = vld [vmem:[#allocation3 + $0x8] sm:$0xff] }
 0x3e7   : > { %910 = vrcp.f32 %v674_v8 }
 0x3ed   : > { %v911_v13 = vpop.eup %910  ;;  %v469_v14 = vpop.f32.mrf.mxu3 }
 0x3ee   : > { %v473_v17 = vadd.f32 %v469_v14, %v450_v12  ;;  %v622_v18 = vpop.xlane.xlu1 %621  ;;  %678 = vperm.xlu2 %890, %v911_v13  }
 0x3ef   : > { %v623_v19 = vadd.f32 %v622_v18, %v619_v16 }
 0x3f0   : > { %474 = vst.msk [vmem:[#allocation4 + $0x8] sm:$0xff] %vm274_vm1, %v473_v17 }
 0x3f1   : > { %624 = vst.msk [vmem:[#allocation3 + $0x18] sm:$0xff] %vm265_vm5, %v623_v19 }
 0x3f2   : > { %v531_v22 = vpop.xlane.xlu0 %530 }
 0x3f3   : > { %v532_v23 = vadd.f32 %v531_v22, %v528_v21 }
 0x3f5   : > { %533 = vst.msk [vmem:[#allocation3 + $0x10] sm:$0xff] %vm265_vm5, %v532_v23  ;;  %v471_v24 = vpop.f32.mrf.mxu3 }
 0x3f7   : > { %v673_v44 = vld [vmem:[#allocation4 + $0x8] sm:$0xff] }
 0x3f8   : > { %v706_v25 = vld [vmem:[#allocation3 + $0x18] sm:$0xff] }
 0x3f9   : > { %912 = vrcp.f32 %v706_v25 }
 0x3fc   : > { %v690_v26 = vld [vmem:[#allocation3 + $0x10] sm:$0xff] }
 0x3fd   : > { %914 = vrcp.f32 %v690_v26 }
 0x3ff   : > { %v913_v27 = vpop.eup %912  ;;  %v651_v30 = vpop.f32.mrf.mxu2 }
 0x400   : > { %710 = vperm.xlu2 %890, %v913_v27  }
 0x403   : > { %v915_v31 = vpop.eup %914  ;;  %v560_v33 = vpop.f32.mrf.mxu3 }
 0x404   : > { %v564_v20 = vadd.f32 %v560_v33, %v541_v32  ;;  %694 = vperm.xlu1 %891, %v915_v31  }
 0x406   : > { %565 = vst.msk [vmem:[#allocation4 + $0x10] sm:$0xff] %vm274_vm1, %v564_v20  ;;  %v630_v35 = vpop.permute.xlu1 %629 }
 0x407   : > { %v632_v36 = vmul.f32 %v630_v35, %v626_v34  ;;  %v653_v37 = vpop.f32.mrf.mxu2 }
 0x409   : > { %v655_v38 = vadd.f32 %v651_v30, %v632_v36 }
 0x40b   : > { %656 = vst.msk [vmem:[#allocation4 + $0x18] sm:$0xff] %vm274_vm1, %v655_v38  ;;  %v562_v39 = vpop.f32.mrf.mxu3 }
 0x40d   : > { %v689_v53 = vld [vmem:[#allocation4 + $0x10] sm:$0xff] }
 0x412   : > { %v705_v48 = vld [vmem:[#allocation4 + $0x18] sm:$0xff] }
 0x41d   : > { %v667_v41 = vpop.permute.xlu0 %666 }
 0x41e   : > { %v669_v42 = vmul.f32 %v667_v41, %v661_v40 }
 0x420   : > { %v670_v43 = vpack.c.bf16 %v669_v42, %v669_v42 }
 0x422   : > { %672 = vst.msk [vmem:[%s259_s17] sm:$0xf] %vm671_vm7, %v670_v43 }
 0x448   : > { %v679_v45 = vpop.permute.xlu2 %678 }
 0x449   : > { %v681_v46 = vmul.f32 %v679_v45, %v673_v44 }
 0x44b   : > { %v682_v47 = vpack.c.bf16 %v681_v46, %v681_v46 }
 0x44d   : > { %684 = vrot.lane.b32.xlu0 %v682_v47, %s955_s18 }
 0x45a   : > { %v711_v49 = vpop.permute.xlu2 %710 }
 0x45b   : > { %v713_v50 = vmul.f32 %v711_v49, %v705_v48 }
 0x45d   : > { %v714_v51 = vpack.c.bf16 %v713_v50, %v713_v50 }
 0x45f   : > { %716 = vrot.lane.b32.xlu2 %v714_v51, %s956_s19 }
 0x476   : > { %v695_v52 = vpop.permute.xlu1 %694 }
 0x477   : > { %v697_v54 = vmul.f32 %v695_v52, %v689_v53 }
 0x479   : > { %v698_v55 = vpack.c.bf16 %v697_v54, %v697_v54 }
 0x47b   : > { %700 = vrot.lane.b32.xlu1 %v698_v55, %s957_s16 }
 0x4b9   : > { %v717_v58 = vpop.permute.xlu2 %716 }
 0x4bf   : > { %v685_v56 = vpop.permute.xlu0 %684 }
 0x4c0   : > { %688 = vst.msk [vmem:[%s259_s17] sm:$0xf] %vm687_vm8, %v685_v56 }
 0x4ed   : > { %v701_v57 = vpop.permute.xlu1 %700 }
 0x4ee   : > { %704 = vst.msk [vmem:[%s259_s17] sm:$0xf] %vm703_vm9, %v701_v57 }
 0x4ef   : > { %720 = vst.msk [vmem:[%s259_s17] sm:$0xf] %vm719_vm10, %v717_v58 }
 0x4f0 PF: > { %s13_s14 = sadd.s32 1, %s938_s14   ;;  %s1140_s12 = smov %s934_s13 }
 0x4f1   : > { %p10_p5 = scmp.ge.s32.totalorder %s13_s14, 4   ;;  %s1141_s13 = smov %s1143_s15 }
 0x4f3   :  { %12 = sbr.rel (!%p10_p5) target bundleno = 2 (0x2), region = 85 }

// kernel: _lambda_.44
= control target key start
LH: loop header
LB: loop body
LE: loop exit
PB: predicated region body
PF: predicated region fallthrough
CT: control target
= control target key end

     0   :  { %s947_s12 = smov 0   ;;  %s949_s13 = smov 0   ;;  %s1106_s0 = inlined_call_operand.vmem [shape: bf16[2,8,32], index: 0, kind: input, shape index: {}]   ;;  %s1107_s1 = inlined_call_operand.vmem [shape: bf16[2,8,64], index: 1, kind: input, shape index: {}]   ;;  %s1108_s2 = inlined_call_operand.vmem [shape: f32[2,1,8], index: 2, kind: input, shape index: {}]   ;;  %s1109_s3 = inlined_call_operand.vmem [shape: bf16[2,8,32], index: 3, kind: output, shape index: {}]  }
   0x1   :  { %s951_s14 = smov 0  }
   0x2 LB: > { %s32_s15 = sadd.s32 1, %s907_s13  ;;  %p810_p0 = scmp.ge.s32.totalorder %s911_s14, 1  ;;  %s911_s14 = sphi %s951_s14, %s13_s14   ;;  %s907_s13 = sphi %s949_s13, %s1111_s13   ;;  %s903_s12 = sphi %s947_s12, %s1110_s12  }
   0x3   : > { %p34_p1 = scmp.ge.s32.totalorder %s32_s15, 2  ;;  %p189_p2 = scmp.lt.s32.totalorder %s911_s14, 3 }
   0x5   : > { %s1113_s15 = smov (%p34_p1, %s32_s15), 0  ;;  %p190_p3 = pnand %p810_p0, %p189_p2 }
   0x6   : > { %p230_p4 = scmp.lt.s32.totalorder (!%p190_p3), %s903_s12, 1  ;;  %s916_s26 = smov (!%p190_p3), 120  }
   0x7   : > { %193 = sbr.rel (%p190_p3) target bundleno = 1138 (0x472), region = 32  ;;  %s918_s27 = smov (!%p190_p3), 96  }
   0x8   : > { %s919_s28 = smov (!%p190_p3), 112   ;;  %s920_s29 = smov (!%p190_p3), 104  }
   0x9   : > { %s921_s30 = smov (!%p190_p3), 88   ;;  %s922_s4 = smov (!%p190_p3), 80  }
   0xa   : > { %s923_s5 = smov (!%p190_p3), 72   ;;  %s924_s9 = smov (!%p190_p3), 8  }
   0xb   : > { %s925_s10 = smov (!%p190_p3), 24   ;;  %s926_s11 = smov (!%p190_p3), 16  }
   0xc   : > { %s1115_s12 = smov (!%p230_p4, %s903_s12), 1  ;;  %vm271_vm0 = vcmask 64512   ;;  %vm262_vm1 = vcmask 7168   ;;  %v913_v3 = vmov -1e+30   ;;  %v915_v16 = vmov 0  }
   0xd   : > { %s965_s16 = sshll.u32 %s1115_s12, 2  ;;  %263 = vst.msk [vmem:[#allocation2] sm:$0xff] %vm262_vm1, %v913_v3  ;;  %s249_s25 = scalar_lea.vmem %s1108_s2, %s1115_s12  ;;  %v914_v5 = vmov -1e+09   ;;  %862 = vset.pattern.permute.xlu1 %v915_v16  ;;  %863 = vset.pattern.permute.xlu2 %v915_v16  ;;  %v917_v17 = vmov 0.0   ;;  %vm346_vm3 = vcmask 1043456  }
   0xe   : > { %s971_s19 = scalar_lea.vmem %s1107_s1, %s965_s16  ;;  %s979_s22 = scalar_lea.vmem %s1106_s0, %s965_s16  ;;  %264 = vst.msk [vmem:[#allocation2 + $0x8] sm:$0xff] %vm262_vm1, %v913_v3  ;;  %v276_v4 = vld [vmem:[%s249_s25] sm:$0x1]  ;;  %864 = vset.pattern.permute.xlu0 %v915_v16  ;;  %vm652_vm4 = vcmask 60416   ;;  %vm668_vm5 = vcmask 126016   ;;  %vm684_vm6 = vcmask 191616  }
   0xf   : > { %v280_v0 = vld [vmem:[%s971_s19] sm:$0xf]  ;;  %265 = vst.msk [vmem:[#allocation2 + $0x10] sm:$0xff] %vm262_vm1, %v913_v3  ;;  %vm277_vm2 = vcmp.gt.f32.partialorder %v276_v4, 0.5  ;;  %s256_s8 = scalar_lea.vmem %s1109_s3, %s965_s16  ;;  %vm700_vm7 = vcmask 257216  }
  0x10   : > { %v286_v1 = vsel %vm271_vm0, %v280_v0, 0  ;;  %v279_v2 = vld [vmem:[%s979_s22] sm:$0xf]  ;;  %266 = vst.msk [vmem:[#allocation2 + $0x18] sm:$0xff] %vm262_vm1, %v913_v3  ;;  %v278_v6 = vsel %vm277_vm2, 0.0, %v914_v5  ;;  %v339_v18 = vunpack.c.l.b16 %v280_v0 }
  0x11   : > { %295 = vmatpush.bf16.xpose.msra.mxu0 %v286_v1  ;;  %v990_v7 = vperm.slane %v278_v6, 0  ;;  %v367_v13 = vld [vmem:[%s971_s19] sm:$0xf]  ;;  %267 = vst.msk [vmem:[#allocation3] sm:$0xff] %vm262_vm1, %v917_v17 }
  0x12   : > { %v374_v14 = vunpack.c.l.b16 %v367_v13  ;;  %268 = vst.msk [vmem:[#allocation3 + $0x8] sm:$0xff] %vm262_vm1, %v917_v17  ;;  %v340_v19 = vpack.c.b16 %v339_v18, %v339_v18  ;;  %v458_v20 = vld [vmem:[%s971_s19] sm:$0xf] }
  0x13   : > { %269 = vst.msk [vmem:[#allocation3 + $0x10] sm:$0xff] %vm262_vm1, %v917_v17  ;;  %v465_v21 = vunpack.c.l.b16 %v458_v20  ;;  %v366_v24 = vld [vmem:[%s979_s22] sm:$0xf] }
  0x14   : > { %v998_v15 = vpack.c.b16 %v374_v14, %v374_v14  ;;  %270 = vst.msk [vmem:[#allocation3 + $0x18] sm:$0xff] %vm262_vm1, %v917_v17  ;;  %341 = vrot.lane.b32.xlu2 %v340_v19, %s918_s27  ;;  %v1011_v22 = vld [vmem:[#allocation2] sm:$0xff]  ;;  %v369_v29 = vunpack.c.l.b16 %v366_v24 }
  0x15   : > { %272 = vst.msk [vmem:[#allocation4] sm:$0xff] %vm271_vm0, %v917_v17  ;;  %v1017_v26 = vpack.c.b16 %v465_v21, %v465_v21  ;;  %v457_v27 = vld [vmem:[%s979_s22] sm:$0xf] }
  0x16   : > { %273 = vst.msk [vmem:[#allocation4 + $0x8] sm:$0xff] %vm271_vm0, %v917_v17  ;;  %v460_v30 = vunpack.c.l.b16 %v457_v27  ;;  %v370_v31 = vpack.c.b16 %v369_v29, %v369_v29  ;;  %v549_v32 = vld [vmem:[%s971_s19] sm:$0xf] }
  0x17   : > { %274 = vst.msk [vmem:[#allocation4 + $0x10] sm:$0xff] %vm271_vm0, %v917_v17  ;;  %v556_v34 = vunpack.c.l.b16 %v549_v32  ;;  %v548_v36 = vld [vmem:[%s979_s22] sm:$0xf]  ;;  %v582_v13 = vld [vmem:[#allocation2 + $0x18] sm:$0xff] }
  0x18   : > { %814 = vmatmul.msk.bf16.vlgmr.msra.gmra.mxu0 %vm271_vm0, %v279_v2  ;;  %275 = vst.msk [vmem:[#allocation4 + $0x18] sm:$0xff] %vm271_vm0, %v917_v17  ;;  %v461_v33 = vpack.c.b16 %v460_v30, %v460_v30  ;;  %v551_v37 = vunpack.c.l.b16 %v548_v36  ;;  %v491_v17 = vld [vmem:[#allocation2 + $0x10] sm:$0xff]  ;;  %v322_v29 = vld [vmem:[#allocation3] sm:$0xff] }
  0x19   : > { %v1028_v35 = vpack.c.b16 %v556_v34, %v556_v34 }
  0x1a   : > { %v552_v38 = vpack.c.b16 %v551_v37, %v551_v37 }
  0x1c   : > { %467 = vrot.lane.b32.xlu2 %v1017_v26, %s919_s28 }
  0x24   : > { %462 = vrot.lane.b32.xlu2 %v461_v33, %s919_s28 }
  0x6e   : > { %v342_v41 = vpop.permute.xlu2 %341 }
  0x6f   : > { %v348_v42 = vsel %vm346_vm3, %v342_v41, 0 }
  0x70   : > { %357 = vmatpush.bf16.msra.mxu1 %v348_v42 }
  0x76   : > { %v468_v43 = vpop.permute.xlu2 %467 }
  0x77   : > { %v473_v44 = vsel %vm271_vm0, %v468_v43, 0 }
  0x78   : > { %482 = vmatpush.bf16.xpose.msrb.mxu1 %v473_v44 }
  0x7e   : > { %v463_v54 = vpop.permute.xlu2 %462 }
  0x95   : > { %v297_v8 = vpop.f32.mrf.mxu0 }
  0x96   : > { %v301_v9 = vmul.f32 0.35355338, %v297_v8 }
  0x98   : > { %v993_v10 = vadd.f32 %v990_v7, %v301_v9 }
  0x9a   : > { %v307_v11 = vsel %vm271_vm0, %v993_v10, -inf }
  0x9b   : > { %308 = vmax.xlane.f32.xlu0 %v307_v11 }
  0x9d   : > { %v299_v12 = vpop.f32.mrf.mxu0 }
  0xaf   : > { %376 = vrot.lane.b32.xlu0 %v998_v15, %s916_s26 }
 0x10e   : > { %v309_v23 = vpop.xlane.xlu0 %308 }
 0x10f   : > { %v1015_v25 = vmax.f32 %v1011_v22, %v309_v23 }
 0x111   : > { %v311_v28 = vsub.f32 %v1011_v22, %v1015_v25  ;;  %365 = vst.msk [vmem:[#allocation2] sm:$0xff] %vm262_vm1, %v1015_v25  ;;  %316 = vperm.xlu1 %862, %v1015_v25  }
 0x113   : > { %v312_v18 = vmul.f32 1.442695, %v311_v28 }
 0x119   : > { %371 = vrot.lane.b32.xlu1 %v370_v31, %s916_s26 }
 0x121   : > { %558 = vrot.lane.b32.xlu1 %v1028_v35, %s920_s29  ;;  %v377_v39 = vpop.permute.xlu0 %376 }
 0x122   : > { %v382_v40 = vsel %vm271_vm0, %v377_v39, 0 }
 0x123   : > { %391 = vmatpush.bf16.xpose.msra.mxu2 %v382_v40 }
 0x129   : > { %553 = vrot.lane.b32.xlu1 %v552_v38, %s920_s29 }
 0x183   : > { %v317_v45 = vpop.permute.xlu1 %316 }
 0x184   : > { %v319_v46 = vsub.f32 %v993_v10, %v317_v45  ;;  %v1055_v10 = vld [vmem:[#allocation2 + $0x8] sm:$0xff] }
 0x186   : > { %v320_v47 = vmul.f32 1.442695, %v319_v46 }
 0x188   : > { %865 = vpow2.f32 %v320_v47 }
 0x189   : > { %867 = vpow2.f32 %v312_v18 }
 0x18b   : > { %v372_v48 = vpop.permute.xlu1 %371 }
 0x18c   : > { %816 = vmatmul.msk.bf16.vlgmr.msra.gmra.mxu2 %vm271_vm0, %v372_v48 }
 0x18e   : > { %v866_v49 = vpop.eup %865 }
 0x18f   : > { %v337_v50 = vpack.c.bf16 %v866_v49, %v866_v49  ;;  %v324_v9 = vsel %vm271_vm0, %v866_v49, 0.0  ;;  %v868_v23 = vpop.eup %867 }
 0x190   : > { %v323_v22 = vmul.f32 %v868_v23, %v322_v29 }
 0x191   : > { %815 = vmatmul.msk.bf16.vlgmr.msra.gmra.mxu1 %vm271_vm0, %v337_v50 }
 0x193   : > { %v559_v51 = vpop.permute.xlu1 %558 }
 0x194   : > { %v564_v52 = vsel %vm271_vm0, %v559_v51, 0 }
 0x195   : > { %573 = vmatpush.bf16.xpose.msrb.mxu0 %v564_v52  ;;  %v330_v52 = vld [vmem:[#allocation4] sm:$0xff] }
 0x19b   : > { %v554_v53 = vpop.permute.xlu1 %553 }
 0x19c   : > { %820 = vmatmul.msk.bf16.vlgmr.msrb.gmra.mxu0 %vm271_vm0, %v554_v53 }
 0x1a1   : > { %818 = vmatmul.msk.bf16.vlgmr.msrb.gmra.mxu1 %vm271_vm0, %v463_v54 }
 0x20e   : > { %v1041_v55 = vpop.f32.mrf.mxu1 }
 0x20f   : > { %v393_v56 = vpop.f32.mrf.mxu2 }
 0x210   : > { %v397_v57 = vmul.f32 0.35355338, %v393_v56 }
 0x212   : > { %v398_v58 = vadd.f32 %v397_v57, %v990_v7 }
 0x214   : > { %v401_v59 = vsel %vm271_vm0, %v398_v58, -inf }
 0x215   : > { %402 = vmax.xlane.f32.xlu2 %v401_v59 }
 0x216   : > { %v361_v60 = vpop.f32.mrf.mxu1 }
 0x217   : > { %v395_v61 = vpop.f32.mrf.mxu2 }
 0x219   : > { %v575_v62 = vpop.f32.mrf.mxu0 }
 0x21a   : > { %v579_v63 = vmul.f32 0.35355338, %v575_v62 }
 0x21c   : > { %v580_v0 = vadd.f32 %v579_v63, %v990_v7 }
 0x21e   : > { %v484_v1 = vpop.f32.mrf.mxu1  ;;  %v583_v2 = vsel %vm271_vm0, %v580_v0, -inf }
 0x21f   : > { %v488_v3 = vmul.f32 0.35355338, %v484_v1  ;;  %584 = vmax.xlane.f32.xlu1 %v583_v2 }
 0x221   : > { %v577_v4 = vpop.f32.mrf.mxu0  ;;  %v1048_v5 = vadd.f32 %v488_v3, %v990_v7  ;;  %v599_v3 = vld [vmem:[#allocation3 + $0x18] sm:$0xff] }
 0x223   : > { %v492_v6 = vsel %vm271_vm0, %v1048_v5, -inf }
 0x224   : > { %493 = vmax.xlane.f32.xlu0 %v492_v6 }
 0x226   : > { %v486_v8 = vpop.f32.mrf.mxu1 }
 0x238   : > { %433 = vrot.lane.b32.xlu0 %v998_v15, %s921_s30 }
 0x240   : > { %524 = vrot.lane.b32.xlu0 %v1017_v26, %s922_s4 }
 0x26a   : > { %325 = vadd.xlane.f32.xlu0 %v324_v9 }
 0x288   : > { %v403_v11 = vpop.xlane.xlu2 %402 }
 0x289   : > { %v1058_v7 = vmax.f32 %v1055_v10, %v403_v11 }
 0x28b   : > { %v405_v12 = vsub.f32 %v1055_v10, %v1058_v7  ;;  %456 = vst.msk [vmem:[#allocation2 + $0x8] sm:$0xff] %vm262_vm1, %v1058_v7  ;;  %410 = vperm.xlu2 %863, %v1058_v7  }
 0x28d   : > { %v406_v60 = vmul.f32 1.442695, %v405_v12 }
 0x292   : > { %v585_v14 = vpop.xlane.xlu1 %584 }
 0x293   : > { %v586_v15 = vmax.f32 %v582_v13, %v585_v14  ;;  %v607_v14 = vld [vmem:[#allocation4 + $0x18] sm:$0xff] }
 0x295   : > { %v587_v16 = vsub.f32 %v582_v13, %v586_v15  ;;  %638 = vst.msk [vmem:[#allocation2 + $0x18] sm:$0xff] %vm262_vm1, %v586_v15  ;;  %592 = vperm.xlu2 %863, %v586_v15  }
 0x297   : > { %v494_v19 = vpop.xlane.xlu0 %493  ;;  %v588_v46 = vmul.f32 1.442695, %v587_v16 }
 0x298   : > { %v495_v20 = vmax.f32 %v491_v17, %v494_v19  ;;  %v508_v19 = vld [vmem:[#allocation3 + $0x10] sm:$0xff] }
 0x29a   : > { %v496_v21 = vsub.f32 %v491_v17, %v495_v20  ;;  %547 = vst.msk [vmem:[#allocation2 + $0x10] sm:$0xff] %vm262_vm1, %v495_v20  ;;  %501 = vperm.xlu1 %862, %v495_v20  }
 0x29c   : > { %v497_v45 = vmul.f32 1.442695, %v496_v21 }
 0x29d   : > { %615 = vrot.lane.b32.xlu2 %v1028_v35, %s923_s5 }
 0x2a2   : > { %333 = vperm.xlu1 %862, %v868_v23  }
 0x2aa   : > { %v434_v24 = vpop.permute.xlu0 %433 }
 0x2ab   : > { %v439_v26 = vsel %vm346_vm3, %v434_v24, 0 }
 0x2ac   : > { %448 = vmatpush.bf16.msra.mxu3 %v439_v26  ;;  %v516_v26 = vld [vmem:[#allocation4 + $0x10] sm:$0xff] }
 0x2b2   : > { %v525_v27 = vpop.permute.xlu0 %524 }
 0x2b3   : > { %v530_v39 = vsel %vm346_vm3, %v525_v27, 0 }
 0x2b4   : > { %539 = vmatpush.bf16.msrb.mxu3 %v530_v39 }
 0x2dd   : > { %v326_v25 = vpop.xlane.xlu0 %325 }
 0x2de   : > { %v327_v28 = vadd.f32 %v326_v25, %v323_v22 }
 0x2e0   : > { %329 = vst.msk [vmem:[#allocation3] sm:$0xff] %vm262_vm1, %v327_v28 }
 0x2e5   : > { %v411_v30 = vpop.permute.xlu2 %410 }
 0x2e6   : > { %v413_v31 = vsub.f32 %v398_v58, %v411_v30  ;;  %v425_v30 = vld [vmem:[#allocation4 + $0x8] sm:$0xff] }
 0x2e7   : > { %v643_v61 = vld [vmem:[#allocation3] sm:$0xff] }
 0x2e8   : > { %v414_v32 = vmul.f32 1.442695, %v413_v31 }
 0x2ea   : > { %869 = vpow2.f32 %v414_v32 }
 0x2ef   : > { %v593_v33 = vpop.permute.xlu2 %592 }
 0x2f0   : > { %v870_v34 = vpop.eup %869  ;;  %v595_v35 = vsub.f32 %v580_v0, %v593_v33 }
 0x2f1   : > { %v419_v36 = vsel %vm271_vm0, %v870_v34, 0.0  ;;  %v432_v37 = vpack.c.bf16 %v870_v34, %v870_v34 }
 0x2f2   : > { %v596_v38 = vmul.f32 1.442695, %v595_v35  ;;  %420 = vadd.xlane.f32.xlu2 %v419_v36 }
 0x2f3   : > { %817 = vmatmul.msk.bf16.vlgmr.msra.gmra.mxu3 %vm271_vm0, %v432_v37 }
 0x2f4   : > { %871 = vpow2.f32 %v596_v38 }
 0x2f5   : > { %873 = vpow2.f32 %v497_v45 }
 0x2f6   : > { %875 = vpow2.f32 %v588_v46 }
 0x2f7   : > { %v616_v40 = vpop.permute.xlu2 %615 }
 0x2f8   : > { %v621_v41 = vsel %vm346_vm3, %v616_v40, 0 }
 0x2f9   : > { %630 = vmatpush.bf16.msrb.mxu2 %v621_v41 }
 0x2fa   : > { %v872_v42 = vpop.eup %871 }
 0x2fb   : > { %v601_v43 = vsel %vm271_vm0, %v872_v42, 0.0  ;;  %v614_v44 = vpack.c.bf16 %v872_v42, %v872_v42  ;;  %v874_v47 = vpop.eup %873 }
 0x2fc   : > { %602 = vadd.xlane.f32.xlu0 %v601_v43  ;;  %v876_v50 = vpop.eup %875  ;;  %v509_v20 = vmul.f32 %v874_v47, %v508_v19 }
 0x2fd   : > { %821 = vmatmul.msk.bf16.vlgmr.msrb.gmra.mxu2 %vm271_vm0, %v614_v44  ;;  %v600_v4 = vmul.f32 %v876_v50, %v599_v3 }
 0x30a   : > { %519 = vperm.xlu2 %863, %v874_v47  }
 0x30c   : > { %v502_v48 = vpop.permute.xlu1 %501 }
 0x30d   : > { %v504_v49 = vsub.f32 %v1048_v5, %v502_v48 }
 0x30f   : > { %v505_v51 = vmul.f32 1.442695, %v504_v49 }
 0x310   : > { %610 = vperm.xlu0 %864, %v876_v50  }
 0x311   : > { %877 = vpow2.f32 %v505_v51 }
 0x312   : > { %879 = vpow2.f32 %v406_v60 }
 0x313   : > { %881 = vrcp.f32 %v643_v61 }
 0x314   : > { %v334_v53 = vpop.permute.xlu1 %333 }
 0x315   : > { %v336_v54 = vmul.f32 %v334_v53, %v330_v52 }
 0x317   : > { %v878_v56 = vpop.eup %877  ;;  %v363_v57 = vadd.f32 %v1041_v55, %v336_v54  ;;  %v417_v55 = vld [vmem:[#allocation3 + $0x8] sm:$0xff] }
 0x318   : > { %v510_v58 = vsel %vm271_vm0, %v878_v56, 0.0  ;;  %v523_v59 = vpack.c.bf16 %v878_v56, %v878_v56  ;;  %v880_v62 = vpop.eup %879 }
 0x319   : > { %364 = vst.msk [vmem:[#allocation4] sm:$0xff] %vm271_vm0, %v363_v57  ;;  %511 = vadd.xlane.f32.xlu1 %v510_v58  ;;  %v882_v63 = vpop.eup %881  ;;  %v418_v0 = vmul.f32 %v880_v62, %v417_v55 }
 0x31a   : > { %819 = vmatmul.msk.bf16.vlgmr.msrb.gmra.mxu3 %vm271_vm0, %v523_v59 }
 0x320   : > { %v642_v35 = vld [vmem:[#allocation4] sm:$0xff] }
 0x332   : > { %428 = vperm.xlu1 %862, %v880_v62  }
 0x33a   : > { %647 = vperm.xlu1 %862, %v882_v63  }
 0x365   : > { %v421_v1 = vpop.xlane.xlu2 %420 }
 0x366   : > { %v422_v2 = vadd.f32 %v421_v1, %v418_v0 }
 0x368   : > { %423 = vst.msk [vmem:[#allocation3 + $0x8] sm:$0xff] %vm262_vm1, %v422_v2 }
 0x36d   : > { %v520_v27 = vpop.permute.xlu2 %519 }
 0x36e   : > { %v522_v29 = vmul.f32 %v520_v27, %v516_v26 }
 0x36f   : > { %v603_v5 = vpop.xlane.xlu0 %602  ;;  %v655_v6 = vld [vmem:[#allocation3 + $0x8] sm:$0xff] }
 0x370   : > { %v604_v8 = vadd.f32 %v603_v5, %v600_v4  ;;  %883 = vrcp.f32 %v655_v6 }
 0x372   : > { %605 = vst.msk [vmem:[#allocation3 + $0x18] sm:$0xff] %vm262_vm1, %v604_v8 }
 0x376   : > { %v884_v9 = vpop.eup %883  ;;  %v450_v10 = vpop.f32.mrf.mxu3 }
 0x377   : > { %659 = vperm.xlu2 %863, %v884_v9  }
 0x379   : > { %v687_v11 = vld [vmem:[#allocation3 + $0x18] sm:$0xff] }
 0x37a   : > { %885 = vrcp.f32 %v687_v11 }
 0x37e   : > { %v452_v7 = vpop.f32.mrf.mxu3 }
 0x380   : > { %v886_v12 = vpop.eup %885  ;;  %v632_v13 = vpop.f32.mrf.mxu2 }
 0x381   : > { %691 = vperm.xlu1 %862, %v886_v12  }
 0x382   : > { %v611_v15 = vpop.permute.xlu0 %610 }
 0x383   : > { %v613_v16 = vmul.f32 %v611_v15, %v607_v14 }
 0x385   : > { %v636_v17 = vadd.f32 %v632_v13, %v613_v16 }
 0x387   : > { %637 = vst.msk [vmem:[#allocation4 + $0x18] sm:$0xff] %vm271_vm0, %v636_v17 }
 0x388   : > { %v634_v18 = vpop.f32.mrf.mxu2 }
 0x38c   : > { %v512_v21 = vpop.xlane.xlu1 %511 }
 0x38d   : > { %v513_v23 = vadd.f32 %v512_v21, %v509_v20 }
 0x38e   : > { %v686_v43 = vld [vmem:[#allocation4 + $0x18] sm:$0xff] }
 0x38f   : > { %514 = vst.msk [vmem:[#allocation3 + $0x10] sm:$0xff] %vm262_vm1, %v513_v23 }
 0x396   : > { %v671_v24 = vld [vmem:[#allocation3 + $0x10] sm:$0xff] }
 0x397   : > { %887 = vrcp.f32 %v671_v24 }
 0x39d   : > { %v888_v22 = vpop.eup %887  ;;  %v541_v25 = vpop.f32.mrf.mxu3 }
 0x39e   : > { %v545_v28 = vadd.f32 %v541_v25, %v522_v29  ;;  %675 = vperm.xlu2 %863, %v888_v22  }
 0x3a0   : > { %546 = vst.msk [vmem:[#allocation4 + $0x10] sm:$0xff] %vm271_vm0, %v545_v28 }
 0x3a4   : > { %v429_v31 = vpop.permute.xlu1 %428 }
 0x3a5   : > { %v431_v32 = vmul.f32 %v429_v31, %v425_v30  ;;  %v543_v33 = vpop.f32.mrf.mxu3 }
 0x3a7   : > { %v454_v34 = vadd.f32 %v450_v10, %v431_v32  ;;  %v670_v47 = vld [vmem:[#allocation4 + $0x10] sm:$0xff] }
 0x3a9   : > { %455 = vst.msk [vmem:[#allocation4 + $0x8] sm:$0xff] %vm271_vm0, %v454_v34 }
 0x3ac   : > { %v648_v36 = vpop.permute.xlu1 %647 }
 0x3ad   : > { %v650_v37 = vmul.f32 %v648_v36, %v642_v35 }
 0x3af   : > { %v651_v38 = vpack.c.bf16 %v650_v37, %v650_v37 }
 0x3b0   : > { %v654_v40 = vld [vmem:[#allocation4 + $0x8] sm:$0xff] }
 0x3b1   : > { %653 = vst.msk [vmem:[%s256_s8] sm:$0xf] %vm652_vm4, %v651_v38 }
 0x3d1   : > { %v660_v39 = vpop.permute.xlu2 %659 }
 0x3d2   : > { %v662_v41 = vmul.f32 %v660_v39, %v654_v40 }
 0x3d4   : > { %v663_v42 = vpack.c.bf16 %v662_v41, %v662_v41 }
 0x3d6   : > { %665 = vrot.lane.b32.xlu2 %v663_v42, %s924_s9 }
 0x3f3   : > { %v692_v44 = vpop.permute.xlu1 %691 }
 0x3f4   : > { %v694_v45 = vmul.f32 %v692_v44, %v686_v43 }
 0x3f6   : > { %v695_v46 = vpack.c.bf16 %v694_v45, %v694_v45 }
 0x3f8   : > { %v676_v48 = vpop.permute.xlu2 %675  ;;  %697 = vrot.lane.b32.xlu1 %v695_v46, %s925_s10 }
 0x3f9   : > { %v678_v49 = vmul.f32 %v676_v48, %v670_v47 }
 0x3fb   : > { %v679_v50 = vpack.c.bf16 %v678_v49, %v678_v49 }
 0x3fd   : > { %681 = vrot.lane.b32.xlu0 %v679_v50, %s926_s11 }
 0x430   : > { %v666_v51 = vpop.permute.xlu2 %665 }
 0x431   : > { %669 = vst.msk [vmem:[%s256_s8] sm:$0xf] %vm668_vm5, %v666_v51 }
 0x46a   : > { %v698_v53 = vpop.permute.xlu1 %697 }
 0x46f   : > { %v682_v52 = vpop.permute.xlu0 %681 }
 0x470   : > { %685 = vst.msk [vmem:[%s256_s8] sm:$0xf] %vm684_vm6, %v682_v52 }
 0x471   : > { %701 = vst.msk [vmem:[%s256_s8] sm:$0xf] %vm700_vm7, %v698_v53 }
 0x472 PF: > { %s13_s14 = sadd.s32 1, %s911_s14   ;;  %s1110_s12 = smov %s907_s13 }
 0x473   : > { %p10_p5 = scmp.ge.s32.totalorder %s13_s14, 4   ;;  %s1111_s13 = smov %s1113_s15 }
 0x475   :  { %12 = sbr.rel (!%p10_p5) target bundleno = 2 (0x2), region = 85 }

</bundles_post_ra>
